<compile_context>
chip_gen: v7x
topology: tpu7x:2x2x1
jax: 0.10.0
libtpu: 0.0.40
codegen_flags: <defaults>
</compile_context>

<pallas_src>
import numpy as np
import jax
import jax.numpy as jnp
from jax.experimental import pallas as pl
from jax.experimental.pallas import tpu as pltpu

# --------------------------------------------------------------------------
# Static network geometry (fixed by Linear(980, 128): 3x28x28 CMNIST input)
# --------------------------------------------------------------------------
KSIZE, STRIDE, PADDING = 4, 2, 1
C0, H0, W0 = 3, 28, 28
C1, H1, W1 = 10, 14, 14
C2, H2, W2 = 20, 7, 7
NTAP = KSIZE * KSIZE              # 16
R1 = H1 * W1                      # 196 conv1 output positions per image
P2 = H2 * W2                      # 49  conv2 output positions per image
P2_PAD = 64                       # per-tap block padded to a bf16 sublane tile
F_FC1_IN = C2 * P2                # 980
F_FC1_OUT = 128
F_FC2_OUT = 10
K1 = C0 * KSIZE * KSIZE           # 48
K1_PAD = 128                      # conv1 contraction padded to lane width
N_OUT_PAD = 128                   # final store padded to a dense 128-lane width
COMPUTE_DTYPE = jnp.bfloat16      # MXU operand dtype (f32 accumulation)


# --------------------------------------------------------------------------
# Fused per-image forward kernel (grid iterates / parallelizes over batch).
# --------------------------------------------------------------------------
def _fused_forward_kernel(col1_ref, w1_ref, b1_ref,
                          s2_ref, w2_ref, b2_ref,
                          vt_ref, bfc1_ref, wfc2_ref, bfc2_ref, out_ref):
    f32 = jnp.float32

    # ---- conv1: (196,128)bf16 @ (128,10)bf16, f32 acc, bias + ReLU
    h1 = jnp.dot(col1_ref[...], w1_ref[...], preferred_element_type=f32)
    h1 = jnp.maximum(h1 + b1_ref[...], 0.0).astype(COMPUTE_DTYPE)   # (196, 10)

    # ---- conv2 stage 1: ONE stacked gather matmul over all 16 taps
    #      (1024,196)bf16 @ (196,10)bf16 -> (1024,10); rows are exact copies
    #      of bf16 h1 rows (or zero padding) -> bf16 re-cast is lossless.
    g = jnp.dot(s2_ref[...], h1, preferred_element_type=f32)
    g = g.astype(COMPUTE_DTYPE)                                      # (1024, 10)

    # ---- conv2 stage 2: per-tap channel mix (64,10)@(10,20), accumulate
    acc2 = jnp.zeros((P2_PAD, C2), f32)
    for tap in range(NTAP):
        acc2 = acc2 + jnp.dot(g[tap * P2_PAD:(tap + 1) * P2_PAD, :],
                              w2_ref[tap], preferred_element_type=f32)
    # rows >= 49 hold relu(b2) garbage; vt has zero rows there so fc1 ignores them
    h2 = jnp.maximum(acc2 + b2_ref[...], 0.0)                        # (64, 20)

    # ---- fc1: PyTorch (C,H,W) flatten folded into vt (f32, batch-invariant)
    z = jnp.zeros((P2_PAD, F_FC1_OUT), f32)
    for c in range(C2):
        z = z + h2[:, c:c + 1] * vt_ref[c]                           # (64, 128)
    o1 = jnp.sum(z, axis=0, keepdims=True)                           # (1, 128)
    o1 = jnp.maximum(o1 + bfc1_ref[...], 0.0)

    # ---- fc2 (outputs zero-padded to 128 lanes -> dense final store)
    o2 = jnp.dot(o1.astype(COMPUTE_DTYPE), wfc2_ref[...],
                 preferred_element_type=f32)
    out_ref[...] = (o2 + bfc2_ref[...]).astype(out_ref.dtype)


def _fused_forward_call(col1, kp):
    batch = col1.shape[0]
    args = (col1, kp["w1"], kp["b1"], kp["s2"], kp["w2t"], kp["b2"],
            kp["vt"], kp["bfc1"], kp["wfc2"], kp["bfc2"])

    def resident(a):  # full-array block, index-invariant -> stays in VMEM
        nd = a.ndim
        return pl.BlockSpec(a.shape, lambda b, _nd=nd: (0,) * _nd)

    in_specs = [pl.BlockSpec((None, R1, K1_PAD), lambda b: (b, 0, 0))]
    in_specs += [resident(a) for a in args[1:]]
    out_specs = pl.BlockSpec((None, 1, N_OUT_PAD), lambda b: (b, 0, 0))

    flops_per_b = (2 * R1 * K1_PAD * C1
                   + 2 * (NTAP * P2_PAD) * R1 * C1
                   + NTAP * 2 * P2_PAD * C1 * C2
                   + 2 * C2 * P2_PAD * F_FC1_OUT
                   + 2 * F_FC1_OUT * N_OUT_PAD)
    bytes_accessed = (sum(int(np.prod(a.shape)) * a.dtype.itemsize for a in args)
                      + batch * N_OUT_PAD * 4)

    return pl.pallas_call(
        _fused_forward_kernel,
        out_shape=jax.ShapeDtypeStruct((batch, 1, N_OUT_PAD), jnp.float32),
        grid=(batch,),
        in_specs=in_specs,
        out_specs=out_specs,
        compiler_params=pltpu.CompilerParams(
            dimension_semantics=("parallel",),
            vmem_limit_bytes=32 * 1024 * 1024),
        cost_estimate=pl.CostEstimate(flops=int(batch * flops_per_b),
                                      transcendentals=0,
                                      bytes_accessed=int(bytes_accessed)),
    )(*args)


# --------------------------------------------------------------------------
# Glue: im2col for conv1 only (raw input is tiny; fused by XLA under jit).
# Rows ordered (oh, ow); features ordered (ci, kh, kw); K padded 48 -> 128.
# --------------------------------------------------------------------------
def _im2col_conv1(x):
    B = x.shape[0]
    xp = jnp.pad(x, ((0, 0), (0, 0), (PADDING, PADDING), (PADDING, PADDING)))
    taps = []
    for kh in range(KSIZE):
        for kw in range(KSIZE):
            taps.append(xp[:, :, kh:kh + STRIDE * H1:STRIDE,
                               kw:kw + STRIDE * W1:STRIDE])     # (B, C0, 14, 14)
    col = jnp.stack(taps, axis=0).reshape(KSIZE, KSIZE, B, C0, H1, W1)
    col = col.transpose(2, 4, 5, 3, 0, 1).reshape(B, R1, K1)
    col = jnp.pad(col, ((0, 0), (0, 0), (0, K1_PAD - K1)))
    return col.astype(COMPUTE_DTYPE)


# --------------------------------------------------------------------------
# Parameters (PyTorch layout) + one-time, batch-invariant kernel-ready transform
# --------------------------------------------------------------------------
def init_params(key):
    ks = jax.random.split(key, 8)

    def u(k, shape, fan_in):
        bound = 1.0 / np.sqrt(fan_in)
        return jax.random.uniform(k, shape, jnp.float32, -bound, bound)

    return {
        "conv1_w": u(ks[0], (C1, C0, KSIZE, KSIZE), K1),
        "conv1_b": u(ks[1], (C1,), K1),
        "conv2_w": u(ks[2], (C2, C1, KSIZE, KSIZE), C1 * KSIZE * KSIZE),
        "conv2_b": u(ks[3], (C2,), C1 * KSIZE * KSIZE),
        "fc1_w": u(ks[4], (F_FC1_OUT, F_FC1_IN), F_FC1_IN),
        "fc1_b": u(ks[5], (F_FC1_OUT,), F_FC1_IN),
        "fc2_w": u(ks[6], (F_FC2_OUT, F_FC1_OUT), F_FC1_OUT),
        "fc2_b": u(ks[7], (F_FC2_OUT,), F_FC1_OUT),
    }


def prepare_params(params):
    """One-time transform of PyTorch-layout params into pre-transposed /
    pre-permuted / pre-padded, kernel-ready arrays. Batch-size independent."""
    # conv1 weight: (K1_PAD, 10), features (ci, kh, kw), K zero-padded 48->128
    w1 = params["conv1_w"].reshape(C1, K1).T
    w1p = jnp.zeros((K1_PAD, C1), jnp.float32).at[:K1].set(w1)

    # conv2 per-tap (Cin, Cout) weights, tap = kh*4 + kw
    w2t = params["conv2_w"].transpose(2, 3, 1, 0).reshape(NTAP, C1, C2)

    # Stacked conv2 gather matrix (batch-invariant):
    # s2[tap*64 + p, r1] = 1 iff conv1-output position r1 feeds conv2-output
    # position p through tap (kh, kw); all-zero rows realize padding + the
    # 49->64 per-tap row padding.
    s2 = np.zeros((NTAP * P2_PAD, R1), np.float32)
    for oh in range(H2):
        for ow in range(W2):
            p = oh * W2 + ow
            for kh in range(KSIZE):
                for kw in range(KSIZE):
                    ih = oh * STRIDE + kh - PADDING
                    iw = ow * STRIDE + kw - PADDING
                    if 0 <= ih < H1 and 0 <= iw < W1:
                        s2[(kh * KSIZE + kw) * P2_PAD + p, ih * W1 + iw] = 1.0

    # fc1: fold PyTorch's (C,H,W) flatten permutation into the weight; pad the
    # position axis 49 -> 64 with zero rows (so padded h2 rows are ignored).
    vt = params["fc1_w"].reshape(F_FC1_OUT, C2, P2).transpose(1, 2, 0)  # (20,49,128)
    vt = jnp.pad(vt, ((0, 0), (0, P2_PAD - P2), (0, 0)))                # (20,64,128)

    # fc2: transpose + pad outputs 10 -> 128 so the final HBM store is lane-dense
    wfc2 = jnp.zeros((F_FC1_OUT, N_OUT_PAD), jnp.float32).at[:, :F_FC2_OUT].set(
        params["fc2_w"].T)
    bfc2 = jnp.zeros((N_OUT_PAD,), jnp.float32).at[:F_FC2_OUT].set(params["fc2_b"])

    cd = COMPUTE_DTYPE
    return {
        "w1": w1p.astype(cd),
        "b1": params["conv1_b"].reshape(1, C1).astype(jnp.float32),
        "s2": jnp.asarray(s2, cd),
        "w2t": w2t.astype(cd),
        "b2": params["conv2_b"].reshape(1, C2).astype(jnp.float32),
        "vt": vt.astype(jnp.float32),
        "bfc1": params["fc1_b"].reshape(1, F_FC1_OUT).astype(jnp.float32),
        "wfc2": wfc2.astype(cd),
        "bfc2": bfc2.reshape(1, N_OUT_PAD).astype(jnp.float32),
    }


# --------------------------------------------------------------------------
# Forward pass (matches ImageClassifier.forward; dropout = identity / eval)
# --------------------------------------------------------------------------
@jax.jit
def image_classifier_forward(kernel_params, x):
    col1 = _im2col_conv1(x)                       # only XLA glue: input im2col
    padded_logits = _fused_forward_call(col1, kernel_params)   # (B, 1, 128)
    return (padded_logits[:, 0, :F_FC2_OUT],)


# --------------------------------------------------------------------------
# Pure-JAX reference (f32) for a correctness check
# --------------------------------------------------------------------------
def reference_forward(params, x):
    def conv(x, w, b):
        y = jax.lax.conv_general_dilated(
            x, w, window_strides=(STRIDE, STRIDE),
            padding=((PADDING, PADDING), (PADDING, PADDING)),
            dimension_numbers=("NCHW", "OIHW", "NCHW"))
        return y + b[None, :, None, None]

    y = jax.nn.relu(conv(x, params["conv1_w"], params["conv1_b"]))
    y = jax.nn.relu(conv(y, params["conv2_w"], params["conv2_b"]))
    y = y.reshape(x.shape[0], -1)
    y = jax.nn.relu(y @ params["fc1_w"].T + params["fc1_b"])
    y = y @ params["fc2_w"].T + params["fc2_b"]
    return (y,)


if __name__ == "__main__":
    B = 2
    k_x, k_p = jax.random.split(jax.random.PRNGKey(0))
    x = jax.random.normal(k_x, (B, C0, H0, W0), dtype=jnp.float32)

    params = init_params(k_p)
    kernel_params = prepare_params(params)        # batch-size independent now

    (logits,) = image_classifier_forward(kernel_params, x)
    logits = jax.block_until_ready(logits)
    assert logits.shape == (B, F_FC2_OUT), logits.shape

    (ref_logits,) = reference_forward(params, x)
    # bf16 MXU operands with f32 accumulation -> few-1e-3 abs error expected.
    np.testing.assert_allclose(np.asarray(logits), np.asarray(ref_logits),
                               rtol=3e-2, atol=3e-2)

    print("KERNEL_OK")
</pallas_src>

<mosaic_0001>
module attributes {stable_mosaic.version = 11 : i64} {
  func.func @_fused_forward_kernel(%arg0: i32, %arg1: memref<1x196x128xbf16, #tpu.memory_space<vmem>>, %arg2: memref<128x10xbf16, #tpu.memory_space<vmem>>, %arg3: memref<1x10xf32, #tpu.memory_space<vmem>>, %arg4: memref<1024x196xbf16, #tpu.memory_space<vmem>>, %arg5: memref<16x10x20xbf16, #tpu.memory_space<vmem>>, %arg6: memref<1x20xf32, #tpu.memory_space<vmem>>, %arg7: memref<20x64x128xf32, #tpu.memory_space<vmem>>, %arg8: memref<1x128xf32, #tpu.memory_space<vmem>>, %arg9: memref<128x128xbf16, #tpu.memory_space<vmem>>, %arg10: memref<1x128xf32, #tpu.memory_space<vmem>>, %arg11: memref<1x1x128xf32, #tpu.memory_space<vmem>>) attributes {dimension_semantics = [#tpu.dimension_semantics<parallel>], iteration_bounds = array<i64: 2>, scalar_prefetch = 0 : i64, scratch_operands = 0 : i64, tpu.core_type = #tpu.core_type<tc>, window_params = [{transform_indices = @transform_0, window_bounds = array<i64: 1, 196, 128>}, {pipeline_mode = #tpu.pipeline_mode<synchronous>, transform_indices = @transform_1, window_bounds = array<i64: 128, 10>}, {pipeline_mode = #tpu.pipeline_mode<synchronous>, transform_indices = @transform_2, window_bounds = array<i64: 1, 10>}, {pipeline_mode = #tpu.pipeline_mode<synchronous>, transform_indices = @transform_3, window_bounds = array<i64: 1024, 196>}, {pipeline_mode = #tpu.pipeline_mode<synchronous>, transform_indices = @transform_4, window_bounds = array<i64: 16, 10, 20>}, {pipeline_mode = #tpu.pipeline_mode<synchronous>, transform_indices = @transform_5, window_bounds = array<i64: 1, 20>}, {pipeline_mode = #tpu.pipeline_mode<synchronous>, transform_indices = @transform_6, window_bounds = array<i64: 20, 64, 128>}, {pipeline_mode = #tpu.pipeline_mode<synchronous>, transform_indices = @transform_7, window_bounds = array<i64: 1, 128>}, {pipeline_mode = #tpu.pipeline_mode<synchronous>, transform_indices = @transform_8, window_bounds = array<i64: 128, 128>}, {pipeline_mode = #tpu.pipeline_mode<synchronous>, transform_indices = @transform_9, window_bounds = array<i64: 1, 128>}, {transform_indices = @transform_10, window_bounds = array<i64: 1, 1, 128>}]} {
    %c0 = arith.constant 0 : index
    %c0_0 = arith.constant 0 : index
    %c0_1 = arith.constant 0 : index
    %0 = vector.load %arg1[%c0, %c0_0, %c0_1] : memref<1x196x128xbf16, #tpu.memory_space<vmem>>, vector<1x196x128xbf16>
    %1 = vector.shape_cast %0 : vector<1x196x128xbf16> to vector<196x128xbf16>
    %c0_2 = arith.constant 0 : index
    %c0_3 = arith.constant 0 : index
    %2 = vector.load %arg2[%c0_2, %c0_3] : memref<128x10xbf16, #tpu.memory_space<vmem>>, vector<128x10xbf16>
    %cst = arith.constant dense<0.000000e+00> : vector<196x10xf32>
    %3 = tpu.matmul %1, %2, %cst {dimension_numbers = #tpu.dot_dimension_numbers<[1], [0], [0], [1], [0, 0, 1, 1], [], []>} : vector<196x128xbf16>, vector<128x10xbf16>, vector<196x10xf32> -> vector<196x10xf32>
    %c0_4 = arith.constant 0 : index
    %c0_5 = arith.constant 0 : index
    %4 = vector.load %arg3[%c0_4, %c0_5] : memref<1x10xf32, #tpu.memory_space<vmem>>, vector<1x10xf32>
    %5 = vector.broadcast %4 : vector<1x10xf32> to vector<196x10xf32>
    %6 = arith.addf %3, %5 : vector<196x10xf32>
    %cst_6 = arith.constant 0.000000e+00 : f32
    %7 = vector.broadcast %cst_6 : f32 to vector<196x10xf32>
    %8 = arith.maximumf %6, %7 : vector<196x10xf32>
    %9 = arith.truncf %8 : vector<196x10xf32> to vector<196x10xbf16>
    %c0_7 = arith.constant 0 : index
    %c0_8 = arith.constant 0 : index
    %10 = vector.load %arg4[%c0_7, %c0_8] : memref<1024x196xbf16, #tpu.memory_space<vmem>>, vector<1024x196xbf16>
    %cst_9 = arith.constant dense<0.000000e+00> : vector<1024x10xf32>
    %11 = tpu.matmul %10, %9, %cst_9 {dimension_numbers = #tpu.dot_dimension_numbers<[1], [0], [0], [1], [0, 0, 1, 1], [], []>} : vector<1024x196xbf16>, vector<196x10xbf16>, vector<1024x10xf32> -> vector<1024x10xf32>
    %12 = arith.truncf %11 : vector<1024x10xf32> to vector<1024x10xbf16>
    %cst_10 = arith.constant 0.000000e+00 : f32
    %13 = vector.broadcast %cst_10 : f32 to vector<64x20xf32>
    %14 = vector.extract_strided_slice %12 {offsets = [0, 0], sizes = [64, 10], strides = [1, 1]} : vector<1024x10xbf16> to vector<64x10xbf16>
    %c0_11 = arith.constant 0 : index
    %c0_12 = arith.constant 0 : index
    %c0_13 = arith.constant 0 : index
    %15 = vector.load %arg5[%c0_11, %c0_12, %c0_13] : memref<16x10x20xbf16, #tpu.memory_space<vmem>>, vector<1x10x20xbf16>
    %16 = vector.shape_cast %15 : vector<1x10x20xbf16> to vector<10x20xbf16>
    %cst_14 = arith.constant dense<0.000000e+00> : vector<64x20xf32>
    %17 = tpu.matmul %14, %16, %cst_14 {dimension_numbers = #tpu.dot_dimension_numbers<[1], [0], [0], [1], [0, 0, 1, 1], [], []>} : vector<64x10xbf16>, vector<10x20xbf16>, vector<64x20xf32> -> vector<64x20xf32>
    %18 = arith.addf %13, %17 : vector<64x20xf32>
    %19 = vector.extract_strided_slice %12 {offsets = [64, 0], sizes = [64, 10], strides = [1, 1]} : vector<1024x10xbf16> to vector<64x10xbf16>
    %c1 = arith.constant 1 : index
    %c0_15 = arith.constant 0 : index
    %c0_16 = arith.constant 0 : index
    %20 = vector.load %arg5[%c1, %c0_15, %c0_16] : memref<16x10x20xbf16, #tpu.memory_space<vmem>>, vector<1x10x20xbf16>
    %21 = vector.shape_cast %20 : vector<1x10x20xbf16> to vector<10x20xbf16>
    %cst_17 = arith.constant dense<0.000000e+00> : vector<64x20xf32>
    %22 = tpu.matmul %19, %21, %cst_17 {dimension_numbers = #tpu.dot_dimension_numbers<[1], [0], [0], [1], [0, 0, 1, 1], [], []>} : vector<64x10xbf16>, vector<10x20xbf16>, vector<64x20xf32> -> vector<64x20xf32>
    %23 = arith.addf %18, %22 : vector<64x20xf32>
    %24 = vector.extract_strided_slice %12 {offsets = [128, 0], sizes = [64, 10], strides = [1, 1]} : vector<1024x10xbf16> to vector<64x10xbf16>
    %c2 = arith.constant 2 : index
    %c0_18 = arith.constant 0 : index
    %c0_19 = arith.constant 0 : index
    %25 = vector.load %arg5[%c2, %c0_18, %c0_19] : memref<16x10x20xbf16, #tpu.memory_space<vmem>>, vector<1x10x20xbf16>
    %26 = vector.shape_cast %25 : vector<1x10x20xbf16> to vector<10x20xbf16>
    %cst_20 = arith.constant dense<0.000000e+00> : vector<64x20xf32>
    %27 = tpu.matmul %24, %26, %cst_20 {dimension_numbers = #tpu.dot_dimension_numbers<[1], [0], [0], [1], [0, 0, 1, 1], [], []>} : vector<64x10xbf16>, vector<10x20xbf16>, vector<64x20xf32> -> vector<64x20xf32>
    %28 = arith.addf %23, %27 : vector<64x20xf32>
    %29 = vector.extract_strided_slice %12 {offsets = [192, 0], sizes = [64, 10], strides = [1, 1]} : vector<1024x10xbf16> to vector<64x10xbf16>
    %c3 = arith.constant 3 : index
    %c0_21 = arith.constant 0 : index
    %c0_22 = arith.constant 0 : index
    %30 = vector.load %arg5[%c3, %c0_21, %c0_22] : memref<16x10x20xbf16, #tpu.memory_space<vmem>>, vector<1x10x20xbf16>
    %31 = vector.shape_cast %30 : vector<1x10x20xbf16> to vector<10x20xbf16>
    %cst_23 = arith.constant dense<0.000000e+00> : vector<64x20xf32>
    %32 = tpu.matmul %29, %31, %cst_23 {dimension_numbers = #tpu.dot_dimension_numbers<[1], [0], [0], [1], [0, 0, 1, 1], [], []>} : vector<64x10xbf16>, vector<10x20xbf16>, vector<64x20xf32> -> vector<64x20xf32>
    %33 = arith.addf %28, %32 : vector<64x20xf32>
    %34 = vector.extract_strided_slice %12 {offsets = [256, 0], sizes = [64, 10], strides = [1, 1]} : vector<1024x10xbf16> to vector<64x10xbf16>
    %c4 = arith.constant 4 : index
    %c0_24 = arith.constant 0 : index
    %c0_25 = arith.constant 0 : index
    %35 = vector.load %arg5[%c4, %c0_24, %c0_25] : memref<16x10x20xbf16, #tpu.memory_space<vmem>>, vector<1x10x20xbf16>
    %36 = vector.shape_cast %35 : vector<1x10x20xbf16> to vector<10x20xbf16>
    %cst_26 = arith.constant dense<0.000000e+00> : vector<64x20xf32>
    %37 = tpu.matmul %34, %36, %cst_26 {dimension_numbers = #tpu.dot_dimension_numbers<[1], [0], [0], [1], [0, 0, 1, 1], [], []>} : vector<64x10xbf16>, vector<10x20xbf16>, vector<64x20xf32> -> vector<64x20xf32>
    %38 = arith.addf %33, %37 : vector<64x20xf32>
    %39 = vector.extract_strided_slice %12 {offsets = [320, 0], sizes = [64, 10], strides = [1, 1]} : vector<1024x10xbf16> to vector<64x10xbf16>
    %c5 = arith.constant 5 : index
    %c0_27 = arith.constant 0 : index
    %c0_28 = arith.constant 0 : index
    %40 = vector.load %arg5[%c5, %c0_27, %c0_28] : memref<16x10x20xbf16, #tpu.memory_space<vmem>>, vector<1x10x20xbf16>
    %41 = vector.shape_cast %40 : vector<1x10x20xbf16> to vector<10x20xbf16>
    %cst_29 = arith.constant dense<0.000000e+00> : vector<64x20xf32>
    %42 = tpu.matmul %39, %41, %cst_29 {dimension_numbers = #tpu.dot_dimension_numbers<[1], [0], [0], [1], [0, 0, 1, 1], [], []>} : vector<64x10xbf16>, vector<10x20xbf16>, vector<64x20xf32> -> vector<64x20xf32>
    %43 = arith.addf %38, %42 : vector<64x20xf32>
    %44 = vector.extract_strided_slice %12 {offsets = [384, 0], sizes = [64, 10], strides = [1, 1]} : vector<1024x10xbf16> to vector<64x10xbf16>
    %c6 = arith.constant 6 : index
    %c0_30 = arith.constant 0 : index
    %c0_31 = arith.constant 0 : index
    %45 = vector.load %arg5[%c6, %c0_30, %c0_31] : memref<16x10x20xbf16, #tpu.memory_space<vmem>>, vector<1x10x20xbf16>
    %46 = vector.shape_cast %45 : vector<1x10x20xbf16> to vector<10x20xbf16>
    %cst_32 = arith.constant dense<0.000000e+00> : vector<64x20xf32>
    %47 = tpu.matmul %44, %46, %cst_32 {dimension_numbers = #tpu.dot_dimension_numbers<[1], [0], [0], [1], [0, 0, 1, 1], [], []>} : vector<64x10xbf16>, vector<10x20xbf16>, vector<64x20xf32> -> vector<64x20xf32>
    %48 = arith.addf %43, %47 : vector<64x20xf32>
    %49 = vector.extract_strided_slice %12 {offsets = [448, 0], sizes = [64, 10], strides = [1, 1]} : vector<1024x10xbf16> to vector<64x10xbf16>
    %c7 = arith.constant 7 : index
    %c0_33 = arith.constant 0 : index
    %c0_34 = arith.constant 0 : index
    %50 = vector.load %arg5[%c7, %c0_33, %c0_34] : memref<16x10x20xbf16, #tpu.memory_space<vmem>>, vector<1x10x20xbf16>
    %51 = vector.shape_cast %50 : vector<1x10x20xbf16> to vector<10x20xbf16>
    %cst_35 = arith.constant dense<0.000000e+00> : vector<64x20xf32>
    %52 = tpu.matmul %49, %51, %cst_35 {dimension_numbers = #tpu.dot_dimension_numbers<[1], [0], [0], [1], [0, 0, 1, 1], [], []>} : vector<64x10xbf16>, vector<10x20xbf16>, vector<64x20xf32> -> vector<64x20xf32>
    %53 = arith.addf %48, %52 : vector<64x20xf32>
    %54 = vector.extract_strided_slice %12 {offsets = [512, 0], sizes = [64, 10], strides = [1, 1]} : vector<1024x10xbf16> to vector<64x10xbf16>
    %c8 = arith.constant 8 : index
    %c0_36 = arith.constant 0 : index
    %c0_37 = arith.constant 0 : index
    %55 = vector.load %arg5[%c8, %c0_36, %c0_37] : memref<16x10x20xbf16, #tpu.memory_space<vmem>>, vector<1x10x20xbf16>
    %56 = vector.shape_cast %55 : vector<1x10x20xbf16> to vector<10x20xbf16>
    %cst_38 = arith.constant dense<0.000000e+00> : vector<64x20xf32>
    %57 = tpu.matmul %54, %56, %cst_38 {dimension_numbers = #tpu.dot_dimension_numbers<[1], [0], [0], [1], [0, 0, 1, 1], [], []>} : vector<64x10xbf16>, vector<10x20xbf16>, vector<64x20xf32> -> vector<64x20xf32>
    %58 = arith.addf %53, %57 : vector<64x20xf32>
    %59 = vector.extract_strided_slice %12 {offsets = [576, 0], sizes = [64, 10], strides = [1, 1]} : vector<1024x10xbf16> to vector<64x10xbf16>
    %c9 = arith.constant 9 : index
    %c0_39 = arith.constant 0 : index
    %c0_40 = arith.constant 0 : index
    %60 = vector.load %arg5[%c9, %c0_39, %c0_40] : memref<16x10x20xbf16, #tpu.memory_space<vmem>>, vector<1x10x20xbf16>
    %61 = vector.shape_cast %60 : vector<1x10x20xbf16> to vector<10x20xbf16>
    %cst_41 = arith.constant dense<0.000000e+00> : vector<64x20xf32>
    %62 = tpu.matmul %59, %61, %cst_41 {dimension_numbers = #tpu.dot_dimension_numbers<[1], [0], [0], [1], [0, 0, 1, 1], [], []>} : vector<64x10xbf16>, vector<10x20xbf16>, vector<64x20xf32> -> vector<64x20xf32>
    %63 = arith.addf %58, %62 : vector<64x20xf32>
    %64 = vector.extract_strided_slice %12 {offsets = [640, 0], sizes = [64, 10], strides = [1, 1]} : vector<1024x10xbf16> to vector<64x10xbf16>
    %c10 = arith.constant 10 : index
    %c0_42 = arith.constant 0 : index
    %c0_43 = arith.constant 0 : index
    %65 = vector.load %arg5[%c10, %c0_42, %c0_43] : memref<16x10x20xbf16, #tpu.memory_space<vmem>>, vector<1x10x20xbf16>
    %66 = vector.shape_cast %65 : vector<1x10x20xbf16> to vector<10x20xbf16>
    %cst_44 = arith.constant dense<0.000000e+00> : vector<64x20xf32>
    %67 = tpu.matmul %64, %66, %cst_44 {dimension_numbers = #tpu.dot_dimension_numbers<[1], [0], [0], [1], [0, 0, 1, 1], [], []>} : vector<64x10xbf16>, vector<10x20xbf16>, vector<64x20xf32> -> vector<64x20xf32>
    %68 = arith.addf %63, %67 : vector<64x20xf32>
    %69 = vector.extract_strided_slice %12 {offsets = [704, 0], sizes = [64, 10], strides = [1, 1]} : vector<1024x10xbf16> to vector<64x10xbf16>
    %c11 = arith.constant 11 : index
    %c0_45 = arith.constant 0 : index
    %c0_46 = arith.constant 0 : index
    %70 = vector.load %arg5[%c11, %c0_45, %c0_46] : memref<16x10x20xbf16, #tpu.memory_space<vmem>>, vector<1x10x20xbf16>
    %71 = vector.shape_cast %70 : vector<1x10x20xbf16> to vector<10x20xbf16>
    %cst_47 = arith.constant dense<0.000000e+00> : vector<64x20xf32>
    %72 = tpu.matmul %69, %71, %cst_47 {dimension_numbers = #tpu.dot_dimension_numbers<[1], [0], [0], [1], [0, 0, 1, 1], [], []>} : vector<64x10xbf16>, vector<10x20xbf16>, vector<64x20xf32> -> vector<64x20xf32>
    %73 = arith.addf %68, %72 : vector<64x20xf32>
    %74 = vector.extract_strided_slice %12 {offsets = [768, 0], sizes = [64, 10], strides = [1, 1]} : vector<1024x10xbf16> to vector<64x10xbf16>
    %c12 = arith.constant 12 : index
    %c0_48 = arith.constant 0 : index
    %c0_49 = arith.constant 0 : index
    %75 = vector.load %arg5[%c12, %c0_48, %c0_49] : memref<16x10x20xbf16, #tpu.memory_space<vmem>>, vector<1x10x20xbf16>
    %76 = vector.shape_cast %75 : vector<1x10x20xbf16> to vector<10x20xbf16>
    %cst_50 = arith.constant dense<0.000000e+00> : vector<64x20xf32>
    %77 = tpu.matmul %74, %76, %cst_50 {dimension_numbers = #tpu.dot_dimension_numbers<[1], [0], [0], [1], [0, 0, 1, 1], [], []>} : vector<64x10xbf16>, vector<10x20xbf16>, vector<64x20xf32> -> vector<64x20xf32>
    %78 = arith.addf %73, %77 : vector<64x20xf32>
    %79 = vector.extract_strided_slice %12 {offsets = [832, 0], sizes = [64, 10], strides = [1, 1]} : vector<1024x10xbf16> to vector<64x10xbf16>
    %c13 = arith.constant 13 : index
    %c0_51 = arith.constant 0 : index
    %c0_52 = arith.constant 0 : index
    %80 = vector.load %arg5[%c13, %c0_51, %c0_52] : memref<16x10x20xbf16, #tpu.memory_space<vmem>>, vector<1x10x20xbf16>
    %81 = vector.shape_cast %80 : vector<1x10x20xbf16> to vector<10x20xbf16>
    %cst_53 = arith.constant dense<0.000000e+00> : vector<64x20xf32>
    %82 = tpu.matmul %79, %81, %cst_53 {dimension_numbers = #tpu.dot_dimension_numbers<[1], [0], [0], [1], [0, 0, 1, 1], [], []>} : vector<64x10xbf16>, vector<10x20xbf16>, vector<64x20xf32> -> vector<64x20xf32>
    %83 = arith.addf %78, %82 : vector<64x20xf32>
    %84 = vector.extract_strided_slice %12 {offsets = [896, 0], sizes = [64, 10], strides = [1, 1]} : vector<1024x10xbf16> to vector<64x10xbf16>
    %c14 = arith.constant 14 : index
    %c0_54 = arith.constant 0 : index
    %c0_55 = arith.constant 0 : index
    %85 = vector.load %arg5[%c14, %c0_54, %c0_55] : memref<16x10x20xbf16, #tpu.memory_space<vmem>>, vector<1x10x20xbf16>
    %86 = vector.shape_cast %85 : vector<1x10x20xbf16> to vector<10x20xbf16>
    %cst_56 = arith.constant dense<0.000000e+00> : vector<64x20xf32>
    %87 = tpu.matmul %84, %86, %cst_56 {dimension_numbers = #tpu.dot_dimension_numbers<[1], [0], [0], [1], [0, 0, 1, 1], [], []>} : vector<64x10xbf16>, vector<10x20xbf16>, vector<64x20xf32> -> vector<64x20xf32>
    %88 = arith.addf %83, %87 : vector<64x20xf32>
    %89 = vector.extract_strided_slice %12 {offsets = [960, 0], sizes = [64, 10], strides = [1, 1]} : vector<1024x10xbf16> to vector<64x10xbf16>
    %c15 = arith.constant 15 : index
    %c0_57 = arith.constant 0 : index
    %c0_58 = arith.constant 0 : index
    %90 = vector.load %arg5[%c15, %c0_57, %c0_58] : memref<16x10x20xbf16, #tpu.memory_space<vmem>>, vector<1x10x20xbf16>
    %91 = vector.shape_cast %90 : vector<1x10x20xbf16> to vector<10x20xbf16>
    %cst_59 = arith.constant dense<0.000000e+00> : vector<64x20xf32>
    %92 = tpu.matmul %89, %91, %cst_59 {dimension_numbers = #tpu.dot_dimension_numbers<[1], [0], [0], [1], [0, 0, 1, 1], [], []>} : vector<64x10xbf16>, vector<10x20xbf16>, vector<64x20xf32> -> vector<64x20xf32>
    %93 = arith.addf %88, %92 : vector<64x20xf32>
    %c0_60 = arith.constant 0 : index
    %c0_61 = arith.constant 0 : index
    %94 = vector.load %arg6[%c0_60, %c0_61] : memref<1x20xf32, #tpu.memory_space<vmem>>, vector<1x20xf32>
    %95 = vector.broadcast %94 : vector<1x20xf32> to vector<64x20xf32>
    %96 = arith.addf %93, %95 : vector<64x20xf32>
    %cst_62 = arith.constant 0.000000e+00 : f32
    %97 = vector.broadcast %cst_62 : f32 to vector<64x20xf32>
    %98 = arith.maximumf %96, %97 : vector<64x20xf32>
    %cst_63 = arith.constant 0.000000e+00 : f32
    %99 = vector.broadcast %cst_63 : f32 to vector<64x128xf32>
    %100 = vector.extract_strided_slice %98 {offsets = [0, 0], sizes = [64, 1], strides = [1, 1]} : vector<64x20xf32> to vector<64x1xf32>
    %c0_64 = arith.constant 0 : index
    %c0_65 = arith.constant 0 : index
    %c0_66 = arith.constant 0 : index
    %101 = vector.load %arg7[%c0_64, %c0_65, %c0_66] : memref<20x64x128xf32, #tpu.memory_space<vmem>>, vector<1x64x128xf32>
    %102 = vector.shape_cast %101 : vector<1x64x128xf32> to vector<64x128xf32>
    %103 = vector.broadcast %100 : vector<64x1xf32> to vector<64x128xf32>
    %104 = arith.mulf %103, %102 : vector<64x128xf32>
    %105 = arith.addf %99, %104 : vector<64x128xf32>
    %106 = vector.extract_strided_slice %98 {offsets = [0, 1], sizes = [64, 1], strides = [1, 1]} : vector<64x20xf32> to vector<64x1xf32>
    %c1_67 = arith.constant 1 : index
    %c0_68 = arith.constant 0 : index
    %c0_69 = arith.constant 0 : index
    %107 = vector.load %arg7[%c1_67, %c0_68, %c0_69] : memref<20x64x128xf32, #tpu.memory_space<vmem>>, vector<1x64x128xf32>
    %108 = vector.shape_cast %107 : vector<1x64x128xf32> to vector<64x128xf32>
    %109 = vector.broadcast %106 : vector<64x1xf32> to vector<64x128xf32>
    %110 = arith.mulf %109, %108 : vector<64x128xf32>
    %111 = arith.addf %105, %110 : vector<64x128xf32>
    %112 = vector.extract_strided_slice %98 {offsets = [0, 2], sizes = [64, 1], strides = [1, 1]} : vector<64x20xf32> to vector<64x1xf32>
    %c2_70 = arith.constant 2 : index
    %c0_71 = arith.constant 0 : index
    %c0_72 = arith.constant 0 : index
    %113 = vector.load %arg7[%c2_70, %c0_71, %c0_72] : memref<20x64x128xf32, #tpu.memory_space<vmem>>, vector<1x64x128xf32>
    %114 = vector.shape_cast %113 : vector<1x64x128xf32> to vector<64x128xf32>
    %115 = vector.broadcast %112 : vector<64x1xf32> to vector<64x128xf32>
    %116 = arith.mulf %115, %114 : vector<64x128xf32>
    %117 = arith.addf %111, %116 : vector<64x128xf32>
    %118 = vector.extract_strided_slice %98 {offsets = [0, 3], sizes = [64, 1], strides = [1, 1]} : vector<64x20xf32> to vector<64x1xf32>
    %c3_73 = arith.constant 3 : index
    %c0_74 = arith.constant 0 : index
    %c0_75 = arith.constant 0 : index
    %119 = vector.load %arg7[%c3_73, %c0_74, %c0_75] : memref<20x64x128xf32, #tpu.memory_space<vmem>>, vector<1x64x128xf32>
    %120 = vector.shape_cast %119 : vector<1x64x128xf32> to vector<64x128xf32>
    %121 = vector.broadcast %118 : vector<64x1xf32> to vector<64x128xf32>
    %122 = arith.mulf %121, %120 : vector<64x128xf32>
    %123 = arith.addf %117, %122 : vector<64x128xf32>
    %124 = vector.extract_strided_slice %98 {offsets = [0, 4], sizes = [64, 1], strides = [1, 1]} : vector<64x20xf32> to vector<64x1xf32>
    %c4_76 = arith.constant 4 : index
    %c0_77 = arith.constant 0 : index
    %c0_78 = arith.constant 0 : index
    %125 = vector.load %arg7[%c4_76, %c0_77, %c0_78] : memref<20x64x128xf32, #tpu.memory_space<vmem>>, vector<1x64x128xf32>
    %126 = vector.shape_cast %125 : vector<1x64x128xf32> to vector<64x128xf32>
    %127 = vector.broadcast %124 : vector<64x1xf32> to vector<64x128xf32>
    %128 = arith.mulf %127, %126 : vector<64x128xf32>
    %129 = arith.addf %123, %128 : vector<64x128xf32>
    %130 = vector.extract_strided_slice %98 {offsets = [0, 5], sizes = [64, 1], strides = [1, 1]} : vector<64x20xf32> to vector<64x1xf32>
    %c5_79 = arith.constant 5 : index
    %c0_80 = arith.constant 0 : index
    %c0_81 = arith.constant 0 : index
    %131 = vector.load %arg7[%c5_79, %c0_80, %c0_81] : memref<20x64x128xf32, #tpu.memory_space<vmem>>, vector<1x64x128xf32>
    %132 = vector.shape_cast %131 : vector<1x64x128xf32> to vector<64x128xf32>
    %133 = vector.broadcast %130 : vector<64x1xf32> to vector<64x128xf32>
    %134 = arith.mulf %133, %132 : vector<64x128xf32>
    %135 = arith.addf %129, %134 : vector<64x128xf32>
    %136 = vector.extract_strided_slice %98 {offsets = [0, 6], sizes = [64, 1], strides = [1, 1]} : vector<64x20xf32> to vector<64x1xf32>
    %c6_82 = arith.constant 6 : index
    %c0_83 = arith.constant 0 : index
    %c0_84 = arith.constant 0 : index
    %137 = vector.load %arg7[%c6_82, %c0_83, %c0_84] : memref<20x64x128xf32, #tpu.memory_space<vmem>>, vector<1x64x128xf32>
    %138 = vector.shape_cast %137 : vector<1x64x128xf32> to vector<64x128xf32>
    %139 = vector.broadcast %136 : vector<64x1xf32> to vector<64x128xf32>
    %140 = arith.mulf %139, %138 : vector<64x128xf32>
    %141 = arith.addf %135, %140 : vector<64x128xf32>
    %142 = vector.extract_strided_slice %98 {offsets = [0, 7], sizes = [64, 1], strides = [1, 1]} : vector<64x20xf32> to vector<64x1xf32>
    %c7_85 = arith.constant 7 : index
    %c0_86 = arith.constant 0 : index
    %c0_87 = arith.constant 0 : index
    %143 = vector.load %arg7[%c7_85, %c0_86, %c0_87] : memref<20x64x128xf32, #tpu.memory_space<vmem>>, vector<1x64x128xf32>
    %144 = vector.shape_cast %143 : vector<1x64x128xf32> to vector<64x128xf32>
    %145 = vector.broadcast %142 : vector<64x1xf32> to vector<64x128xf32>
    %146 = arith.mulf %145, %144 : vector<64x128xf32>
    %147 = arith.addf %141, %146 : vector<64x128xf32>
    %148 = vector.extract_strided_slice %98 {offsets = [0, 8], sizes = [64, 1], strides = [1, 1]} : vector<64x20xf32> to vector<64x1xf32>
    %c8_88 = arith.constant 8 : index
    %c0_89 = arith.constant 0 : index
    %c0_90 = arith.constant 0 : index
    %149 = vector.load %arg7[%c8_88, %c0_89, %c0_90] : memref<20x64x128xf32, #tpu.memory_space<vmem>>, vector<1x64x128xf32>
    %150 = vector.shape_cast %149 : vector<1x64x128xf32> to vector<64x128xf32>
    %151 = vector.broadcast %148 : vector<64x1xf32> to vector<64x128xf32>
    %152 = arith.mulf %151, %150 : vector<64x128xf32>
    %153 = arith.addf %147, %152 : vector<64x128xf32>
    %154 = vector.extract_strided_slice %98 {offsets = [0, 9], sizes = [64, 1], strides = [1, 1]} : vector<64x20xf32> to vector<64x1xf32>
    %c9_91 = arith.constant 9 : index
    %c0_92 = arith.constant 0 : index
    %c0_93 = arith.constant 0 : index
    %155 = vector.load %arg7[%c9_91, %c0_92, %c0_93] : memref<20x64x128xf32, #tpu.memory_space<vmem>>, vector<1x64x128xf32>
    %156 = vector.shape_cast %155 : vector<1x64x128xf32> to vector<64x128xf32>
    %157 = vector.broadcast %154 : vector<64x1xf32> to vector<64x128xf32>
    %158 = arith.mulf %157, %156 : vector<64x128xf32>
    %159 = arith.addf %153, %158 : vector<64x128xf32>
    %160 = vector.extract_strided_slice %98 {offsets = [0, 10], sizes = [64, 1], strides = [1, 1]} : vector<64x20xf32> to vector<64x1xf32>
    %c10_94 = arith.constant 10 : index
    %c0_95 = arith.constant 0 : index
    %c0_96 = arith.constant 0 : index
    %161 = vector.load %arg7[%c10_94, %c0_95, %c0_96] : memref<20x64x128xf32, #tpu.memory_space<vmem>>, vector<1x64x128xf32>
    %162 = vector.shape_cast %161 : vector<1x64x128xf32> to vector<64x128xf32>
    %163 = vector.broadcast %160 : vector<64x1xf32> to vector<64x128xf32>
    %164 = arith.mulf %163, %162 : vector<64x128xf32>
    %165 = arith.addf %159, %164 : vector<64x128xf32>
    %166 = vector.extract_strided_slice %98 {offsets = [0, 11], sizes = [64, 1], strides = [1, 1]} : vector<64x20xf32> to vector<64x1xf32>
    %c11_97 = arith.constant 11 : index
    %c0_98 = arith.constant 0 : index
    %c0_99 = arith.constant 0 : index
    %167 = vector.load %arg7[%c11_97, %c0_98, %c0_99] : memref<20x64x128xf32, #tpu.memory_space<vmem>>, vector<1x64x128xf32>
    %168 = vector.shape_cast %167 : vector<1x64x128xf32> to vector<64x128xf32>
    %169 = vector.broadcast %166 : vector<64x1xf32> to vector<64x128xf32>
    %170 = arith.mulf %169, %168 : vector<64x128xf32>
    %171 = arith.addf %165, %170 : vector<64x128xf32>
    %172 = vector.extract_strided_slice %98 {offsets = [0, 12], sizes = [64, 1], strides = [1, 1]} : vector<64x20xf32> to vector<64x1xf32>
    %c12_100 = arith.constant 12 : index
    %c0_101 = arith.constant 0 : index
    %c0_102 = arith.constant 0 : index
    %173 = vector.load %arg7[%c12_100, %c0_101, %c0_102] : memref<20x64x128xf32, #tpu.memory_space<vmem>>, vector<1x64x128xf32>
    %174 = vector.shape_cast %173 : vector<1x64x128xf32> to vector<64x128xf32>
    %175 = vector.broadcast %172 : vector<64x1xf32> to vector<64x128xf32>
    %176 = arith.mulf %175, %174 : vector<64x128xf32>
    %177 = arith.addf %171, %176 : vector<64x128xf32>
    %178 = vector.extract_strided_slice %98 {offsets = [0, 13], sizes = [64, 1], strides = [1, 1]} : vector<64x20xf32> to vector<64x1xf32>
    %c13_103 = arith.constant 13 : index
    %c0_104 = arith.constant 0 : index
    %c0_105 = arith.constant 0 : index
    %179 = vector.load %arg7[%c13_103, %c0_104, %c0_105] : memref<20x64x128xf32, #tpu.memory_space<vmem>>, vector<1x64x128xf32>
    %180 = vector.shape_cast %179 : vector<1x64x128xf32> to vector<64x128xf32>
    %181 = vector.broadcast %178 : vector<64x1xf32> to vector<64x128xf32>
    %182 = arith.mulf %181, %180 : vector<64x128xf32>
    %183 = arith.addf %177, %182 : vector<64x128xf32>
    %184 = vector.extract_strided_slice %98 {offsets = [0, 14], sizes = [64, 1], strides = [1, 1]} : vector<64x20xf32> to vector<64x1xf32>
    %c14_106 = arith.constant 14 : index
    %c0_107 = arith.constant 0 : index
    %c0_108 = arith.constant 0 : index
    %185 = vector.load %arg7[%c14_106, %c0_107, %c0_108] : memref<20x64x128xf32, #tpu.memory_space<vmem>>, vector<1x64x128xf32>
    %186 = vector.shape_cast %185 : vector<1x64x128xf32> to vector<64x128xf32>
    %187 = vector.broadcast %184 : vector<64x1xf32> to vector<64x128xf32>
    %188 = arith.mulf %187, %186 : vector<64x128xf32>
    %189 = arith.addf %183, %188 : vector<64x128xf32>
    %190 = vector.extract_strided_slice %98 {offsets = [0, 15], sizes = [64, 1], strides = [1, 1]} : vector<64x20xf32> to vector<64x1xf32>
    %c15_109 = arith.constant 15 : index
    %c0_110 = arith.constant 0 : index
    %c0_111 = arith.constant 0 : index
    %191 = vector.load %arg7[%c15_109, %c0_110, %c0_111] : memref<20x64x128xf32, #tpu.memory_space<vmem>>, vector<1x64x128xf32>
    %192 = vector.shape_cast %191 : vector<1x64x128xf32> to vector<64x128xf32>
    %193 = vector.broadcast %190 : vector<64x1xf32> to vector<64x128xf32>
    %194 = arith.mulf %193, %192 : vector<64x128xf32>
    %195 = arith.addf %189, %194 : vector<64x128xf32>
    %196 = vector.extract_strided_slice %98 {offsets = [0, 16], sizes = [64, 1], strides = [1, 1]} : vector<64x20xf32> to vector<64x1xf32>
    %c16 = arith.constant 16 : index
    %c0_112 = arith.constant 0 : index
    %c0_113 = arith.constant 0 : index
    %197 = vector.load %arg7[%c16, %c0_112, %c0_113] : memref<20x64x128xf32, #tpu.memory_space<vmem>>, vector<1x64x128xf32>
    %198 = vector.shape_cast %197 : vector<1x64x128xf32> to vector<64x128xf32>
    %199 = vector.broadcast %196 : vector<64x1xf32> to vector<64x128xf32>
    %200 = arith.mulf %199, %198 : vector<64x128xf32>
    %201 = arith.addf %195, %200 : vector<64x128xf32>
    %202 = vector.extract_strided_slice %98 {offsets = [0, 17], sizes = [64, 1], strides = [1, 1]} : vector<64x20xf32> to vector<64x1xf32>
    %c17 = arith.constant 17 : index
    %c0_114 = arith.constant 0 : index
    %c0_115 = arith.constant 0 : index
    %203 = vector.load %arg7[%c17, %c0_114, %c0_115] : memref<20x64x128xf32, #tpu.memory_space<vmem>>, vector<1x64x128xf32>
    %204 = vector.shape_cast %203 : vector<1x64x128xf32> to vector<64x128xf32>
    %205 = vector.broadcast %202 : vector<64x1xf32> to vector<64x128xf32>
    %206 = arith.mulf %205, %204 : vector<64x128xf32>
    %207 = arith.addf %201, %206 : vector<64x128xf32>
    %208 = vector.extract_strided_slice %98 {offsets = [0, 18], sizes = [64, 1], strides = [1, 1]} : vector<64x20xf32> to vector<64x1xf32>
    %c18 = arith.constant 18 : index
    %c0_116 = arith.constant 0 : index
    %c0_117 = arith.constant 0 : index
    %209 = vector.load %arg7[%c18, %c0_116, %c0_117] : memref<20x64x128xf32, #tpu.memory_space<vmem>>, vector<1x64x128xf32>
    %210 = vector.shape_cast %209 : vector<1x64x128xf32> to vector<64x128xf32>
    %211 = vector.broadcast %208 : vector<64x1xf32> to vector<64x128xf32>
    %212 = arith.mulf %211, %210 : vector<64x128xf32>
    %213 = arith.addf %207, %212 : vector<64x128xf32>
    %214 = vector.extract_strided_slice %98 {offsets = [0, 19], sizes = [64, 1], strides = [1, 1]} : vector<64x20xf32> to vector<64x1xf32>
    %c19 = arith.constant 19 : index
    %c0_118 = arith.constant 0 : index
    %c0_119 = arith.constant 0 : index
    %215 = vector.load %arg7[%c19, %c0_118, %c0_119] : memref<20x64x128xf32, #tpu.memory_space<vmem>>, vector<1x64x128xf32>
    %216 = vector.shape_cast %215 : vector<1x64x128xf32> to vector<64x128xf32>
    %217 = vector.broadcast %214 : vector<64x1xf32> to vector<64x128xf32>
    %218 = arith.mulf %217, %216 : vector<64x128xf32>
    %219 = arith.addf %213, %218 : vector<64x128xf32>
    %cst_120 = arith.constant dense<0.000000e+00> : vector<128xf32>
    %220 = vector.multi_reduction <add>, %219, %cst_120 [0] : vector<64x128xf32> to vector<128xf32>
    %221 = vector.shape_cast %220 : vector<128xf32> to vector<1x128xf32>
    %c0_121 = arith.constant 0 : index
    %c0_122 = arith.constant 0 : index
    %222 = vector.load %arg8[%c0_121, %c0_122] : memref<1x128xf32, #tpu.memory_space<vmem>>, vector<1x128xf32>
    %223 = arith.addf %221, %222 : vector<1x128xf32>
    %cst_123 = arith.constant 0.000000e+00 : f32
    %224 = vector.broadcast %cst_123 : f32 to vector<1x128xf32>
    %225 = arith.maximumf %223, %224 : vector<1x128xf32>
    %226 = arith.truncf %225 : vector<1x128xf32> to vector<1x128xbf16>
    %c0_124 = arith.constant 0 : index
    %c0_125 = arith.constant 0 : index
    %227 = vector.load %arg9[%c0_124, %c0_125] : memref<128x128xbf16, #tpu.memory_space<vmem>>, vector<128x128xbf16>
    %cst_126 = arith.constant dense<0.000000e+00> : vector<1x128xf32>
    %228 = tpu.matmul %226, %227, %cst_126 {dimension_numbers = #tpu.dot_dimension_numbers<[1], [0], [0], [1], [0, 0, 1, 1], [], []>} : vector<1x128xbf16>, vector<128x128xbf16>, vector<1x128xf32> -> vector<1x128xf32>
    %c0_127 = arith.constant 0 : index
    %c0_128 = arith.constant 0 : index
    %229 = vector.load %arg10[%c0_127, %c0_128] : memref<1x128xf32, #tpu.memory_space<vmem>>, vector<1x128xf32>
    %230 = arith.addf %228, %229 : vector<1x128xf32>
    %c0_129 = arith.constant 0 : index
    %c0_130 = arith.constant 0 : index
    %c0_131 = arith.constant 0 : index
    %231 = vector.load %arg11[%c0_129, %c0_130, %c0_131] : memref<1x1x128xf32, #tpu.memory_space<vmem>>, vector<1x1x128xf32>
    %232 = vector.shape_cast %231 : vector<1x1x128xf32> to vector<1x128xf32>
    %233 = vector.shape_cast %230 : vector<1x128xf32> to vector<1x1x128xf32>
    tpu.vector_store %arg11[%c0_129, %c0_130, %c0_131], %233 {strides = array<i32>} : memref<1x1x128xf32, #tpu.memory_space<vmem>>, vector<1x1x128xf32>,
    return
  }
  func.func @transform_0(%arg0: i32) -> (i32, i32, i32) {
    %c0_i32 = arith.constant 0 : i32
    %c0_i32_0 = arith.constant 0 : i32
    %c0_i32_1 = arith.constant 0 : i32
    return %arg0, %c0_i32, %c0_i32_0 : i32, i32, i32
  }
  func.func @transform_1(%arg0: i32) -> (i32, i32) {
    %c0_i32 = arith.constant 0 : i32
    %c0_i32_0 = arith.constant 0 : i32
    %c0_i32_1 = arith.constant 0 : i32
    return %c0_i32, %c0_i32_0 : i32, i32
  }
  func.func @transform_2(%arg0: i32) -> (i32, i32) {
    %c0_i32 = arith.constant 0 : i32
    %c0_i32_0 = arith.constant 0 : i32
    %c0_i32_1 = arith.constant 0 : i32
    return %c0_i32, %c0_i32_0 : i32, i32
  }
  func.func @transform_3(%arg0: i32) -> (i32, i32) {
    %c0_i32 = arith.constant 0 : i32
    %c0_i32_0 = arith.constant 0 : i32
    %c0_i32_1 = arith.constant 0 : i32
    return %c0_i32, %c0_i32_0 : i32, i32
  }
  func.func @transform_4(%arg0: i32) -> (i32, i32, i32) {
    %c0_i32 = arith.constant 0 : i32
    %c0_i32_0 = arith.constant 0 : i32
    %c0_i32_1 = arith.constant 0 : i32
    %c0_i32_2 = arith.constant 0 : i32
    return %c0_i32, %c0_i32_0, %c0_i32_1 : i32, i32, i32
  }
  func.func @transform_5(%arg0: i32) -> (i32, i32) {
    %c0_i32 = arith.constant 0 : i32
    %c0_i32_0 = arith.constant 0 : i32
    %c0_i32_1 = arith.constant 0 : i32
    return %c0_i32, %c0_i32_0 : i32, i32
  }
  func.func @transform_6(%arg0: i32) -> (i32, i32, i32) {
    %c0_i32 = arith.constant 0 : i32
    %c0_i32_0 = arith.constant 0 : i32
    %c0_i32_1 = arith.constant 0 : i32
    %c0_i32_2 = arith.constant 0 : i32
    return %c0_i32, %c0_i32_0, %c0_i32_1 : i32, i32, i32
  }
  func.func @transform_7(%arg0: i32) -> (i32, i32) {
    %c0_i32 = arith.constant 0 : i32
    %c0_i32_0 = arith.constant 0 : i32
    %c0_i32_1 = arith.constant 0 : i32
    return %c0_i32, %c0_i32_0 : i32, i32
  }
  func.func @transform_8(%arg0: i32) -> (i32, i32) {
    %c0_i32 = arith.constant 0 : i32
    %c0_i32_0 = arith.constant 0 : i32
    %c0_i32_1 = arith.constant 0 : i32
    return %c0_i32, %c0_i32_0 : i32, i32
  }
  func.func @transform_9(%arg0: i32) -> (i32, i32) {
    %c0_i32 = arith.constant 0 : i32
    %c0_i32_0 = arith.constant 0 : i32
    %c0_i32_1 = arith.constant 0 : i32
    return %c0_i32, %c0_i32_0 : i32, i32
  }
  func.func @transform_10(%arg0: i32) -> (i32, i32, i32) {
    %c0_i32 = arith.constant 0 : i32
    %c0_i32_0 = arith.constant 0 : i32
    %c0_i32_1 = arith.constant 0 : i32
    return %arg0, %c0_i32, %c0_i32_0 : i32, i32, i32
  }
}

</mosaic_0001>

<bundles_post_ra>
// kernel: image_classifier_forward.1
= control target key start
LH: loop header
LB: loop body
LE: loop exit
PB: predicated region body
PF: predicated region fallthrough
CT: control target
= control target key end

     0   :  { %15 = vsyncpa [#allocation3], 0  ;;  %s8725_s0 = inlined_call_operand.vmem [shape: bf16[2,196,128], index: 0, kind: input, shape index: {}]   ;;  %s8726_s1 = inlined_call_operand.vmem [shape: bf16[128,10], index: 1, kind: input, shape index: {}]   ;;  %s8727_s2 = inlined_call_operand.vmem [shape: f32[1,10], index: 2, kind: input, shape index: {}]   ;;  %s8728_s3 = inlined_call_operand.vmem [shape: bf16[1024,196], index: 3, kind: input, shape index: {}]   ;;  %s8729_s4 = inlined_call_operand.vmem [shape: bf16[16,10,20], index: 4, kind: input, shape index: {}]   ;;  %s8730_s5 = inlined_call_operand.vmem [shape: f32[1,20], index: 5, kind: input, shape index: {}]   ;;  %s8731_s6 = inlined_call_operand.vmem [shape: f32[20,64,128], index: 6, kind: input, shape index: {}]   ;;  %s8732_s7 = inlined_call_operand.vmem [shape: f32[1,128], index: 7, kind: input, shape index: {}]   ;;  %s8733_s8 = inlined_call_operand.vmem [shape: bf16[128,128], index: 8, kind: input, shape index: {}]   ;;  %s8734_s9 = inlined_call_operand.vmem [shape: f32[1,128], index: 9, kind: input, shape index: {}]   ;;  %s8735_s10 = inlined_call_operand.hbm [shape: f32[2,1,128], index: 10, kind: output, shape index: {}]  }
   0x1   :  { %17 = vsyncpa [#allocation3 + $0x1], 0  ;;  %s6709_s13 = smov 0   ;;  %s6711_s14 = smov 0  }
   0x2   :  { %s6713_s15 = smov 0   ;;  %s6715_s16 = smov 0  }
   0x3 LB: > { %s6730_s17 = sadd.s32 4294967295, %s6629_s16   ;;  %s5096_s18 = sadd.s32 4294967294, %s6629_s16   ;;  %s6629_s16 = sphi %s6715_s16, %s8807_s16   ;;  %s6625_s15 = sphi %s6713_s15, %s8806_s15   ;;  %s6621_s14 = sphi %s6711_s14, %s8805_s14   ;;  %s6617_s13 = sphi %s6709_s13, %s8804_s13  }
   0x4   : > { %s6734_s19 = sadd.s32 1, %s6629_s16   ;;  %s245_s20 = sadd.s32 1, %s6625_s15 }
   0x5   : > { %s242_s21 = ssub.s32 %s6629_s16, %s6734_s19  ;;  %p255_p0 = scmp.ne.s32.totalorder %s6625_s15, %s6621_s14 }
   0x6   : > { %p243_p1 = scmp.eq.s32.totalorder %s242_s21, 0  ;;  %p256_p2 = scmp.eq.s32.totalorder %s6730_s17, 1 }
   0x7   : > { %p261_p3 = scmp.ne.s32.totalorder %s6621_s14, %s6617_s13  ;;  %p262_p4 = scmp.eq.s32.totalorder %s5096_s18, 1 }
   0x8   : > { %s6745_s22 = scalar_select %p243_p1, %s6625_s15, %s245_s20  }
   0x9   : > { %p6747_p5 = por %p256_p2, %p255_p0  ;;  %p6751_p6 = por %p262_p4, %p261_p3 }
   0xa   : > { %p5099_p7 = scmp.ge.s32.totalorder %s6629_s16, 1  ;;  %p315_p8 = scmp.lt.s32.totalorder %s6629_s16, 3 }
   0xc   : > { %p316_p9 = pnand %p5099_p7, %p315_p8 }
   0xe   : > { %319 = sbr.rel (%p316_p9) target bundleno = 2082 (0x822), region = 60 }
  0x15   : > { %v6330_v0 = vld [vmem:[%s8726_s1] sm:$0xff]   ;;  %v8736_v1 = vmov 0.0   ;;  %v6331_v2 = vld [vmem:[%s8726_s1 + $0x8] sm:$0xff]   ;;  %vm6632_vm0 = vmmov 0   ;;  %p352_p10 = scmp.lt.s32.totalorder %s6730_s17, 1  ;;  %v6332_v3 = vld [vmem:[%s8726_s1 + $0x10] sm:$0xff]  }
  0x16   : > { %5699 = vmatprep.subr.bf16.mxu0 %v8736_v1  ;;  %5715 = vmatprep.mubr.msk.bf16.mxu0 %vm6632_vm0, %v8736_v1  ;;  %v6333_v4 = vld [vmem:[%s8726_s1 + $0x18] sm:$0xff]   ;;  %v6334_v5 = vld [vmem:[%s8726_s1 + $0x20] sm:$0xff]   ;;  %v6335_v6 = vld [vmem:[%s8726_s1 + $0x28] sm:$0xff]   ;;  %v8746_v21 = vmov 0   ;;  %vm1408_vm1 = vcmask 556032   ;;  %vm1601_vm2 = vcmask 1041408  }
  0x17   : > { %5700 = vmatpush3.bf16.msra.mxu0 %v6330_v0  ;;  %s353_s29 = scalar_select %p352_p10, %s6730_s17, 1  ;;  %v6336_v7 = vld [vmem:[%s8726_s1 + $0x30] sm:$0xff]   ;;  %v6337_v8 = vld [vmem:[%s8726_s1 + $0x38] sm:$0xff]   ;;  %5947 = vmatprep.subr.bf16.mxu1 %v8746_v21  ;;  %v6353_v23 = vld [vmem:[%s8728_s3 + $0x4] ss:$8 sps:$4 sm:$0xff]   ;;  %vm2237_vm3 = vcmask 1044480  }
  0x18   : > { %5701 = vmatprep.subr.bf16.mxu0 %v8736_v1  ;;  %6171 = vset.pattern.permute.xlu1 %v8746_v21  ;;  %v6356_v24 = vld [vmem:[%s8728_s3 + $0x94] ss:$8 sps:$4 sm:$0xff]   ;;  %v6849_v25 = vld [vmem:[%s8727_s2] ss:$0 sm:$0xff]  ;;  %vm2224_vm4 = vcmask 80896   ;;  %s350_s28 = sand.u32 1, %s6621_s14  }
  0x19   : > { %s6109_s12 = smul.u32 100, %s353_s29  ;;  %5260 = vmatprep.mubr.msk.bf16.mxu1 %vm1408_vm1, %v6356_v24  ;;  %s351_s11 = scalar_lea.vmem [#allocation2], %s350_s28 }
  0x1a   : > { %s5029_s26 = scalar_lea.sflag [#allocation3], %s350_s28  ;;  %s6653_s27 = smov [#allocation2]  }
  0x1b   : > { %5702 = vmatpush3.bf16.msra.mxu0 %v6331_v2  ;;  %s6776_s21 = scalar_lea.vmem %s8725_s0, %s6109_s12  ;;  %s5041_s12 = sshll.u32 %s351_s11, 4  ;;  %s8685_s12 = int_to_ptr.vmem [resolvable:$true] %s5041_s12 }
  0x1c   : > { %5703 = vmatprep.subr.bf16.mxu0 %v8736_v1  ;;  %v6338_v9 = vld [vmem:[%s6776_s21] sm:$0xff]   ;;  %v6339_v10 = vld [vmem:[%s6776_s21 + $0x8] sm:$0xff]   ;;  %v6340_v11 = vld [vmem:[%s6776_s21 + $0x10] sm:$0xff]   ;;  %s6571_s29 = sshll.u32 %s6653_s27, 4  ;;  %s6572_s29 = int_to_ptr.vmem [resolvable:$false] %s6571_s29 }
  0x1d   : > { %v6341_v12 = vld [vmem:[%s6776_s21 + $0x18] sm:$0xff]   ;;  %v6342_v13 = vld [vmem:[%s6776_s21 + $0x20] sm:$0xff]   ;;  %v6343_v14 = vld [vmem:[%s6776_s21 + $0x28] sm:$0xff]   ;;  %s6573_s30 = scalar_lea.vmem %s6572_s29, 32  ;;  %p6574_p0 = scmp.lt.s32.totalorder %s8685_s12, %s6572_s29 }
  0x1e   : > { %v6344_v15 = vld [vmem:[%s6776_s21 + $0x30] sm:$0xff]   ;;  %v6345_v16 = vld [vmem:[%s6776_s21 + $0x38] sm:$0xff]   ;;  %v6346_v17 = vld [vmem:[%s6776_s21 + $0x40] sm:$0xff]  }
  0x1f   : > { %5704 = vmatpush3.bf16.msra.mxu0 %v6332_v3  ;;  %v6347_v18 = vld [vmem:[%s6776_s21 + $0x48] sm:$0xff]   ;;  %v6348_v19 = vld [vmem:[%s6776_s21 + $0x50] sm:$0xff]   ;;  %v6349_v20 = vld [vmem:[%s6776_s21 + $0x58] sm:$0xff]  }
  0x20   : > { %5705 = vmatprep.subr.bf16.mxu0 %v8736_v1  ;;  %v6350_v22 = vld [vmem:[%s6776_s21 + $0x60] ss:$0 sps:$4 sm:$0x33]   ;;  %s5586_s21 = sshll.u32 %s6730_s17, 4  ;;  %s6567_s17 = scalar_lea.vmem %s8685_s12, 16 }
  0x21   : > { %s8683_s25 = scalar_lea.hbm %s8735_s10, %s5586_s21  ;;  %p6568_p11 = scmp.ne.s32.totalorder %s8685_s12, %s6567_s17 }
  0x22   : > { %p6575_p1 = scmp.lt.s32.totalorder %s6573_s30, %s6567_s17 }
  0x23   : > { %5706 = vmatpush3.bf16.msra.mxu0 %v6333_v4  ;;  %p6569_p12 = pnand %p6568_p11, %p6747_p5 }
  0x24   : > { %5707 = vmatprep.subr.bf16.mxu0 %v8736_v1  ;;  %p6576_p2 = por %p6575_p1, %p6574_p0 }
  0x25   : > { %p6570_p13 = pneg %p6569_p12 }
  0x27   : > { %5708 = vmatpush3.bf16.msra.mxu0 %v6334_v5  ;;  %p6577_p3 = pnand %p6576_p2, %p6570_p13 }
  0x28   : > { %5709 = vmatprep.subr.bf16.mxu0 %v8736_v1 }
  0x2b   : > { %5710 = vmatpush3.bf16.msra.mxu0 %v6335_v6 }
  0x2c   : > { %5711 = vmatprep.subr.bf16.mxu0 %v8736_v1 }
  0x2f   : > { %5712 = vmatpush3.bf16.msra.mxu0 %v6336_v7 }
  0x30   : > { %5713 = vmatprep.subr.bf16.mxu0 %v8736_v1 }
  0x33   : > { %5714 = vmatpush3.bf16.msra.mxu0 %v6337_v8 }
  0x34   : > { %1605 = vmatprep.subr.bf16.mxu0 %v8746_v21 }
  0x36   : > { %5716 = vmatmul.mubr.bf16.vlgmr.msra.gmra.mrb[0].mxu0 %v6338_v9 }
  0x37   : > { %5719 = vmatprep.mubr.msk.bf16.mxu0 %vm6632_vm0, %v8736_v1 }
  0x3e   : > { %5720 = vmatmul.mubr.bf16.gmra.mrb[4].mxu0 %v6339_v10 }
  0x3f   : > { %5723 = vmatprep.mubr.msk.bf16.mxu0 %vm6632_vm0, %v8736_v1 }
  0x46   : > { %5724 = vmatmul.mubr.bf16.gmra.mrb[8].mxu0 %v6340_v11 }
  0x47   : > { %5727 = vmatprep.mubr.msk.bf16.mxu0 %vm6632_vm0, %v8736_v1 }
  0x4e   : > { %5728 = vmatmul.mubr.bf16.gmra.mrb[12].mxu0 %v6341_v12 }
  0x4f   : > { %5731 = vmatprep.mubr.msk.bf16.mxu0 %vm6632_vm0, %v8736_v1 }
  0x56   : > { %5732 = vmatmul.mubr.bf16.gmra.mrb[16].mxu0 %v6342_v13 }
  0x57   : > { %5735 = vmatprep.mubr.msk.bf16.mxu0 %vm6632_vm0, %v8736_v1 }
  0x5e   : > { %5736 = vmatmul.mubr.bf16.gmra.mrb[20].mxu0 %v6343_v14 }
  0x5f   : > { %5739 = vmatprep.mubr.msk.bf16.mxu0 %vm6632_vm0, %v8736_v1 }
  0x66   : > { %5740 = vmatmul.mubr.bf16.gmra.mrb[24].mxu0 %v6344_v15 }
  0x67   : > { %5743 = vmatprep.mubr.msk.bf16.mxu0 %vm6632_vm0, %v8736_v1 }
  0x6e   : > { %5744 = vmatmul.mubr.bf16.gmra.mrb[28].mxu0 %v6345_v16 }
  0x6f   : > { %5747 = vmatprep.mubr.msk.bf16.mxu0 %vm6632_vm0, %v8736_v1 }
  0x76   : > { %5748 = vmatmul.mubr.bf16.gmra.mrb[32].mxu0 %v6346_v17 }
  0x77   : > { %5751 = vmatprep.mubr.msk.bf16.mxu0 %vm6632_vm0, %v8736_v1 }
  0x7e   : > { %5752 = vmatmul.mubr.bf16.gmra.mrb[36].mxu0 %v6347_v18 }
  0x7f   : > { %5755 = vmatprep.mubr.msk.bf16.mxu0 %vm6632_vm0, %v8736_v1 }
  0x86   : > { %5756 = vmatmul.mubr.bf16.gmra.mrb[40].mxu0 %v6348_v19 }
  0x87   : > { %5759 = vmatprep.mubr.msk.bf16.mxu0 %vm6632_vm0, %v8736_v1 }
  0x8e   : > { %5760 = vmatmul.mubr.bf16.gmra.mrb[44].mxu0 %v6349_v20 }
  0x8f   : > { %5763 = vmatprep.mubr.msk.bf16.mxu0 %vm6632_vm0, %v8736_v1 }
  0x96   : > { %5764 = vmatmul.mubr.bf16.gmra.mrb[48].mxu0 %v6350_v22 }
  0x97   : > { %5251 = vmatprep.mubr.msk.bf16.mxu0 %vm1408_vm1, %v6353_v23 }
 0x109   : > { %v564_v26 = vpop.f32.mrb[0].mxu0 }
 0x10a   : > { %v565_v27 = vadd.f32 %v6849_v25, %v564_v26  ;;  %v5717_v28 = vpop.f32.mrb[1].mxu0 }
 0x10b   : > { %v567_v29 = vpop.f32.mrb[2].mxu0 }
 0x10c   : > { %v568_v30 = vadd.f32 %v6849_v25, %v567_v29  ;;  %v5718_v31 = vpop.f32.mrb[3].mxu0  ;;  %v666_v32 = vmax.f32 %v565_v27, 0.0 }
 0x10e   : > { %v667_v33 = vmax.f32 %v568_v30, 0.0 }
 0x110   : > { %v691_v34 = vpack.c.bf16 %v667_v33, %v666_v32 }
 0x111   : > { %v572_v35 = vpop.f32.mrb[4].mxu0 }
 0x112   : > { %v573_v36 = vadd.f32 %v6849_v25, %v572_v35  ;;  %v5721_v37 = vpop.f32.mrb[5].mxu0  ;;  %1606 = vmatpush1.bf16.msra.mxu0 %v691_v34  ;;  %5960 = vmatpush1.bf16.msra.mxu1 %v691_v34 }
 0x113   : > { %v575_v38 = vpop.f32.mrb[6].mxu0  ;;  %1607 = vmatprep.subr.bf16.mxu0 %v8746_v21  ;;  %5948 = vmatprep.subr.bf16.mxu1 %v8746_v21 }
 0x114   : > { %v576_v39 = vadd.f32 %v6849_v25, %v575_v38  ;;  %v5722_v40 = vpop.f32.mrb[7].mxu0  ;;  %v668_v41 = vmax.f32 %v573_v36, 0.0 }
 0x116   : > { %v669_v42 = vmax.f32 %v576_v39, 0.0 }
 0x118   : > { %v692_v43 = vpack.c.bf16 %v669_v42, %v668_v41 }
 0x119   : > { %v580_v44 = vpop.f32.mrb[8].mxu0 }
 0x11a   : > { %v581_v45 = vadd.f32 %v6849_v25, %v580_v44  ;;  %v5725_v46 = vpop.f32.mrb[9].mxu0  ;;  %1608 = vmatpush1.bf16.msra.mxu0 %v692_v43  ;;  %5961 = vmatpush1.bf16.msra.mxu1 %v692_v43 }
 0x11b   : > { %v583_v47 = vpop.f32.mrb[10].mxu0  ;;  %1609 = vmatprep.subr.bf16.mxu0 %v8746_v21  ;;  %5949 = vmatprep.subr.bf16.mxu1 %v8746_v21 }
 0x11c   : > { %v584_v48 = vadd.f32 %v6849_v25, %v583_v47  ;;  %v5726_v49 = vpop.f32.mrb[11].mxu0  ;;  %v670_v50 = vmax.f32 %v581_v45, 0.0 }
 0x11e   : > { %v671_v51 = vmax.f32 %v584_v48, 0.0 }
 0x120   : > { %v693_v52 = vpack.c.bf16 %v671_v51, %v670_v50 }
 0x121   : > { %v588_v53 = vpop.f32.mrb[12].mxu0 }
 0x122   : > { %v589_v54 = vadd.f32 %v6849_v25, %v588_v53  ;;  %v5729_v55 = vpop.f32.mrb[13].mxu0  ;;  %1610 = vmatpush1.bf16.msra.mxu0 %v693_v52  ;;  %5962 = vmatpush1.bf16.msra.mxu1 %v693_v52 }
 0x123   : > { %v591_v56 = vpop.f32.mrb[14].mxu0  ;;  %1611 = vmatprep.subr.bf16.mxu0 %v8746_v21  ;;  %5950 = vmatprep.subr.bf16.mxu1 %v8746_v21 }
 0x124   : > { %v592_v57 = vadd.f32 %v6849_v25, %v591_v56  ;;  %v5730_v58 = vpop.f32.mrb[15].mxu0  ;;  %v672_v59 = vmax.f32 %v589_v54, 0.0 }
 0x126   : > { %v673_v60 = vmax.f32 %v592_v57, 0.0 }
 0x128   : > { %v694_v61 = vpack.c.bf16 %v673_v60, %v672_v59 }
 0x129   : > { %v596_v62 = vpop.f32.mrb[16].mxu0 }
 0x12a   : > { %v597_v63 = vadd.f32 %v6849_v25, %v596_v62  ;;  %v5733_v0 = vpop.f32.mrb[17].mxu0  ;;  %1612 = vmatpush1.bf16.msra.mxu0 %v694_v61  ;;  %5963 = vmatpush1.bf16.msra.mxu1 %v694_v61 }
 0x12b   : > { %v599_v2 = vpop.f32.mrb[18].mxu0  ;;  %1613 = vmatprep.subr.bf16.mxu0 %v8746_v21  ;;  %5951 = vmatprep.subr.bf16.mxu1 %v8746_v21 }
 0x12c   : > { %v600_v3 = vadd.f32 %v6849_v25, %v599_v2  ;;  %v5734_v4 = vpop.f32.mrb[19].mxu0  ;;  %v674_v5 = vmax.f32 %v597_v63, 0.0 }
 0x12e   : > { %v675_v6 = vmax.f32 %v600_v3, 0.0 }
 0x130   : > { %v695_v7 = vpack.c.bf16 %v675_v6, %v674_v5 }
 0x131   : > { %v604_v8 = vpop.f32.mrb[20].mxu0 }
 0x132   : > { %v605_v9 = vadd.f32 %v6849_v25, %v604_v8  ;;  %v5737_v10 = vpop.f32.mrb[21].mxu0  ;;  %1614 = vmatpush1.bf16.msra.mxu0 %v695_v7  ;;  %5964 = vmatpush1.bf16.msra.mxu1 %v695_v7 }
 0x133   : > { %v607_v11 = vpop.f32.mrb[22].mxu0  ;;  %1615 = vmatprep.subr.bf16.mxu0 %v8746_v21  ;;  %5952 = vmatprep.subr.bf16.mxu1 %v8746_v21 }
 0x134   : > { %v608_v12 = vadd.f32 %v6849_v25, %v607_v11  ;;  %v5738_v13 = vpop.f32.mrb[23].mxu0  ;;  %v676_v14 = vmax.f32 %v605_v9, 0.0 }
 0x136   : > { %v677_v15 = vmax.f32 %v608_v12, 0.0 }
 0x138   : > { %v696_v16 = vpack.c.bf16 %v677_v15, %v676_v14 }
 0x139   : > { %v612_v17 = vpop.f32.mrb[24].mxu0 }
 0x13a   : > { %v613_v18 = vadd.f32 %v6849_v25, %v612_v17  ;;  %v5741_v19 = vpop.f32.mrb[25].mxu0  ;;  %1616 = vmatpush1.bf16.msra.mxu0 %v696_v16  ;;  %5965 = vmatpush1.bf16.msra.mxu1 %v696_v16 }
 0x13b   : > { %v615_v20 = vpop.f32.mrb[26].mxu0  ;;  %1617 = vmatprep.subr.bf16.mxu0 %v8746_v21  ;;  %5953 = vmatprep.subr.bf16.mxu1 %v8746_v21  ;;  %v6357_v19 = vld [vmem:[%s8728_s3 + $0x14] ss:$8 sps:$4 sm:$0xff]  }
 0x13c   : > { %v616_v22 = vadd.f32 %v6849_v25, %v615_v20  ;;  %v5742_v23 = vpop.f32.mrb[27].mxu0  ;;  %v678_v24 = vmax.f32 %v613_v18, 0.0  ;;  %v6351_v18 = vld [vmem:[%s8728_s3] ss:$8 sps:$4 sm:$0xff]   ;;  %v6359_v20 = vld [vmem:[%s8728_s3 + $0xa4] ss:$8 sps:$4 sm:$0xff]  }
 0x13d   : > { %v6362_v23 = vld [vmem:[%s8728_s3 + $0xa0] ss:$8 sps:$4 sm:$0xff]  }
 0x13e   : > { %v679_v26 = vmax.f32 %v616_v22, 0.0  ;;  %v6361_v22 = vld [vmem:[%s8728_s3 + $0x10] ss:$8 sps:$4 sm:$0xff]  }
 0x140   : > { %v697_v27 = vpack.c.bf16 %v679_v26, %v678_v24  ;;  %v6363_v24 = vld [vmem:[%s8728_s3 + $0x24] ss:$8 sps:$4 sm:$0xff]   ;;  %v6365_v26 = vld [vmem:[%s8728_s3 + $0xb4] ss:$8 sps:$4 sm:$0xff]  }
 0x141   : > { %v620_v28 = vpop.f32.mrb[28].mxu0 }
 0x142   : > { %v621_v29 = vadd.f32 %v6849_v25, %v620_v28  ;;  %v5745_v30 = vpop.f32.mrb[29].mxu0  ;;  %1618 = vmatpush1.bf16.msra.mxu0 %v697_v27  ;;  %5966 = vmatpush1.bf16.msra.mxu1 %v697_v27  ;;  %v6367_v27 = vld [vmem:[%s8728_s3 + $0x20] ss:$8 sps:$4 sm:$0xff]   ;;  %v6368_v28 = vld [vmem:[%s8728_s3 + $0xb0] ss:$8 sps:$4 sm:$0xff]  }
 0x143   : > { %v623_v31 = vpop.f32.mrb[30].mxu0  ;;  %1619 = vmatprep.subr.bf16.mxu0 %v8746_v21  ;;  %5954 = vmatprep.subr.bf16.mxu1 %v8746_v21  ;;  %v6371_v30 = vld [vmem:[%s8728_s3 + $0xc4] ss:$8 sps:$4 sm:$0xff]  }
 0x144   : > { %v624_v32 = vadd.f32 %v6849_v25, %v623_v31  ;;  %v5746_v33 = vpop.f32.mrb[31].mxu0  ;;  %v680_v34 = vmax.f32 %v621_v29, 0.0  ;;  %v6369_v29 = vld [vmem:[%s8728_s3 + $0x34] ss:$8 sps:$4 sm:$0xff]   ;;  %v6373_v31 = vld [vmem:[%s8728_s3 + $0x30] ss:$8 sps:$4 sm:$0xff]  }
 0x145   : > { %v6375_v33 = vld [vmem:[%s8728_s3 + $0x44] ss:$8 sps:$4 sm:$0xff]  }
 0x146   : > { %v681_v35 = vmax.f32 %v624_v32, 0.0  ;;  %v6374_v32 = vld [vmem:[%s8728_s3 + $0xc0] ss:$8 sps:$4 sm:$0xff]  }
 0x148   : > { %v698_v36 = vpack.c.bf16 %v681_v35, %v680_v34  ;;  %v6377_v34 = vld [vmem:[%s8728_s3 + $0xd4] ss:$8 sps:$4 sm:$0xff]   ;;  %v6379_v35 = vld [vmem:[%s8728_s3 + $0x40] ss:$8 sps:$4 sm:$0xff]  }
 0x149   : > { %v628_v37 = vpop.f32.mrb[32].mxu0 }
 0x14a   : > { %v629_v38 = vadd.f32 %v6849_v25, %v628_v37  ;;  %v5749_v39 = vpop.f32.mrb[33].mxu0  ;;  %1620 = vmatpush1.bf16.msra.mxu0 %v698_v36  ;;  %5967 = vmatpush1.bf16.msra.mxu1 %v698_v36  ;;  %v6380_v36 = vld [vmem:[%s8728_s3 + $0xd0] ss:$8 sps:$4 sm:$0xff]   ;;  %v6381_v37 = vld [vmem:[%s8728_s3 + $0x54] ss:$8 sps:$4 sm:$0xff]  }
 0x14b   : > { %v631_v40 = vpop.f32.mrb[34].mxu0  ;;  %1621 = vmatprep.subr.bf16.mxu0 %v8746_v21  ;;  %5955 = vmatprep.subr.bf16.mxu1 %v8746_v21  ;;  %v6385_v39 = vld [vmem:[%s8728_s3 + $0x50] ss:$8 sps:$4 sm:$0xff]  }
 0x14c   : > { %v632_v41 = vadd.f32 %v6849_v25, %v631_v40  ;;  %v5750_v42 = vpop.f32.mrb[35].mxu0  ;;  %v682_v43 = vmax.f32 %v629_v38, 0.0  ;;  %v6383_v38 = vld [vmem:[%s8728_s3 + $0xe4] ss:$8 sps:$4 sm:$0xff]   ;;  %v6386_v40 = vld [vmem:[%s8728_s3 + $0xe0] ss:$8 sps:$4 sm:$0xff]  }
 0x14d   : > { %v6389_v42 = vld [vmem:[%s8728_s3 + $0xf4] ss:$8 sps:$4 sm:$0xff]  }
 0x14e   : > { %v683_v44 = vmax.f32 %v632_v41, 0.0  ;;  %v6387_v41 = vld [vmem:[%s8728_s3 + $0x64] ss:$8 sps:$4 sm:$0xff]  }
 0x150   : > { %v699_v45 = vpack.c.bf16 %v683_v44, %v682_v43  ;;  %v6391_v43 = vld [vmem:[%s8728_s3 + $0x60] ss:$8 sps:$4 sm:$0xff]   ;;  %v6392_v44 = vld [vmem:[%s8728_s3 + $0xf0] ss:$8 sps:$4 sm:$0xff]  }
 0x151   : > { %v636_v46 = vpop.f32.mrb[36].mxu0 }
 0x152   : > { %v637_v47 = vadd.f32 %v6849_v25, %v636_v46  ;;  %v5753_v48 = vpop.f32.mrb[37].mxu0  ;;  %1622 = vmatpush1.bf16.msra.mxu0 %v699_v45  ;;  %5968 = vmatpush1.bf16.msra.mxu1 %v699_v45  ;;  %v6393_v45 = vld [vmem:[%s8728_s3 + $0x74] ss:$8 sps:$4 sm:$0xff]   ;;  %v6395_v46 = vld [vmem:[%s8728_s3 + $0x104] ss:$8 sps:$4 sm:$0xff]  }
 0x153   : > { %v639_v49 = vpop.f32.mrb[38].mxu0  ;;  %1623 = vmatprep.subr.bf16.mxu0 %v8746_v21  ;;  %5956 = vmatprep.subr.bf16.mxu1 %v8746_v21  ;;  %v6398_v48 = vld [vmem:[%s8728_s3 + $0x100] ss:$8 sps:$4 sm:$0xff]  }
 0x154   : > { %v640_v50 = vadd.f32 %v6849_v25, %v639_v49  ;;  %v5754_v51 = vpop.f32.mrb[39].mxu0  ;;  %v684_v52 = vmax.f32 %v637_v47, 0.0  ;;  %v6397_v47 = vld [vmem:[%s8728_s3 + $0x70] ss:$8 sps:$4 sm:$0xff]   ;;  %v6399_v49 = vld [vmem:[%s8728_s3 + $0x114] ss:$8 sps:$4 sm:$0xff]  }
 0x155   : > { %v6401_v51 = vld [vmem:[%s8728_s3 + $0x110] ss:$8 sps:$4 sm:$0xff]  }
 0x156   : > { %v685_v53 = vmax.f32 %v640_v50, 0.0  ;;  %v6405_v50 = vld [vmem:[%s8728_s3 + $0x84] ss:$8 sps:$4 sm:$0xff]  }
 0x158   : > { %v700_v54 = vpack.c.bf16 %v685_v53, %v684_v52  ;;  %v6407_v52 = vld [vmem:[%s8728_s3 + $0x80] ss:$8 sps:$4 sm:$0xff]   ;;  %v6402_v53 = vld [vmem:[%s8728_s3 + $0x124] ss:$8 sps:$4 sm:$0xff]  }
 0x159   : > { %v644_v55 = vpop.f32.mrb[40].mxu0 }
 0x15a   : > { %v645_v56 = vadd.f32 %v6849_v25, %v644_v55  ;;  %v5757_v57 = vpop.f32.mrb[41].mxu0  ;;  %1624 = vmatpush1.bf16.msra.mxu0 %v700_v54  ;;  %5969 = vmatpush1.bf16.msra.mxu1 %v700_v54  ;;  %v6404_v54 = vld [vmem:[%s8728_s3 + $0x120] ss:$8 sps:$4 sm:$0xff]   ;;  %v6408_v55 = vld [vmem:[%s8728_s3 + $0x134] ss:$8 sps:$4 sm:$0xff]  }
 0x15b   : > { %v647_v58 = vpop.f32.mrb[42].mxu0  ;;  %1625 = vmatprep.subr.bf16.mxu0 %v8746_v21  ;;  %5957 = vmatprep.subr.bf16.mxu1 %v8746_v21  ;;  %v6411_v57 = vld [vmem:[%s8728_s3 + $0x144] ss:$8 sps:$4 sm:$0xff]  }
 0x15c   : > { %v648_v59 = vadd.f32 %v6849_v25, %v647_v58  ;;  %v5758_v60 = vpop.f32.mrb[43].mxu0  ;;  %v686_v61 = vmax.f32 %v645_v56, 0.0  ;;  %v6410_v56 = vld [vmem:[%s8728_s3 + $0x130] ss:$8 sps:$4 sm:$0xff]   ;;  %v6413_v58 = vld [vmem:[%s8728_s3 + $0x140] ss:$8 sps:$4 sm:$0xff]  }
 0x15d   : > { %v6416_v60 = vld [vmem:[%s8728_s3 + $0x150] ss:$8 sps:$4 sm:$0xff]  }
 0x15e   : > { %v687_v62 = vmax.f32 %v648_v59, 0.0  ;;  %v6414_v59 = vld [vmem:[%s8728_s3 + $0x154] ss:$8 sps:$4 sm:$0xff]  }
 0x160   : > { %v701_v63 = vpack.c.bf16 %v687_v62, %v686_v61  ;;  %v6417_v61 = vld [vmem:[%s8728_s3 + $0x164] ss:$8 sps:$4 sm:$0xff]   ;;  %v6419_v62 = vld [vmem:[%s8728_s3 + $0x160] ss:$8 sps:$4 sm:$0xff]  }
 0x161   : > { %v652_v0 = vpop.f32.mrb[44].mxu0 }
 0x162   : > { %v653_v2 = vadd.f32 %v6849_v25, %v652_v0  ;;  %v5761_v3 = vpop.f32.mrb[45].mxu0  ;;  %1626 = vmatpush1.bf16.msra.mxu0 %v701_v63  ;;  %5970 = vmatpush1.bf16.msra.mxu1 %v701_v63  ;;  %v6420_v63 = vld [vmem:[%s8728_s3 + $0x174] ss:$8 sps:$4 sm:$0xff]   ;;  %v6422_v0 = vld [vmem:[%s8728_s3 + $0x170] ss:$8 sps:$4 sm:$0xff]  }
 0x163   : > { %v655_v4 = vpop.f32.mrb[46].mxu0  ;;  %1627 = vmatprep.subr.bf16.mxu0 %v8746_v21  ;;  %5958 = vmatprep.subr.bf16.mxu1 %v8746_v21  ;;  %v6425_v3 = vld [vmem:[%s8728_s3 + $0x180] ss:$8 sps:$4 sm:$0xff]  }
 0x164   : > { %v656_v5 = vadd.f32 %v6849_v25, %v655_v4  ;;  %v5762_v6 = vpop.f32.mrb[47].mxu0  ;;  %v688_v7 = vmax.f32 %v653_v2, 0.0  ;;  %v6423_v2 = vld [vmem:[%s8728_s3 + $0x184] ss:$8 sps:$4 sm:$0xff]   ;;  %v6426_v4 = vld [vmem:[%s8728_s3 + $0x194] ss:$8 sps:$4 sm:$0xff]  }
 0x165   : > { %v6429_v6 = vld [vmem:[%s8728_s3 + $0x1a4] ss:$8 sps:$4 sm:$0xff]  }
 0x166   : > { %v689_v8 = vmax.f32 %v656_v5, 0.0  ;;  %v6428_v5 = vld [vmem:[%s8728_s3 + $0x190] ss:$8 sps:$4 sm:$0xff]  }
 0x168   : > { %v702_v9 = vpack.c.bf16 %v689_v8, %v688_v7  ;;  %v6477_v7 = vld [vmem:[%s8729_s4 + $0x8] sm:$0x1f]  }
 0x169   : > { %v660_v10 = vpop.f32.mrb[48].mxu0  ;;  %v6431_v8 = vld [vmem:[%s8728_s3 + $0x1a0] ss:$8 sps:$4 sm:$0xff]  }
 0x16a   : > { %v661_v11 = vadd.f32 %v6849_v25, %v660_v10  ;;  %v5765_v12 = vpop.f32.mrb[49].mxu0  ;;  %1628 = vmatpush1.bf16.msra.mxu0 %v702_v9  ;;  %5971 = vmatpush1.bf16.msra.mxu1 %v702_v9  ;;  %v6354_v25 = vld [vmem:[%s8728_s3 + $0x90] ss:$8 sps:$4 sm:$0xff]   ;;  %v2239_v9 = vsel %vm2237_vm3, %v6477_v7, 0  ;;  %v6432_v10 = vld [vmem:[%s8728_s3 + $0x1b4] ss:$8 sps:$4 sm:$0xff]  }
 0x16b   : > { %v663_v13 = vpop.f32.mrb[50].mxu0  ;;  %1629 = vmatprep.subr.bf16.mxu0 %v8746_v21  ;;  %5959 = vmatprep.subr.bf16.mxu1 %v8746_v21  ;;  %v6435_v12 = vld [vmem:[%s8728_s3 + $0x1c4] ss:$8 sps:$4 sm:$0xff]  }
 0x16c   : > { %v690_v14 = vmax.f32 %v661_v11, 0.0  ;;  %v5766_v15 = vpop.f32.mrb[51].mxu0  ;;  %v6434_v11 = vld [vmem:[%s8728_s3 + $0x1b0] ss:$8 sps:$4 sm:$0xff]   ;;  %v7100_v13 = vld [vmem:[%s8729_s4] sm:$0x1f]  }
 0x16d   : > { %v6438_v15 = vld [vmem:[%s8728_s3 + $0x1d4] ss:$8 sps:$4 sm:$0xff]  }
 0x16e   : > { %v703_v16 = vpack.c.bf16 %v690_v14, %v690_v14  ;;  %v6437_v14 = vld [vmem:[%s8728_s3 + $0x1c0] ss:$8 sps:$4 sm:$0xff]  }
 0x170   : > { %v1603_v17 = vsel %vm1601_vm2, %v703_v16, 0  ;;  %v6440_v16 = vld [vmem:[%s8728_s3 + $0x1d0] ss:$8 sps:$4 sm:$0xff]  }
 0x171   : > { %1630 = vmatpush1.bf16.msra.mxu0 %v1603_v17  ;;  %5972 = vmatpush1.bf16.msra.mxu1 %v1603_v17  ;;  %v6441_v17 = vld [vmem:[%s8728_s3 + $0x1e4] ss:$8 sps:$4 sm:$0xff]  }
 0x172   : > { %6093 = vmatprep.subr.msk.bf16.mxu0 %vm2237_vm3, %v6477_v7  ;;  %v6470_v7 = vld [vmem:[%s8728_s3 + $0x270] ss:$8 sps:$4 sm:$0xff]  }
 0x174   : > { %1638 = vmatmul.mubr.bf16.vlgmr.msra.gmra.mrb[52].mxu0 %v6351_v18  ;;  %1710 = vmatmul.mubr.bf16.vlgmr.msra.gmra.mrb[0].mxu1 %v6354_v25  ;;  %v6443_v18 = vld [vmem:[%s8728_s3 + $0x1e0] ss:$8 sps:$4 sm:$0xff]   ;;  %v6444_v25 = vld [vmem:[%s8728_s3 + $0x1f4] ss:$8 sps:$4 sm:$0xff]  }
 0x175   : > { %5252 = vmatprep.mubr.msk.bf16.mxu0 %vm1408_vm1, %v6357_v19  ;;  %5261 = vmatprep.mubr.msk.bf16.mxu1 %vm1408_vm1, %v6359_v20  ;;  %v6446_v19 = vld [vmem:[%s8728_s3 + $0x1f0] ss:$8 sps:$4 sm:$0xff]   ;;  %v6447_v20 = vld [vmem:[%s8728_s3 + $0x204] ss:$8 sps:$4 sm:$0xff]  }
 0x176   : > { %5768 = vmatpush3.bf16.msra.mxu0 %v2239_v9 }
 0x177   : > { %6094 = vmatprep.subr.msk.bf16.mxu0 %vm2237_vm3, %v7100_v13 }
 0x17c   : > { %1646 = vmatmul.mubr.bf16.gmra.mrb[56].mxu0 %v6361_v22  ;;  %1718 = vmatmul.mubr.bf16.gmra.mrb[4].mxu1 %v6362_v23  ;;  %v6449_v22 = vld [vmem:[%s8728_s3 + $0x200] ss:$8 sps:$4 sm:$0xff]   ;;  %v6450_v23 = vld [vmem:[%s8728_s3 + $0x214] ss:$8 sps:$4 sm:$0xff]  }
 0x17d   : > { %5253 = vmatprep.mubr.msk.bf16.mxu0 %vm1408_vm1, %v6363_v24  ;;  %5262 = vmatprep.mubr.msk.bf16.mxu1 %vm1408_vm1, %v6365_v26  ;;  %v6452_v24 = vld [vmem:[%s8728_s3 + $0x210] ss:$8 sps:$4 sm:$0xff]   ;;  %v6453_v26 = vld [vmem:[%s8728_s3 + $0x224] ss:$8 sps:$4 sm:$0xff]  }
 0x184   : > { %1654 = vmatmul.mubr.bf16.gmra.mrb[60].mxu0 %v6367_v27  ;;  %1726 = vmatmul.mubr.bf16.gmra.mrb[8].mxu1 %v6368_v28  ;;  %v6455_v27 = vld [vmem:[%s8728_s3 + $0x220] ss:$8 sps:$4 sm:$0xff]   ;;  %v6456_v28 = vld [vmem:[%s8728_s3 + $0x234] ss:$8 sps:$4 sm:$0xff]  }
 0x185   : > { %5254 = vmatprep.mubr.msk.bf16.mxu0 %vm1408_vm1, %v6369_v29  ;;  %5263 = vmatprep.mubr.msk.bf16.mxu1 %vm1408_vm1, %v6371_v30  ;;  %v6458_v29 = vld [vmem:[%s8728_s3 + $0x230] ss:$8 sps:$4 sm:$0xff]   ;;  %v6459_v30 = vld [vmem:[%s8728_s3 + $0x244] ss:$8 sps:$4 sm:$0xff]  }
 0x18c   : > { %1662 = vmatmul.mubr.bf16.gmra.mrb[64].mxu0 %v6373_v31  ;;  %1734 = vmatmul.mubr.bf16.gmra.mrb[12].mxu1 %v6374_v32 }
 0x18d   : > { %5255 = vmatprep.mubr.msk.bf16.mxu0 %vm1408_vm1, %v6375_v33  ;;  %5264 = vmatprep.mubr.msk.bf16.mxu1 %vm1408_vm1, %v6377_v34  ;;  %v6461_v34 = vld [vmem:[%s8728_s3 + $0x240] ss:$8 sps:$4 sm:$0xff]  }
 0x194   : > { %1670 = vmatmul.mubr.bf16.gmra.mrb[68].mxu0 %v6379_v35  ;;  %1742 = vmatmul.mubr.bf16.gmra.mrb[16].mxu1 %v6380_v36 }
 0x195   : > { %5256 = vmatprep.mubr.msk.bf16.mxu0 %vm1408_vm1, %v6381_v37  ;;  %5265 = vmatprep.mubr.msk.bf16.mxu1 %vm1408_vm1, %v6383_v38  ;;  %v6462_v37 = vld [vmem:[%s8728_s3 + $0x254] ss:$8 sps:$4 sm:$0xff]  }
 0x19c   : > { %1678 = vmatmul.mubr.bf16.gmra.mrb[72].mxu0 %v6385_v39  ;;  %1750 = vmatmul.mubr.bf16.gmra.mrb[20].mxu1 %v6386_v40 }
 0x19d   : > { %5257 = vmatprep.mubr.msk.bf16.mxu0 %vm1408_vm1, %v6387_v41  ;;  %5266 = vmatprep.mubr.msk.bf16.mxu1 %vm1408_vm1, %v6389_v42 }
 0x1a4   : > { %1686 = vmatmul.mubr.bf16.gmra.mrb[76].mxu0 %v6391_v43  ;;  %1758 = vmatmul.mubr.bf16.gmra.mrb[24].mxu1 %v6392_v44 }
 0x1a5   : > { %5258 = vmatprep.mubr.msk.bf16.mxu0 %vm1408_vm1, %v6393_v45  ;;  %5267 = vmatprep.mubr.msk.bf16.mxu1 %vm1408_vm1, %v6395_v46  ;;  %v6464_v46 = vld [vmem:[%s8728_s3 + $0x250] ss:$8 sps:$4 sm:$0xff]  }
 0x1ac   : > { %1694 = vmatmul.mubr.bf16.gmra.mrb[80].mxu0 %v6397_v47  ;;  %1766 = vmatmul.mubr.bf16.gmra.mrb[28].mxu1 %v6398_v48 }
 0x1ad   : > { %5268 = vmatprep.mubr.msk.bf16.mxu1 %vm1408_vm1, %v6399_v49  ;;  %5259 = vmatprep.mubr.msk.bf16.mxu0 %vm1408_vm1, %v6405_v50  ;;  %v6465_v49 = vld [vmem:[%s8728_s3 + $0x264] ss:$8 sps:$4 sm:$0xff]  }
 0x1b4   : > { %1774 = vmatmul.mubr.bf16.gmra.mrb[32].mxu1 %v6401_v51  ;;  %1702 = vmatmul.mubr.bf16.gmra.mrb[84].mxu0 %v6407_v52 }
 0x1b5   : > { %5269 = vmatprep.mubr.msk.bf16.mxu1 %vm1408_vm1, %v6402_v53 }
 0x1bc   : > { %1782 = vmatmul.mubr.bf16.gmra.mrb[36].mxu1 %v6404_v54 }
 0x1bd   : > { %5270 = vmatprep.mubr.msk.bf16.mxu1 %vm1408_vm1, %v6408_v55 }
 0x1c4   : > { %1790 = vmatmul.mubr.bf16.gmra.mrb[40].mxu1 %v6410_v56 }
 0x1c5   : > { %5271 = vmatprep.mubr.msk.bf16.mxu1 %vm1408_vm1, %v6411_v57 }
 0x1cc   : > { %1798 = vmatmul.mubr.bf16.gmra.mrb[44].mxu1 %v6413_v58  ;;  %v6467_v58 = vld [vmem:[%s8728_s3 + $0x260] ss:$8 sps:$4 sm:$0xff]  }
 0x1cd   : > { %5272 = vmatprep.mubr.msk.bf16.mxu1 %vm1408_vm1, %v6414_v59 }
 0x1d4   : > { %1806 = vmatmul.mubr.bf16.gmra.mrb[48].mxu1 %v6416_v60 }
 0x1d5   : > { %5273 = vmatprep.mubr.msk.bf16.mxu1 %vm1408_vm1, %v6417_v61  ;;  %v6468_v61 = vld [vmem:[%s8728_s3 + $0x274] ss:$8 sps:$4 sm:$0xff]  }
 0x1dc   : > { %1814 = vmatmul.mubr.bf16.gmra.mrb[52].mxu1 %v6419_v62 }
 0x1dd   : > { %5274 = vmatprep.mubr.msk.bf16.mxu1 %vm1408_vm1, %v6420_v63 }
 0x1e4   : > { %1822 = vmatmul.mubr.bf16.gmra.mrb[56].mxu1 %v6422_v0 }
 0x1e5   : > { %5275 = vmatprep.mubr.msk.bf16.mxu1 %vm1408_vm1, %v6423_v2 }
 0x1ec   : > { %1830 = vmatmul.mubr.bf16.gmra.mrb[60].mxu1 %v6425_v3 }
 0x1ed   : > { %5276 = vmatprep.mubr.msk.bf16.mxu1 %vm1408_vm1, %v6426_v4 }
 0x1f4   : > { %1838 = vmatmul.mubr.bf16.gmra.mrb[64].mxu1 %v6428_v5 }
 0x1f5   : > { %5277 = vmatprep.mubr.msk.bf16.mxu1 %vm1408_vm1, %v6429_v6 }
 0x1fc   : > { %1846 = vmatmul.mubr.bf16.gmra.mrb[68].mxu1 %v6431_v8 }
 0x1fd   : > { %5278 = vmatprep.mubr.msk.bf16.mxu1 %vm1408_vm1, %v6432_v10  ;;  %v6471_v10 = vld [vmem:[%s8728_s3 + $0x284] ss:$8 sps:$4 sm:$0xff]  }
 0x204   : > { %1854 = vmatmul.mubr.bf16.gmra.mrb[72].mxu1 %v6434_v11 }
 0x205   : > { %5279 = vmatprep.mubr.msk.bf16.mxu1 %vm1408_vm1, %v6435_v12 }
 0x20c   : > { %1862 = vmatmul.mubr.bf16.gmra.mrb[76].mxu1 %v6437_v14 }
 0x20d   : > { %5280 = vmatprep.mubr.msk.bf16.mxu1 %vm1408_vm1, %v6438_v15 }
 0x214   : > { %1870 = vmatmul.mubr.bf16.gmra.mrb[80].mxu1 %v6440_v16 }
 0x215   : > { %5281 = vmatprep.mubr.msk.bf16.mxu1 %vm1408_vm1, %v6441_v17 }
 0x21c   : > { %1878 = vmatmul.mubr.bf16.gmra.mrb[84].mxu1 %v6443_v18 }
 0x21d   : > { %5282 = vmatprep.mubr.msk.bf16.mxu1 %vm1408_vm1, %v6444_v25 }
 0x224   : > { %1886 = vmatmul.mubr.bf16.gmra.mrb[88].mxu1 %v6446_v19  ;;  %v6473_v19 = vld [vmem:[%s8728_s3 + $0x280] ss:$8 sps:$4 sm:$0xff]  }
 0x225   : > { %5283 = vmatprep.mubr.msk.bf16.mxu1 %vm1408_vm1, %v6447_v20 }
 0x22c   : > { %1894 = vmatmul.mubr.bf16.gmra.mrb[92].mxu1 %v6449_v22 }
 0x22d   : > { %5284 = vmatprep.mubr.msk.bf16.mxu1 %vm1408_vm1, %v6450_v23  ;;  %v6474_v23 = vld [vmem:[%s8728_s3 + $0x294] ss:$8 sps:$4 sm:$0xff]  }
 0x234   : > { %1902 = vmatmul.mubr.bf16.gmra.mrb[96].mxu1 %v6452_v24 }
 0x235   : > { %5285 = vmatprep.mubr.msk.bf16.mxu1 %vm1408_vm1, %v6453_v26 }
 0x23c   : > { %1910 = vmatmul.mubr.bf16.gmra.mrb[100].mxu1 %v6455_v27 }
 0x23d   : > { %5286 = vmatprep.mubr.msk.bf16.mxu1 %vm1408_vm1, %v6456_v28 }
 0x244   : > { %1918 = vmatmul.mubr.bf16.gmra.mrb[104].mxu1 %v6458_v29 }
 0x245   : > { %5287 = vmatprep.mubr.msk.bf16.mxu1 %vm1408_vm1, %v6459_v30 }
 0x247   : > { %v7160_v31 = vpop.f32.mrb[0].mxu1  ;;  %v7162_v32 = vpop.f32.mrb[52].mxu0 }
 0x248   : > { %v1713_v33 = vpop.f32.mrb[1].mxu1  ;;  %v1641_v35 = vpop.f32.mrb[53].mxu0 }
 0x249   : > { %v7167_v36 = vpop.f32.mrb[2].mxu1  ;;  %v7172_v38 = vpop.f32.mrb[54].mxu0  ;;  %v6476_v35 = vld [vmem:[%s8728_s3 + $0x290] ss:$8 sps:$4 sm:$0xff]  }
 0x24a   : > { %v2159_v39 = vpack.c.bf16 %v7167_v36, %v7160_v31  ;;  %v1716_v40 = vpop.f32.mrb[3].mxu1  ;;  %v2150_v41 = vpack.c.bf16 %v7172_v38, %v7162_v32  ;;  %v1644_v42 = vpop.f32.mrb[55].mxu0  ;;  %v6499_v36 = vld [vmem:[%s8728_s3 + $0x304] ss:$8 sps:$4 sm:$0xff]  }
 0x24c   : > { %1926 = vmatmul.mubr.bf16.gmra.mrb[108].mxu1 %v6461_v34 }
 0x24d   : > { %5288 = vmatprep.mubr.msk.bf16.mxu1 %vm1408_vm1, %v6462_v37 }
 0x24f   : > { %v7179_v43 = vpop.f32.mrb[4].mxu1  ;;  %v7181_v44 = vpop.f32.mrb[56].mxu0 }
 0x250   : > { %v1721_v45 = vpop.f32.mrb[5].mxu1  ;;  %v1649_v47 = vpop.f32.mrb[57].mxu0 }
 0x251   : > { %v7186_v48 = vpop.f32.mrb[6].mxu1  ;;  %v7191_v50 = vpop.f32.mrb[58].mxu0  ;;  %v6478_v45 = vld [vmem:[%s8728_s3 + $0x2a4] ss:$8 sps:$4 sm:$0xff]  }
 0x252   : > { %v2160_v51 = vpack.c.bf16 %v7186_v48, %v7179_v43  ;;  %v1724_v52 = vpop.f32.mrb[7].mxu1  ;;  %v2151_v53 = vpack.c.bf16 %v7191_v50, %v7181_v44  ;;  %v1652_v54 = vpop.f32.mrb[59].mxu0  ;;  %v6492_v50 = vld [vmem:[%s8728_s3 + $0x2e4] ss:$8 sps:$4 sm:$0xff]  }
 0x253   : > { %v2324_v54 = vsel %vm2237_vm3, %v7100_v13, 0  ;;  %v6480_v13 = vld [vmem:[%s8728_s3 + $0x2a0] ss:$8 sps:$4 sm:$0xff]  }
 0x254   : > { %1934 = vmatmul.mubr.bf16.gmra.mrb[112].mxu1 %v6464_v46 }
 0x255   : > { %5289 = vmatprep.mubr.msk.bf16.mxu1 %vm1408_vm1, %v6465_v49 }
 0x257   : > { %v7198_v55 = vpop.f32.mrb[8].mxu1  ;;  %v7200_v56 = vpop.f32.mrb[60].mxu0 }
 0x258   : > { %v1729_v57 = vpop.f32.mrb[9].mxu1  ;;  %v1657_v59 = vpop.f32.mrb[61].mxu0 }
 0x259   : > { %v7205_v60 = vpop.f32.mrb[10].mxu1  ;;  %v7210_v62 = vpop.f32.mrb[62].mxu0  ;;  %v6491_v57 = vld [vmem:[%s8729_s4 + $0x10] sm:$0x1f]  }
 0x25a   : > { %v2161_v63 = vpack.c.bf16 %v7205_v60, %v7198_v55  ;;  %v1732_v0 = vpop.f32.mrb[11].mxu1  ;;  %v2152_v2 = vpack.c.bf16 %v7210_v62, %v7200_v56  ;;  %v1660_v3 = vpop.f32.mrb[63].mxu0  ;;  %v6502_v55 = vld [vmem:[%s8728_s3 + $0x314] ss:$8 sps:$4 sm:$0xff]  }
 0x25c   : > { %1942 = vmatmul.mubr.bf16.gmra.mrb[116].mxu1 %v6467_v58 }
 0x25d   : > { %5290 = vmatprep.mubr.msk.bf16.mxu1 %vm1408_vm1, %v6468_v61 }
 0x25f   : > { %v7217_v4 = vpop.f32.mrb[12].mxu1  ;;  %v7219_v5 = vpop.f32.mrb[64].mxu0 }
 0x260   : > { %v1737_v6 = vpop.f32.mrb[13].mxu1  ;;  %v1665_v8 = vpop.f32.mrb[65].mxu0 }
 0x261   : > { %v7224_v9 = vpop.f32.mrb[14].mxu1  ;;  %v7229_v11 = vpop.f32.mrb[66].mxu0 }
 0x262   : > { %v2162_v12 = vpack.c.bf16 %v7224_v9, %v7217_v4  ;;  %v1740_v14 = vpop.f32.mrb[15].mxu1  ;;  %v2153_v15 = vpack.c.bf16 %v7229_v11, %v7219_v5  ;;  %v1668_v16 = vpop.f32.mrb[67].mxu0  ;;  %v6512_v9 = vld [vmem:[%s8729_s4 + $0x28] sm:$0x1f]  }
 0x264   : > { %1950 = vmatmul.mubr.bf16.gmra.mrb[120].mxu1 %v6470_v7  ;;  %v6481_v7 = vld [vmem:[%s8728_s3 + $0x2b4] ss:$8 sps:$4 sm:$0xff]  }
 0x265   : > { %5291 = vmatprep.mubr.msk.bf16.mxu1 %vm1408_vm1, %v6471_v10 }
 0x267   : > { %v7236_v17 = vpop.f32.mrb[16].mxu1  ;;  %v1671_v18 = vpop.f32.mrb[68].mxu0 }
 0x268   : > { %v1745_v25 = vpop.f32.mrb[17].mxu1  ;;  %v1673_v20 = vpop.f32.mrb[69].mxu0 }
 0x269   : > { %v7241_v22 = vpop.f32.mrb[18].mxu1  ;;  %v1674_v24 = vpop.f32.mrb[70].mxu0 }
 0x26a   : > { %v2163_v26 = vpack.c.bf16 %v7241_v22, %v7236_v17  ;;  %v1748_v27 = vpop.f32.mrb[19].mxu1  ;;  %v2154_v28 = vpack.c.bf16 %v1674_v24, %v1671_v18  ;;  %v1676_v29 = vpop.f32.mrb[71].mxu0  ;;  %v6506_v17 = vld [vmem:[%s8728_s3 + $0x324] ss:$8 sps:$4 sm:$0xff]  }
 0x26c   : > { %1958 = vmatmul.mubr.bf16.gmra.mrb[124].mxu1 %v6473_v19  ;;  %5769 = vmatprep.mubr.msk.bf16.mxu0 %vm2224_vm4, %v2154_v28  ;;  %v6485_v28 = vld [vmem:[%s8728_s3 + $0x2c4] ss:$8 sps:$4 sm:$0xff]  }
 0x26d   : > { %5292 = vmatprep.mubr.msk.bf16.mxu1 %vm1408_vm1, %v6474_v23  ;;  %v6483_v23 = vld [vmem:[%s8728_s3 + $0x2b0] ss:$8 sps:$4 sm:$0xff]  }
 0x26f   : > { %v7250_v30 = vpop.f32.mrb[20].mxu1  ;;  %v1679_v33 = vpop.f32.mrb[72].mxu0 }
 0x270   : > { %v1753_v34 = vpop.f32.mrb[21].mxu1  ;;  %v1681_v37 = vpop.f32.mrb[73].mxu0 }
 0x271   : > { %v7255_v40 = vpop.f32.mrb[22].mxu1  ;;  %v1682_v42 = vpop.f32.mrb[74].mxu0 }
 0x272   : > { %v2164_v46 = vpack.c.bf16 %v7255_v40, %v7250_v30  ;;  %v1756_v47 = vpop.f32.mrb[23].mxu1  ;;  %v2155_v49 = vpack.c.bf16 %v1682_v42, %v1679_v33  ;;  %v1684_v52 = vpop.f32.mrb[75].mxu0 }
 0x273   : > { %v6487_v47 = vld [vmem:[%s8728_s3 + $0x2c0] ss:$8 sps:$4 sm:$0xff]  }
 0x274   : > { %1966 = vmatmul.mubr.bf16.gmra.mrb[128].mxu1 %v6476_v35  ;;  %5770 = vmatmul.mubr.msk.bf16.vlgmr.msra.gmra.mrb[88].mxu0 %vm2224_vm4, %v2155_v49 }
 0x275   : > { %5293 = vmatprep.mubr.msk.bf16.mxu1 %vm1408_vm1, %v6478_v45  ;;  %5778 = vmatpush3.bf16.msra.mxu0 %v2324_v54  ;;  %v6488_v54 = vld [vmem:[%s8728_s3 + $0x2d4] ss:$8 sps:$4 sm:$0xff]  }
 0x276   : > { %6095 = vmatprep.subr.msk.bf16.mxu0 %vm2237_vm3, %v6491_v57 }
 0x277   : > { %v7270_v58 = vpop.f32.mrb[24].mxu1  ;;  %v1687_v59 = vpop.f32.mrb[76].mxu0 }
 0x278   : > { %v1761_v61 = vpop.f32.mrb[25].mxu1  ;;  %v1689_v0 = vpop.f32.mrb[77].mxu0 }
 0x279   : > { %v7275_v3 = vpop.f32.mrb[26].mxu1  ;;  %v1690_v6 = vpop.f32.mrb[78].mxu0  ;;  %v2412_v0 = vsel %vm2237_vm3, %v6491_v57, 0 }
 0x27a   : > { %v2165_v8 = vpack.c.bf16 %v7275_v3, %v7270_v58  ;;  %v1764_v10 = vpop.f32.mrb[27].mxu1  ;;  %v2156_v14 = vpack.c.bf16 %v1690_v6, %v1687_v59  ;;  %v1692_v16 = vpop.f32.mrb[79].mxu0  ;;  %v6509_v58 = vld [vmem:[%s8728_s3 + $0x334] ss:$8 sps:$4 sm:$0xff]  }
 0x27b   : > { %v6494_v10 = vld [vmem:[%s8728_s3 + $0x2e0] ss:$8 sps:$4 sm:$0xff]   ;;  %v6495_v16 = vld [vmem:[%s8728_s3 + $0x2f4] ss:$8 sps:$4 sm:$0xff]  }
 0x27c   : > { %1974 = vmatmul.mubr.bf16.gmra.mrb[132].mxu1 %v6480_v13  ;;  %5773 = vmatprep.mubr.msk.bf16.mxu0 %vm2224_vm4, %v2156_v14  ;;  %v6498_v13 = vld [vmem:[%s8729_s4 + $0x18] sm:$0x1f]  }
 0x27d   : > { %5294 = vmatprep.mubr.msk.bf16.mxu1 %vm1408_vm1, %v6481_v7  ;;  %v6490_v7 = vld [vmem:[%s8728_s3 + $0x2d0] ss:$8 sps:$4 sm:$0xff]  }
 0x27f   : > { %v1695_v18 = vpop.f32.mrb[80].mxu0  ;;  %v7284_v25 = vpop.f32.mrb[28].mxu1 }
 0x280   : > { %v1697_v19 = vpop.f32.mrb[81].mxu0  ;;  %v1769_v20 = vpop.f32.mrb[29].mxu1 }
 0x281   : > { %v1698_v24 = vpop.f32.mrb[82].mxu0  ;;  %v7289_v27 = vpop.f32.mrb[30].mxu1 }
 0x282   : > { %v2157_v29 = vpack.c.bf16 %v1698_v24, %v1695_v18  ;;  %v2166_v33 = vpack.c.bf16 %v7289_v27, %v7284_v25  ;;  %v1772_v34 = vpop.f32.mrb[31].mxu1  ;;  %v1700_v35 = vpop.f32.mrb[83].mxu0  ;;  %v6505_v18 = vld [vmem:[%s8729_s4 + $0x20] sm:$0x1f]   ;;  %v6519_v25 = vld [vmem:[%s8729_s4 + $0x30] sm:$0x1f]  }
 0x283   : > { %v6501_v24 = vld [vmem:[%s8728_s3 + $0x300] ss:$8 sps:$4 sm:$0xff]   ;;  %v2604_v4 = vsel %vm2237_vm3, %v6505_v18, 0  ;;  %v6504_v34 = vld [vmem:[%s8728_s3 + $0x310] ss:$8 sps:$4 sm:$0xff]  }
 0x284   : > { %1982 = vmatmul.mubr.bf16.gmra.mrb[136].mxu1 %v6483_v23  ;;  %5774 = vmatmul.mubr.msk.bf16.gmra.mrb[92].mxu0 %vm2224_vm4, %v2157_v29  ;;  %v6497_v23 = vld [vmem:[%s8728_s3 + $0x2f0] ss:$8 sps:$4 sm:$0xff]  }
 0x285   : > { %5295 = vmatprep.mubr.msk.bf16.mxu1 %vm1408_vm1, %v6485_v28  ;;  %5779 = vmatprep.mubr.msk.bf16.mxu0 %vm2224_vm4, %v2150_v41 }
 0x287   : > { %v7302_v37 = vpop.f32.mrb[32].mxu1  ;;  %v1703_v42 = vpop.f32.mrb[84].mxu0 }
 0x288   : > { %v1777_v45 = vpop.f32.mrb[33].mxu1  ;;  %v1705_v49 = vpop.f32.mrb[85].mxu0 }
 0x289   : > { %v7307_v52 = vpop.f32.mrb[34].mxu1  ;;  %v1706_v59 = vpop.f32.mrb[86].mxu0  ;;  %v2700_v45 = vsel %vm2237_vm3, %v6512_v9, 0 }
 0x28a   : > { %v2167_v32 = vpack.c.bf16 %v7307_v52, %v7302_v37  ;;  %v1780_v38 = vpop.f32.mrb[35].mxu1  ;;  %v2158_v41 = vpack.c.bf16 %v1706_v59, %v1703_v42  ;;  %v1708_v61 = vpop.f32.mrb[87].mxu0  ;;  %v6513_v37 = vld [vmem:[%s8728_s3 + $0x344] ss:$8 sps:$4 sm:$0xff]  }
 0x28b   : > { %v6515_v38 = vld [vmem:[%s8728_s3 + $0x340] ss:$8 sps:$4 sm:$0xff]   ;;  %v6516_v61 = vld [vmem:[%s8728_s3 + $0x354] ss:$8 sps:$4 sm:$0xff]  }
 0x28c   : > { %1990 = vmatmul.mubr.bf16.gmra.mrb[140].mxu1 %v6487_v47  ;;  %5780 = vmatmul.mubr.msk.bf16.vlgmr.msra.gmra.mrb[88].mxu0 %vm2224_vm4, %v2151_v53  ;;  %v6511_v47 = vld [vmem:[%s8728_s3 + $0x330] ss:$8 sps:$4 sm:$0xff]  }
 0x28d   : > { %5296 = vmatprep.mubr.msk.bf16.mxu1 %vm1408_vm1, %v6488_v54  ;;  %5783 = vmatprep.mubr.msk.bf16.mxu0 %vm2224_vm4, %v2152_v2 }
 0x28e   : > { %5788 = vmatpush3.bf16.msra.mxu0 %v2412_v0 }
 0x28f   : > { %v7327_v6 = vpop.f32.mrb[36].mxu1  ;;  %6096 = vmatprep.subr.msk.bf16.mxu0 %vm2237_vm3, %v6498_v13 }
 0x290   : > { %v1785_v57 = vpop.f32.mrb[37].mxu1 }
 0x291   : > { %v7333_v44 = vpop.f32.mrb[38].mxu1  ;;  %v6526_v57 = vld [vmem:[%s8729_s4 + $0x38] sm:$0x1f]  }
 0x292   : > { %v2168_v53 = vpack.c.bf16 %v7333_v44, %v7327_v6  ;;  %v1788_v56 = vpop.f32.mrb[39].mxu1  ;;  %v2796_v6 = vsel %vm2237_vm3, %v6519_v25, 0 }
 0x293   : > { %v6520_v56 = vld [vmem:[%s8728_s3 + $0x364] ss:$8 sps:$4 sm:$0xff]  }
 0x294   : > { %1998 = vmatmul.mubr.bf16.gmra.mrb[144].mxu1 %v6490_v7  ;;  %5784 = vmatmul.mubr.msk.bf16.gmra.mrb[92].mxu0 %vm2224_vm4, %v2153_v15  ;;  %v2508_v15 = vsel %vm2237_vm3, %v6498_v13, 0 }
 0x295   : > { %5297 = vmatprep.mubr.msk.bf16.mxu1 %vm1408_vm1, %v6492_v50  ;;  %5789 = vmatprep.mubr.msk.bf16.mxu0 %vm2224_vm4, %v2158_v41  ;;  %v6518_v50 = vld [vmem:[%s8728_s3 + $0x350] ss:$8 sps:$4 sm:$0xff]  }
 0x297   : > { %v7346_v62 = vpop.f32.mrb[40].mxu1 }
 0x298   : > { %v1793_v2 = vpop.f32.mrb[41].mxu1 }
 0x299   : > { %v7351_v14 = vpop.f32.mrb[42].mxu1 }
 0x29a   : > { %v2169_v5 = vpack.c.bf16 %v7351_v14, %v7346_v62  ;;  %v1796_v11 = vpop.f32.mrb[43].mxu1 }
 0x29b   : > { %v6523_v11 = vld [vmem:[%s8728_s3 + $0x374] ss:$8 sps:$4 sm:$0xff]  }
 0x29c   : > { %2006 = vmatmul.mubr.bf16.gmra.mrb[148].mxu1 %v6494_v10  ;;  %5790 = vmatmul.mubr.msk.bf16.vlgmr.msra.gmra.mrb[88].mxu0 %vm2224_vm4, %v2159_v39 }
 0x29d   : > { %5793 = vmatprep.mubr.msk.bf16.mxu0 %vm2224_vm4, %v2160_v51  ;;  %5298 = vmatprep.mubr.msk.bf16.mxu1 %vm1408_vm1, %v6495_v16  ;;  %v6522_v16 = vld [vmem:[%s8728_s3 + $0x360] ss:$8 sps:$4 sm:$0xff]  }
 0x29e   : > { %5798 = vmatpush3.bf16.msra.mxu0 %v2508_v15 }
 0x29f   : > { %v7371_v19 = vpop.f32.mrb[44].mxu1  ;;  %6097 = vmatprep.subr.msk.bf16.mxu0 %vm2237_vm3, %v6505_v18 }
 0x2a0   : > { %v1801_v20 = vpop.f32.mrb[45].mxu1 }
 0x2a1   : > { %v1802_v31 = vpop.f32.mrb[46].mxu1  ;;  %v6539_v20 = vld [vmem:[%s8729_s4 + $0x40] sm:$0x1f]  }
 0x2a2   : > { %v2170_v39 = vpack.c.bf16 %v1802_v31, %v7371_v19  ;;  %v1804_v43 = vpop.f32.mrb[47].mxu1  ;;  %v2892_v19 = vsel %vm2237_vm3, %v6526_v57, 0 }
 0x2a3   : > { %v6527_v43 = vld [vmem:[%s8728_s3 + $0x384] ss:$8 sps:$4 sm:$0xff]  }
 0x2a4   : > { %2014 = vmatmul.mubr.bf16.gmra.mrb[152].mxu1 %v6497_v23  ;;  %5794 = vmatmul.mubr.msk.bf16.gmra.mrb[92].mxu0 %vm2224_vm4, %v2161_v63 }
 0x2a5   : > { %5799 = vmatprep.mubr.msk.bf16.mxu0 %vm2224_vm4, %v2162_v12  ;;  %5299 = vmatprep.mubr.msk.bf16.mxu1 %vm1408_vm1, %v6499_v36  ;;  %v6525_v36 = vld [vmem:[%s8728_s3 + $0x370] ss:$8 sps:$4 sm:$0xff]  }
 0x2a7   : > { %v7390_v48 = vpop.f32.mrb[48].mxu1 }
 0x2a8   : > { %v1809_v51 = vpop.f32.mrb[49].mxu1 }
 0x2a9   : > { %v1810_v28 = vpop.f32.mrb[50].mxu1 }
 0x2aa   : > { %v2171_v60 = vpack.c.bf16 %v1810_v28, %v7390_v48  ;;  %v1812_v63 = vpop.f32.mrb[51].mxu1 }
 0x2ab   : > { %v6530_v63 = vld [vmem:[%s8728_s3 + $0x394] ss:$8 sps:$4 sm:$0xff]  }
 0x2ac   : > { %2022 = vmatmul.mubr.bf16.gmra.mrb[156].mxu1 %v6501_v24  ;;  %5800 = vmatmul.mubr.msk.bf16.vlgmr.msra.gmra.mrb[88].mxu0 %vm2224_vm4, %v2163_v26 }
 0x2ad   : > { %5803 = vmatprep.mubr.msk.bf16.mxu0 %vm2224_vm4, %v2164_v46  ;;  %5300 = vmatprep.mubr.msk.bf16.mxu1 %vm1408_vm1, %v6502_v55  ;;  %v6508_v46 = vld [vmem:[%s8728_s3 + $0x320] ss:$8 sps:$4 sm:$0xff]  }
 0x2ae   : > { %5808 = vmatpush3.bf16.msra.mxu0 %v2604_v4  ;;  %v6529_v55 = vld [vmem:[%s8728_s3 + $0x380] ss:$8 sps:$4 sm:$0xff]  }
 0x2af   : > { %v1815_v12 = vpop.f32.mrb[52].mxu1  ;;  %6098 = vmatprep.subr.msk.bf16.mxu0 %vm2237_vm3, %v6512_v9 }
 0x2b0   : > { %v1817_v29 = vpop.f32.mrb[53].mxu1 }
 0x2b1   : > { %v1818_v35 = vpop.f32.mrb[54].mxu1  ;;  %v6552_v29 = vld [vmem:[%s8729_s4 + $0x48] sm:$0x1f]  }
 0x2b2   : > { %v2172_v22 = vpack.c.bf16 %v1818_v35, %v1815_v12  ;;  %v1820_v26 = vpop.f32.mrb[55].mxu1  ;;  %v2988_v12 = vsel %vm2237_vm3, %v6539_v20, 0 }
 0x2b3   : > { %v6533_v26 = vld [vmem:[%s8728_s3 + $0x3a4] ss:$8 sps:$4 sm:$0xff]  }
 0x2b4   : > { %2030 = vmatmul.mubr.bf16.gmra.mrb[160].mxu1 %v6504_v34  ;;  %5804 = vmatmul.mubr.msk.bf16.gmra.mrb[92].mxu0 %vm2224_vm4, %v2165_v8 }
 0x2b5   : > { %5809 = vmatprep.mubr.msk.bf16.mxu0 %vm2224_vm4, %v2166_v33  ;;  %5301 = vmatprep.mubr.msk.bf16.mxu1 %vm1408_vm1, %v6506_v17  ;;  %v6532_v17 = vld [vmem:[%s8728_s3 + $0x390] ss:$8 sps:$4 sm:$0xff]  }
 0x2b7   : > { %v1823_v30 = vpop.f32.mrb[56].mxu1 }
 0x2b8   : > { %v1825_v40 = vpop.f32.mrb[57].mxu1 }
 0x2b9   : > { %v1826_v42 = vpop.f32.mrb[58].mxu1 }
 0x2ba   : > { %v2173_v3 = vpack.c.bf16 %v1826_v42, %v1823_v30  ;;  %v1828_v8 = vpop.f32.mrb[59].mxu1 }
 0x2bb   : > { %v6536_v8 = vld [vmem:[%s8728_s3 + $0x3b4] ss:$8 sps:$4 sm:$0xff]  }
 0x2bc   : > { %2038 = vmatmul.mubr.bf16.gmra.mrb[164].mxu1 %v6508_v46  ;;  %5810 = vmatmul.mubr.msk.bf16.vlgmr.msra.gmra.mrb[88].mxu0 %vm2224_vm4, %v2167_v32 }
 0x2bd   : > { %5813 = vmatprep.mubr.msk.bf16.mxu0 %vm2224_vm4, %v2168_v53  ;;  %5302 = vmatprep.mubr.msk.bf16.mxu1 %vm1408_vm1, %v6509_v58  ;;  %v6535_v58 = vld [vmem:[%s8728_s3 + $0x3a0] ss:$8 sps:$4 sm:$0xff]  }
 0x2be   : > { %5818 = vmatpush3.bf16.msra.mxu0 %v2700_v45 }
 0x2bf   : > { %v1831_v27 = vpop.f32.mrb[60].mxu1  ;;  %6099 = vmatprep.subr.msk.bf16.mxu0 %vm2237_vm3, %v6519_v25 }
 0x2c0   : > { %v1833_v33 = vpop.f32.mrb[61].mxu1 }
 0x2c1   : > { %v1834_v49 = vpop.f32.mrb[62].mxu1 }
 0x2c2   : > { %v2174_v52 = vpack.c.bf16 %v1834_v49, %v1831_v27  ;;  %v1836_v54 = vpop.f32.mrb[63].mxu1 }
 0x2c4   : > { %2046 = vmatmul.mubr.bf16.gmra.mrb[168].mxu1 %v6511_v47  ;;  %5814 = vmatmul.mubr.msk.bf16.gmra.mrb[92].mxu0 %vm2224_vm4, %v2169_v5  ;;  %v6538_v47 = vld [vmem:[%s8728_s3 + $0x3b0] ss:$8 sps:$4 sm:$0xff]  }
 0x2c5   : > { %5819 = vmatprep.mubr.msk.bf16.mxu0 %vm2224_vm4, %v2170_v39  ;;  %5303 = vmatprep.mubr.msk.bf16.mxu1 %vm1408_vm1, %v6513_v37  ;;  %v6540_v37 = vld [vmem:[%s8728_s3 + $0x3c4] ss:$8 sps:$4 sm:$0xff]  }
 0x2c7   : > { %v1839_v59 = vpop.f32.mrb[64].mxu1 }
 0x2c8   : > { %v1841_v32 = vpop.f32.mrb[65].mxu1 }
 0x2c9   : > { %v1842_v41 = vpop.f32.mrb[66].mxu1 }
 0x2ca   : > { %v2175_v0 = vpack.c.bf16 %v1842_v41, %v1839_v59  ;;  %v1844_v13 = vpop.f32.mrb[67].mxu1 }
 0x2cc   : > { %2054 = vmatmul.mubr.bf16.gmra.mrb[172].mxu1 %v6515_v38  ;;  %5820 = vmatmul.mubr.msk.bf16.vlgmr.msra.gmra.mrb[88].mxu0 %vm2224_vm4, %v2171_v60  ;;  %v6542_v38 = vld [vmem:[%s8728_s3 + $0x3c0] ss:$8 sps:$4 sm:$0xff]  }
 0x2cd   : > { %5823 = vmatprep.mubr.msk.bf16.mxu0 %vm2224_vm4, %v2172_v22  ;;  %5304 = vmatprep.mubr.msk.bf16.mxu1 %vm1408_vm1, %v6516_v61  ;;  %v6543_v61 = vld [vmem:[%s8728_s3 + $0x3d4] ss:$8 sps:$4 sm:$0xff]  }
 0x2ce   : > { %5828 = vmatpush3.bf16.msra.mxu0 %v2796_v6  ;;  %v3084_v6 = vsel %vm2237_vm3, %v6552_v29, 0 }
 0x2cf   : > { %v1847_v7 = vpop.f32.mrb[68].mxu1  ;;  %6100 = vmatprep.subr.msk.bf16.mxu0 %vm2237_vm3, %v6526_v57  ;;  %v6553_v57 = vld [vmem:[%s8729_s4 + $0x50] sm:$0x1f]  }
 0x2d0   : > { %v1849_v44 = vpop.f32.mrb[69].mxu1 }
 0x2d1   : > { %v1850_v53 = vpop.f32.mrb[70].mxu1 }
 0x2d2   : > { %v2176_v62 = vpack.c.bf16 %v1850_v53, %v1847_v7  ;;  %v1852_v2 = vpop.f32.mrb[71].mxu1 }
 0x2d4   : > { %2062 = vmatmul.mubr.bf16.gmra.mrb[176].mxu1 %v6518_v50  ;;  %5824 = vmatmul.mubr.msk.bf16.gmra.mrb[92].mxu0 %vm2224_vm4, %v2173_v3  ;;  %v6545_v50 = vld [vmem:[%s8728_s3 + $0x3d0] ss:$8 sps:$4 sm:$0xff]  }
 0x2d5   : > { %5829 = vmatprep.mubr.msk.bf16.mxu0 %vm2224_vm4, %v2174_v52  ;;  %5305 = vmatprep.mubr.msk.bf16.mxu1 %vm1408_vm1, %v6520_v56  ;;  %v6546_v56 = vld [vmem:[%s8728_s3 + $0x3e4] ss:$8 sps:$4 sm:$0xff]  }
 0x2d7   : > { %v1855_v10 = vpop.f32.mrb[72].mxu1 }
 0x2d8   : > { %v1857_v14 = vpop.f32.mrb[73].mxu1 }
 0x2d9   : > { %v1858_v5 = vpop.f32.mrb[74].mxu1 }
 0x2da   : > { %v2177_v15 = vpack.c.bf16 %v1858_v5, %v1855_v10  ;;  %v1860_v18 = vpop.f32.mrb[75].mxu1 }
 0x2dc   : > { %2070 = vmatmul.mubr.bf16.gmra.mrb[180].mxu1 %v6522_v16  ;;  %5830 = vmatmul.mubr.msk.bf16.vlgmr.msra.gmra.mrb[88].mxu0 %vm2224_vm4, %v2175_v0  ;;  %v6548_v16 = vld [vmem:[%s8728_s3 + $0x3e0] ss:$8 sps:$4 sm:$0xff]  }
 0x2dd   : > { %5833 = vmatprep.mubr.msk.bf16.mxu0 %vm2224_vm4, %v2176_v62  ;;  %5306 = vmatprep.mubr.msk.bf16.mxu1 %vm1408_vm1, %v6523_v11  ;;  %v6549_v11 = vld [vmem:[%s8728_s3 + $0x3f4] ss:$8 sps:$4 sm:$0xff]  }
 0x2de   : > { %5838 = vmatpush3.bf16.msra.mxu0 %v2892_v19 }
 0x2df   : > { %v1863_v23 = vpop.f32.mrb[76].mxu1  ;;  %6101 = vmatprep.subr.msk.bf16.mxu0 %vm2237_vm3, %v6539_v20 }
 0x2e0   : > { %v1865_v31 = vpop.f32.mrb[77].mxu1 }
 0x2e1   : > { %v1866_v39 = vpop.f32.mrb[78].mxu1 }
 0x2e2   : > { %v2178_v48 = vpack.c.bf16 %v1866_v39, %v1863_v23  ;;  %v1868_v51 = vpop.f32.mrb[79].mxu1  ;;  %v6551_v23 = vld [vmem:[%s8728_s3 + $0x3f0] ss:$8 sps:$4 sm:$0xff]  }
 0x2e4   : > { %2078 = vmatmul.mubr.bf16.gmra.mrb[184].mxu1 %v6525_v36  ;;  %5834 = vmatmul.mubr.msk.bf16.gmra.mrb[92].mxu0 %vm2224_vm4, %v2177_v15 }
 0x2e5   : > { %5839 = vmatprep.mubr.msk.bf16.mxu0 %vm2224_vm4, %v2178_v48  ;;  %5307 = vmatprep.mubr.msk.bf16.mxu1 %vm1408_vm1, %v6527_v43 }
 0x2e7   : > { %v1871_v24 = vpop.f32.mrb[80].mxu1 }
 0x2e8   : > { %v1873_v28 = vpop.f32.mrb[81].mxu1 }
 0x2e9   : > { %v1874_v60 = vpop.f32.mrb[82].mxu1 }
 0x2ea   : > { %v2179_v4 = vpack.c.bf16 %v1874_v60, %v1871_v24  ;;  %v1876_v9 = vpop.f32.mrb[83].mxu1  ;;  %v6554_v60 = vld [vmem:[%s8729_s4 + $0x58] sm:$0x1f]  }
 0x2ec   : > { %2086 = vmatmul.mubr.bf16.gmra.mrb[188].mxu1 %v6529_v55  ;;  %5840 = vmatmul.mubr.msk.bf16.vlgmr.msra.gmra.mrb[88].mxu0 %vm2224_vm4, %v2179_v4  ;;  %v3180_v55 = vsel %vm2237_vm3, %v6553_v57, 0 }
 0x2ed   : > { %5308 = vmatprep.mubr.msk.bf16.mxu1 %vm1408_vm1, %v6530_v63  ;;  %5848 = vmatpush3.bf16.msra.mxu0 %v2988_v12 }
 0x2ee   : > { %6102 = vmatprep.subr.msk.bf16.mxu0 %vm2237_vm3, %v6552_v29 }
 0x2ef   : > { %v1879_v34 = vpop.f32.mrb[84].mxu1 }
 0x2f0   : > { %v1881_v35 = vpop.f32.mrb[85].mxu1 }
 0x2f1   : > { %v1882_v22 = vpop.f32.mrb[86].mxu1 }
 0x2f2   : > { %v2180_v30 = vpack.c.bf16 %v1882_v22, %v1879_v34  ;;  %v1884_v40 = vpop.f32.mrb[87].mxu1 }
 0x2f4   : > { %2094 = vmatmul.mubr.bf16.gmra.mrb[192].mxu1 %v6532_v17  ;;  %5843 = vmatprep.mubr.msk.bf16.mxu0 %vm2224_vm4, %v2180_v30 }
 0x2f5   : > { %5309 = vmatprep.mubr.msk.bf16.mxu1 %vm1408_vm1, %v6533_v26 }
 0x2f7   : > { %v1887_v46 = vpop.f32.mrb[88].mxu1 }
 0x2f8   : > { %v1889_v42 = vpop.f32.mrb[89].mxu1 }
 0x2f9   : > { %v1890_v3 = vpop.f32.mrb[90].mxu1 }
 0x2fa   : > { %v2181_v45 = vpack.c.bf16 %v1890_v3, %v1887_v46  ;;  %v1892_v25 = vpop.f32.mrb[91].mxu1 }
 0x2fc   : > { %2102 = vmatmul.mubr.bf16.gmra.mrb[196].mxu1 %v6535_v58  ;;  %5844 = vmatmul.mubr.msk.bf16.gmra.mrb[92].mxu0 %vm2224_vm4, %v2181_v45 }
 0x2fd   : > { %5310 = vmatprep.mubr.msk.bf16.mxu1 %vm1408_vm1, %v6536_v8 }
 0x2ff   : > { %v1895_v27 = vpop.f32.mrb[92].mxu1 }
 0x300   : > { %v1897_v33 = vpop.f32.mrb[93].mxu1 }
 0x301   : > { %v1898_v49 = vpop.f32.mrb[94].mxu1  ;;  %v3276_v33 = vsel %vm2237_vm3, %v6554_v60, 0 }
 0x302   : > { %v2182_v52 = vpack.c.bf16 %v1898_v49, %v1895_v27  ;;  %v1900_v54 = vpop.f32.mrb[95].mxu1 }
 0x304   : > { %2110 = vmatmul.mubr.bf16.gmra.mrb[200].mxu1 %v6538_v47  ;;  %5849 = vmatprep.mubr.msk.bf16.mxu0 %vm2224_vm4, %v2182_v52  ;;  %v6555_v47 = vld [vmem:[%s8729_s4 + $0x60] sm:$0x1f]  }
 0x305   : > { %5311 = vmatprep.mubr.msk.bf16.mxu1 %vm1408_vm1, %v6540_v37 }
 0x307   : > { %v1903_v59 = vpop.f32.mrb[96].mxu1 }
 0x308   : > { %v1905_v32 = vpop.f32.mrb[97].mxu1 }
 0x309   : > { %v1906_v41 = vpop.f32.mrb[98].mxu1 }
 0x30a   : > { %v2183_v0 = vpack.c.bf16 %v1906_v41, %v1903_v59  ;;  %v1908_v13 = vpop.f32.mrb[99].mxu1 }
 0x30c   : > { %2118 = vmatmul.mubr.bf16.gmra.mrb[204].mxu1 %v6542_v38  ;;  %5850 = vmatmul.mubr.msk.bf16.vlgmr.msra.gmra.mrb[88].mxu0 %vm2224_vm4, %v2183_v0 }
 0x30d   : > { %5312 = vmatprep.mubr.msk.bf16.mxu1 %vm1408_vm1, %v6543_v61  ;;  %5858 = vmatpush3.bf16.msra.mxu0 %v3084_v6 }
 0x30e   : > { %6103 = vmatprep.subr.msk.bf16.mxu0 %vm2237_vm3, %v6553_v57 }
 0x30f   : > { %v1911_v7 = vpop.f32.mrb[100].mxu1 }
 0x310   : > { %v1913_v44 = vpop.f32.mrb[101].mxu1 }
 0x311   : > { %v1914_v53 = vpop.f32.mrb[102].mxu1 }
 0x312   : > { %v2184_v62 = vpack.c.bf16 %v1914_v53, %v1911_v7  ;;  %v1916_v2 = vpop.f32.mrb[103].mxu1 }
 0x314   : > { %2126 = vmatmul.mubr.bf16.gmra.mrb[208].mxu1 %v6545_v50  ;;  %5853 = vmatprep.mubr.msk.bf16.mxu0 %vm2224_vm4, %v2184_v62 }
 0x315   : > { %5313 = vmatprep.mubr.msk.bf16.mxu1 %vm1408_vm1, %v6546_v56 }
 0x317   : > { %v1919_v10 = vpop.f32.mrb[104].mxu1 }
 0x318   : > { %v1921_v14 = vpop.f32.mrb[105].mxu1 }
 0x319   : > { %v1922_v5 = vpop.f32.mrb[106].mxu1  ;;  %v6556_v14 = vld [vmem:[%s8729_s4 + $0x68] sm:$0x1f]  }
 0x31a   : > { %v2185_v15 = vpack.c.bf16 %v1922_v5, %v1919_v10  ;;  %v1924_v18 = vpop.f32.mrb[107].mxu1  ;;  %v3372_v10 = vsel %vm2237_vm3, %v6555_v47, 0 }
 0x31c   : > { %2134 = vmatmul.mubr.bf16.gmra.mrb[212].mxu1 %v6548_v16  ;;  %5854 = vmatmul.mubr.msk.bf16.gmra.mrb[92].mxu0 %vm2224_vm4, %v2185_v15 }
 0x31d   : > { %5314 = vmatprep.mubr.msk.bf16.mxu1 %vm1408_vm1, %v6549_v11 }
 0x31f   : > { %v1927_v19 = vpop.f32.mrb[108].mxu1 }
 0x320   : > { %v1929_v20 = vpop.f32.mrb[109].mxu1 }
 0x321   : > { %v1930_v31 = vpop.f32.mrb[110].mxu1 }
 0x322   : > { %v2186_v36 = vpack.c.bf16 %v1930_v31, %v1927_v19  ;;  %v1932_v39 = vpop.f32.mrb[111].mxu1 }
 0x324   : > { %2142 = vmatmul.mubr.bf16.gmra.mrb[216].mxu1 %v6551_v23  ;;  %5859 = vmatprep.mubr.msk.bf16.mxu0 %vm2224_vm4, %v2186_v36 }
 0x327   : > { %v1935_v43 = vpop.f32.mrb[112].mxu1 }
 0x328   : > { %v1937_v48 = vpop.f32.mrb[113].mxu1 }
 0x329   : > { %v1938_v51 = vpop.f32.mrb[114].mxu1 }
 0x32a   : > { %v2187_v24 = vpack.c.bf16 %v1938_v51, %v1935_v43  ;;  %v1940_v28 = vpop.f32.mrb[115].mxu1 }
 0x32c   : > { %5860 = vmatmul.mubr.msk.bf16.vlgmr.msra.gmra.mrb[88].mxu0 %vm2224_vm4, %v2187_v24 }
 0x32d   : > { %5868 = vmatpush3.bf16.msra.mxu0 %v3180_v55 }
 0x32e   : > { %6104 = vmatprep.subr.msk.bf16.mxu0 %vm2237_vm3, %v6554_v60 }
 0x32f   : > { %v1943_v63 = vpop.f32.mrb[116].mxu1 }
 0x330   : > { %v1945_v4 = vpop.f32.mrb[117].mxu1 }
 0x331   : > { %v1946_v9 = vpop.f32.mrb[118].mxu1 }
 0x332   : > { %v2188_v12 = vpack.c.bf16 %v1946_v9, %v1943_v63  ;;  %v1948_v29 = vpop.f32.mrb[119].mxu1  ;;  %v3468_v9 = vsel %vm2237_vm3, %v6556_v14, 0 }
 0x334   : > { %5863 = vmatprep.mubr.msk.bf16.mxu0 %vm2224_vm4, %v2188_v12  ;;  %v6557_v12 = vld [vmem:[%s8729_s4 + $0x70] sm:$0x1f]  }
 0x337   : > { %v1951_v34 = vpop.f32.mrb[120].mxu1 }
 0x338   : > { %v1953_v35 = vpop.f32.mrb[121].mxu1 }
 0x339   : > { %v1954_v17 = vpop.f32.mrb[122].mxu1 }
 0x33a   : > { %v2189_v22 = vpack.c.bf16 %v1954_v17, %v1951_v34  ;;  %v1956_v26 = vpop.f32.mrb[123].mxu1 }
 0x33c   : > { %5864 = vmatmul.mubr.msk.bf16.gmra.mrb[92].mxu0 %vm2224_vm4, %v2189_v22 }
 0x33f   : > { %v1959_v30 = vpop.f32.mrb[124].mxu1 }
 0x340   : > { %v1961_v40 = vpop.f32.mrb[125].mxu1 }
 0x341   : > { %v1962_v46 = vpop.f32.mrb[126].mxu1 }
 0x342   : > { %v2190_v42 = vpack.c.bf16 %v1962_v46, %v1959_v30  ;;  %v1964_v58 = vpop.f32.mrb[127].mxu1 }
 0x344   : > { %5869 = vmatprep.mubr.msk.bf16.mxu0 %vm2224_vm4, %v2190_v42 }
 0x347   : > { %v1967_v3 = vpop.f32.mrb[128].mxu1 }
 0x348   : > { %v1969_v8 = vpop.f32.mrb[129].mxu1 }
 0x349   : > { %v1970_v45 = vpop.f32.mrb[130].mxu1 }
 0x34a   : > { %v2191_v25 = vpack.c.bf16 %v1970_v45, %v1967_v3  ;;  %v1972_v27 = vpop.f32.mrb[131].mxu1 }
 0x34c   : > { %5870 = vmatmul.mubr.msk.bf16.vlgmr.msra.gmra.mrb[88].mxu0 %vm2224_vm4, %v2191_v25 }
 0x34d   : > { %5878 = vmatpush3.bf16.msra.mxu0 %v3276_v33 }
 0x34e   : > { %6105 = vmatprep.subr.msk.bf16.mxu0 %vm2237_vm3, %v6555_v47 }
 0x34f   : > { %v1975_v49 = vpop.f32.mrb[132].mxu1 }
 0x350   : > { %v1977_v37 = vpop.f32.mrb[133].mxu1 }
 0x351   : > { %v1978_v52 = vpop.f32.mrb[134].mxu1 }
 0x352   : > { %v2192_v54 = vpack.c.bf16 %v1978_v52, %v1975_v49  ;;  %v1980_v59 = vpop.f32.mrb[135].mxu1  ;;  %v3564_v52 = vsel %vm2237_vm3, %v6557_v12, 0 }
 0x354   : > { %5873 = vmatprep.mubr.msk.bf16.mxu0 %vm2224_vm4, %v2192_v54  ;;  %v6558_v54 = vld [vmem:[%s8729_s4 + $0x78] sm:$0x1f]  }
 0x357   : > { %v1983_v32 = vpop.f32.mrb[136].mxu1 }
 0x358   : > { %v1985_v38 = vpop.f32.mrb[137].mxu1 }
 0x359   : > { %v1986_v41 = vpop.f32.mrb[138].mxu1 }
 0x35a   : > { %v2193_v61 = vpack.c.bf16 %v1986_v41, %v1983_v32  ;;  %v1988_v0 = vpop.f32.mrb[139].mxu1 }
 0x35c   : > { %5874 = vmatmul.mubr.msk.bf16.gmra.mrb[92].mxu0 %vm2224_vm4, %v2193_v61 }
 0x35f   : > { %v1991_v13 = vpop.f32.mrb[140].mxu1 }
 0x360   : > { %v1993_v6 = vpop.f32.mrb[141].mxu1 }
 0x361   : > { %v1994_v57 = vpop.f32.mrb[142].mxu1 }
 0x362   : > { %v2194_v7 = vpack.c.bf16 %v1994_v57, %v1991_v13  ;;  %v1996_v44 = vpop.f32.mrb[143].mxu1 }
 0x364   : > { %5879 = vmatprep.mubr.msk.bf16.mxu0 %vm2224_vm4, %v2194_v7 }
 0x367   : > { %v1999_v50 = vpop.f32.mrb[144].mxu1 }
 0x368   : > { %v2001_v53 = vpop.f32.mrb[145].mxu1 }
 0x369   : > { %v2002_v56 = vpop.f32.mrb[146].mxu1 }
 0x36a   : > { %v2195_v62 = vpack.c.bf16 %v2002_v56, %v1999_v50  ;;  %v2004_v2 = vpop.f32.mrb[147].mxu1 }
 0x36c   : > { %5880 = vmatmul.mubr.msk.bf16.vlgmr.msra.gmra.mrb[88].mxu0 %vm2224_vm4, %v2195_v62 }
 0x36d   : > { %5888 = vmatpush3.bf16.msra.mxu0 %v3372_v10 }
 0x36e   : > { %6106 = vmatprep.subr.msk.bf16.mxu0 %vm2237_vm3, %v6556_v14 }
 0x36f   : > { %v2007_v16 = vpop.f32.mrb[148].mxu1 }
 0x370   : > { %v2009_v5 = vpop.f32.mrb[149].mxu1 }
 0x371   : > { %v2010_v11 = vpop.f32.mrb[150].mxu1 }
 0x372   : > { %v2196_v15 = vpack.c.bf16 %v2010_v11, %v2007_v16  ;;  %v2012_v18 = vpop.f32.mrb[151].mxu1  ;;  %v3660_v11 = vsel %vm2237_vm3, %v6558_v54, 0 }
 0x374   : > { %5883 = vmatprep.mubr.msk.bf16.mxu0 %vm2224_vm4, %v2196_v15 }
 0x377   : > { %v2015_v19 = vpop.f32.mrb[152].mxu1 }
 0x378   : > { %v2017_v20 = vpop.f32.mrb[153].mxu1 }
 0x379   : > { %v2018_v23 = vpop.f32.mrb[154].mxu1 }
 0x37a   : > { %v2197_v31 = vpack.c.bf16 %v2018_v23, %v2015_v19  ;;  %v2020_v36 = vpop.f32.mrb[155].mxu1 }
 0x37c   : > { %5884 = vmatmul.mubr.msk.bf16.gmra.mrb[92].mxu0 %vm2224_vm4, %v2197_v31 }
 0x37f   : > { %v2023_v39 = vpop.f32.mrb[156].mxu1 }
 0x380   : > { %v2025_v43 = vpop.f32.mrb[157].mxu1 }
 0x381   : > { %v2026_v48 = vpop.f32.mrb[158].mxu1 }
 0x382   : > { %v2198_v51 = vpack.c.bf16 %v2026_v48, %v2023_v39  ;;  %v2028_v24 = vpop.f32.mrb[159].mxu1 }
 0x384   : > { %5889 = vmatprep.mubr.msk.bf16.mxu0 %vm2224_vm4, %v2198_v51 }
 0x387   : > { %v2031_v28 = vpop.f32.mrb[160].mxu1 }
 0x388   : > { %v2033_v55 = vpop.f32.mrb[161].mxu1 }
 0x389   : > { %v2034_v60 = vpop.f32.mrb[162].mxu1 }
 0x38a   : > { %v2199_v63 = vpack.c.bf16 %v2034_v60, %v2031_v28  ;;  %v2036_v4 = vpop.f32.mrb[163].mxu1 }
 0x38c   : > { %5890 = vmatmul.mubr.msk.bf16.vlgmr.msra.gmra.mrb[88].mxu0 %vm2224_vm4, %v2199_v63 }
 0x38d   : > { %5898 = vmatpush3.bf16.msra.mxu0 %v3468_v9 }
 0x38e   : > { %6107 = vmatprep.subr.msk.bf16.mxu0 %vm2237_vm3, %v6557_v12 }
 0x38f   : > { %v2039_v29 = vpop.f32.mrb[164].mxu1 }
 0x390   : > { %v2041_v34 = vpop.f32.mrb[165].mxu1 }
 0x391   : > { %v2042_v35 = vpop.f32.mrb[166].mxu1 }
 0x392   : > { %v2200_v17 = vpack.c.bf16 %v2042_v35, %v2039_v29  ;;  %v2044_v22 = vpop.f32.mrb[167].mxu1 }
 0x394   : > { %5893 = vmatprep.mubr.msk.bf16.mxu0 %vm2224_vm4, %v2200_v17 }
 0x397   : > { %v2047_v26 = vpop.f32.mrb[168].mxu1 }
 0x398   : > { %v2049_v30 = vpop.f32.mrb[169].mxu1 }
 0x399   : > { %v2050_v40 = vpop.f32.mrb[170].mxu1 }
 0x39a   : > { %v2201_v46 = vpack.c.bf16 %v2050_v40, %v2047_v26  ;;  %v2052_v42 = vpop.f32.mrb[171].mxu1 }
 0x39c   : > { %5894 = vmatmul.mubr.msk.bf16.gmra.mrb[92].mxu0 %vm2224_vm4, %v2201_v46 }
 0x39f   : > { %v2055_v58 = vpop.f32.mrb[172].mxu1 }
 0x3a0   : > { %v2057_v3 = vpop.f32.mrb[173].mxu1 }
 0x3a1   : > { %v2058_v8 = vpop.f32.mrb[174].mxu1  ;;  %v8766_v3 = vmov 11  }
 0x3a2   : > { %v2202_v45 = vpack.c.bf16 %v2058_v8, %v2055_v58  ;;  %v2060_v25 = vpop.f32.mrb[175].mxu1  ;;  %6182 = vset.pattern.permute.xlu0 %v8766_v3  ;;  %v5425_v8 = vld [vmem:[%s8730_s5] ss:$0 sm:$0xff] }
 0x3a4   : > { %5899 = vmatprep.mubr.msk.bf16.mxu0 %vm2224_vm4, %v2202_v45 }
 0x3a7   : > { %v2063_v27 = vpop.f32.mrb[176].mxu1 }
 0x3a8   : > { %v2065_v33 = vpop.f32.mrb[177].mxu1 }
 0x3a9   : > { %v2066_v47 = vpop.f32.mrb[178].mxu1 }
 0x3aa   : > { %v2203_v49 = vpack.c.bf16 %v2066_v47, %v2063_v27  ;;  %v2068_v37 = vpop.f32.mrb[179].mxu1 }
 0x3ac   : > { %5900 = vmatmul.mubr.msk.bf16.vlgmr.msra.gmra.mrb[88].mxu0 %vm2224_vm4, %v2203_v49 }
 0x3ad   : > { %5908 = vmatpush3.bf16.msra.mxu0 %v3564_v52 }
 0x3ae   : > { %6108 = vmatprep.subr.msk.bf16.mxu0 %vm2237_vm3, %v6558_v54  ;;  %v8762_v54 = vmov 15  }
 0x3af   : > { %v2071_v59 = vpop.f32.mrb[180].mxu1 }
 0x3b0   : > { %v2073_v32 = vpop.f32.mrb[181].mxu1 }
 0x3b1   : > { %v2074_v38 = vpop.f32.mrb[182].mxu1 }
 0x3b2   : > { %v2204_v41 = vpack.c.bf16 %v2074_v38, %v2071_v59  ;;  %v2076_v61 = vpop.f32.mrb[183].mxu1  ;;  %v6636_v59 = vmov 1   ;;  %v8754_v38 = vmov 18  }
 0x3b4   : > { %5903 = vmatprep.mubr.msk.bf16.mxu0 %vm2224_vm4, %v2204_v41  ;;  %v8744_v41 = vmov 2  }
 0x3b7   : > { %v2079_v0 = vpop.f32.mrb[184].mxu1 }
 0x3b8   : > { %v2081_v13 = vpop.f32.mrb[185].mxu1 }
 0x3b9   : > { %v2082_v6 = vpop.f32.mrb[186].mxu1 }
 0x3ba   : > { %v2205_v57 = vpack.c.bf16 %v2082_v6, %v2079_v0  ;;  %v2084_v7 = vpop.f32.mrb[187].mxu1 }
 0x3bc   : > { %5904 = vmatmul.mubr.msk.bf16.gmra.mrb[92].mxu0 %vm2224_vm4, %v2205_v57 }
 0x3bf   : > { %v2087_v44 = vpop.f32.mrb[188].mxu1 }
 0x3c0   : > { %v2089_v50 = vpop.f32.mrb[189].mxu1 }
 0x3c1   : > { %v2090_v53 = vpop.f32.mrb[190].mxu1  ;;  %v8769_v50 = vmov 3  }
 0x3c2   : > { %v2206_v56 = vpack.c.bf16 %v2090_v53, %v2087_v44  ;;  %v2092_v62 = vpop.f32.mrb[191].mxu1 }
 0x3c3   : > { %v8742_v62 = vmov 4  }
 0x3c4   : > { %5909 = vmatprep.mubr.msk.bf16.mxu0 %vm2224_vm4, %v2206_v56 }
 0x3c7   : > { %v2095_v2 = vpop.f32.mrb[192].mxu1 }
 0x3c8   : > { %v2097_v10 = vpop.f32.mrb[193].mxu1 }
 0x3c9   : > { %v2098_v14 = vpop.f32.mrb[194].mxu1  ;;  %v8740_v10 = vmov 6  }
 0x3ca   : > { %v2207_v16 = vpack.c.bf16 %v2098_v14, %v2095_v2  ;;  %v2100_v5 = vpop.f32.mrb[195].mxu1  ;;  %v8758_v2 = vmov 5   ;;  %v8760_v14 = vmov 7  }
 0x3cb   : > { %v8767_v5 = vmov 9  }
 0x3cc   : > { %5910 = vmatmul.mubr.msk.bf16.vlgmr.msra.gmra.mrb[88].mxu0 %vm2224_vm4, %v2207_v16  ;;  %v8738_v16 = vmov 8  }
 0x3cd   : > { %5918 = vmatpush3.bf16.msra.mxu0 %v3660_v11  ;;  %v8750_v11 = vmov 10  }
 0x3ce   : > { %5927 = vmatprep.subr.bf16.mxu0 %v8736_v1 }
 0x3cf   : > { %v2103_v15 = vpop.f32.mrb[196].mxu1 }
 0x3d0   : > { %v2105_v18 = vpop.f32.mrb[197].mxu1 }
 0x3d1   : > { %v2106_v19 = vpop.f32.mrb[198].mxu1  ;;  %v8765_v18 = vmov 14  }
 0x3d2   : > { %v2208_v20 = vpack.c.bf16 %v2106_v19, %v2103_v15  ;;  %v2108_v23 = vpop.f32.mrb[199].mxu1  ;;  %v8770_v15 = vmov 12   ;;  %v8748_v19 = vmov 13  }
 0x3d4   : > { %5913 = vmatprep.mubr.msk.bf16.mxu0 %vm2224_vm4, %v2208_v20  ;;  %v8764_v20 = vmov 17  }
 0x3d7   : > { %v2111_v31 = vpop.f32.mrb[200].mxu1 }
 0x3d8   : > { %v2113_v36 = vpop.f32.mrb[201].mxu1 }
 0x3d9   : > { %v2114_v39 = vpop.f32.mrb[202].mxu1  ;;  %v8752_v36 = vmov 19  }
 0x3da   : > { %v2209_v43 = vpack.c.bf16 %v2114_v39, %v2111_v31  ;;  %v2116_v48 = vpop.f32.mrb[203].mxu1  ;;  %v8756_v31 = vmov 16  }
 0x3dc   : > { %5914 = vmatmul.mubr.msk.bf16.gmra.mrb[92].mxu0 %vm2224_vm4, %v2209_v43 }
 0x3df   : > { %v2119_v51 = vpop.f32.mrb[204].mxu1 }
 0x3e0   : > { %v2121_v24 = vpop.f32.mrb[205].mxu1 }
 0x3e1   : > { %v2122_v28 = vpop.f32.mrb[206].mxu1 }
 0x3e2   : > { %v2210_v55 = vpack.c.bf16 %v2122_v28, %v2119_v51  ;;  %v2124_v60 = vpop.f32.mrb[207].mxu1 }
 0x3e4   : > { %5919 = vmatprep.mubr.msk.bf16.mxu0 %vm2224_vm4, %v2210_v55 }
 0x3e7   : > { %v2127_v63 = vpop.f32.mrb[208].mxu1 }
 0x3e8   : > { %v2129_v4 = vpop.f32.mrb[209].mxu1 }
 0x3e9   : > { %v2130_v9 = vpop.f32.mrb[210].mxu1 }
 0x3ea   : > { %v2211_v12 = vpack.c.bf16 %v2130_v9, %v2127_v63  ;;  %v2132_v29 = vpop.f32.mrb[211].mxu1 }
 0x3ec   : > { %5920 = vmatmul.mubr.msk.bf16.vlgmr.msra.gmra.mrb[88].mxu0 %vm2224_vm4, %v2211_v12 }
 0x3ef   : > { %v2135_v34 = vpop.f32.mrb[212].mxu1 }
 0x3f0   : > { %v2137_v35 = vpop.f32.mrb[213].mxu1 }
 0x3f1   : > { %v2138_v17 = vpop.f32.mrb[214].mxu1 }
 0x3f2   : > { %v2212_v22 = vpack.c.bf16 %v2138_v17, %v2135_v34  ;;  %v2140_v26 = vpop.f32.mrb[215].mxu1 }
 0x3f4   : > { %5923 = vmatprep.mubr.msk.bf16.mxu0 %vm2224_vm4, %v2212_v22 }
 0x3f7   : > { %v2143_v30 = vpop.f32.mrb[216].mxu1 }
 0x3f8   : > { %v2145_v40 = vpop.f32.mrb[217].mxu1 }
 0x3f9   : > { %v2146_v46 = vpop.f32.mrb[218].mxu1 }
 0x3fa   : > { %v2213_v42 = vpack.c.bf16 %v2146_v46, %v2143_v30  ;;  %v2148_v58 = vpop.f32.mrb[219].mxu1 }
 0x3fc   : > { %5924 = vmatmul.mubr.msk.bf16.gmra.mrb[92].mxu0 %vm2224_vm4, %v2213_v42 }
 0x3fd   : > { %5943 = vmatprep.mubr.msk.bf16.mxu0 %vm6632_vm0, %v8736_v1 }
 0x4bf   : > { %v5921_v45 = vpop.f32.mrb[88].mxu0 }
 0x4c0   : > { %v3744_v25 = vadd.f32 %v5921_v45, %v5425_v8  ;;  %v3696_v27 = vpop.f32.mrb[89].mxu0 }
 0x4c1   : > { %v5922_v33 = vpop.f32.mrb[90].mxu0  ;;  %v3742_v32 = vadd.f32 %v5425_v8, %v3696_v27 }
 0x4c2   : > { %v7636_v47 = vmax.f32 %v3744_v25, 0.0  ;;  %v7638_v49 = vadd.f32 %v5922_v33, %v5425_v8  ;;  %v3699_v37 = vpop.f32.mrb[91].mxu0 }
 0x4c3   : > { %v7640_v52 = vadd.f32 %v5425_v8, %v3699_v37  ;;  %v7654_v6 = vmax.f32 %v3742_v32, 0.0 }
 0x4c4   : > { %4410 = vperm.xlu0 %6182, %v7636_v47   ;;  %3778 = vperm.xlu1 %6171, %v7636_v47   ;;  %v7703_v23 = vmax.f32 %v7638_v49, 0.0 }
 0x4c5   : > { %v7738_v39 = vmax.f32 %v7640_v52, 0.0 }
 0x4c8   : > { %6186 = vset.pattern.permute.xlu0 %v8762_v54  ;;  %6172 = vset.pattern.permute.xlu1 %v6636_v59 }
 0x4c9   : > { %4638 = vperm.xlu0 %6186, %v7636_v47   ;;  %3840 = vperm.xlu1 %6172, %v7636_v47  }
 0x4cd   : > { %6189 = vset.pattern.permute.xlu0 %v8754_v38  ;;  %6173 = vset.pattern.permute.xlu1 %v8744_v41 }
 0x4ce   : > { %4809 = vperm.xlu0 %6189, %v7636_v47   ;;  %3897 = vperm.xlu1 %6173, %v7636_v47  }
 0x4cf   : > { %v5925_v61 = vpop.f32.mrb[92].mxu0 }
 0x4d0   : > { %v7652_v0 = vadd.f32 %v5925_v61, %v5425_v8  ;;  %v3712_v13 = vpop.f32.mrb[93].mxu0 }
 0x4d1   : > { %v7656_v57 = vadd.f32 %v5425_v8, %v3712_v13  ;;  %v5926_v7 = vpop.f32.mrb[94].mxu0 }
 0x4d2   : > { %v7658_v44 = vadd.f32 %v5926_v7, %v5425_v8  ;;  %6191 = vset.pattern.permute.xlu0 %v8746_v21  ;;  %6174 = vset.pattern.permute.xlu1 %v8769_v50  ;;  %v3715_v53 = vpop.f32.mrb[95].mxu0  ;;  %v7787_v55 = vmax.f32 %v7652_v0, 0.0 }
 0x4d3   : > { %v7662_v56 = vadd.f32 %v5425_v8, %v3715_v53  ;;  %3954 = vperm.xlu1 %6174, %v7636_v47   ;;  %3768 = vperm.xlu0 %6191, %v7654_v6   ;;  %v7842_v26 = vmax.f32 %v7656_v57, 0.0 }
 0x4d4   : > { %8777 = vst [vmem:[#allocation5_spill] sm:$0xff] %v7787_v55  ;;  %v7915_v13 = vmax.f32 %v7658_v44, 0.0 }
 0x4d7   : > { %6175 = vset.pattern.permute.xlu1 %v8742_v62  ;;  %6192 = vset.pattern.permute.xlu0 %v6636_v59 }
 0x4d8   : > { %4011 = vperm.xlu1 %6175, %v7636_v47   ;;  %3832 = vperm.xlu0 %6192, %v7654_v6  }
 0x4dc   : > { %6176 = vset.pattern.permute.xlu1 %v8758_v2  ;;  %6194 = vset.pattern.permute.xlu0 %v8769_v50 }
 0x4dd   : > { %4068 = vperm.xlu1 %6176, %v7636_v47   ;;  %3946 = vperm.xlu0 %6194, %v7654_v6  }
 0x4e1   : > { %6177 = vset.pattern.permute.xlu1 %v8740_v10  ;;  %6196 = vset.pattern.permute.xlu0 %v8758_v2 }
 0x4e2   : > { %4125 = vperm.xlu1 %6177, %v7636_v47   ;;  %4060 = vperm.xlu0 %6196, %v7654_v6  }
 0x4e6   : > { %6178 = vset.pattern.permute.xlu1 %v8760_v14  ;;  %6198 = vset.pattern.permute.xlu0 %v8760_v14 }
 0x4e7   : > { %4182 = vperm.xlu1 %6178, %v7636_v47   ;;  %4174 = vperm.xlu0 %6198, %v7654_v6  }
 0x4eb   : > { %6179 = vset.pattern.permute.xlu1 %v8738_v16  ;;  %6200 = vset.pattern.permute.xlu0 %v8767_v5 }
 0x4ec   : > { %4239 = vperm.xlu1 %6179, %v7636_v47   ;;  %4288 = vperm.xlu0 %6200, %v7654_v6  }
 0x4f0   : > { %6180 = vset.pattern.permute.xlu1 %v8767_v5  ;;  %6201 = vset.pattern.permute.xlu0 %v8750_v11 }
 0x4f1   : > { %4296 = vperm.xlu1 %6180, %v7636_v47   ;;  %4345 = vperm.xlu0 %6201, %v7654_v6  }
 0x4f5   : > { %6181 = vset.pattern.permute.xlu1 %v8750_v11  ;;  %6202 = vset.pattern.permute.xlu0 %v8766_v3 }
 0x4f6   : > { %4353 = vperm.xlu1 %6181, %v7636_v47   ;;  %4402 = vperm.xlu0 %6202, %v7654_v6  }
 0x4fa   : > { %6183 = vset.pattern.permute.xlu1 %v8770_v15  ;;  %6205 = vset.pattern.permute.xlu0 %v8765_v18 }
 0x4fb   : > { %4467 = vperm.xlu1 %6183, %v7636_v47   ;;  %4573 = vperm.xlu0 %6205, %v7654_v6  }
 0x4ff   : > { %6184 = vset.pattern.permute.xlu1 %v8748_v19  ;;  %6208 = vset.pattern.permute.xlu0 %v8764_v20 }
 0x500   : > { %4524 = vperm.xlu1 %6184, %v7636_v47   ;;  %4744 = vperm.xlu0 %6208, %v7654_v6  }
 0x504   : > { %6185 = vset.pattern.permute.xlu1 %v8765_v18  ;;  %6212 = vset.pattern.permute.xlu0 %v6636_v59 }
 0x505   : > { %4581 = vperm.xlu1 %6185, %v7636_v47   ;;  %3844 = vperm.xlu0 %6212, %v7703_v23  }
 0x509   : > { %6187 = vset.pattern.permute.xlu1 %v8756_v31  ;;  %6214 = vset.pattern.permute.xlu0 %v8769_v50 }
 0x50a   : > { %4695 = vperm.xlu1 %6187, %v7636_v47   ;;  %3958 = vperm.xlu0 %6214, %v7703_v23  }
 0x50e   : > { %6188 = vset.pattern.permute.xlu1 %v8764_v20  ;;  %6216 = vset.pattern.permute.xlu0 %v8758_v2 }
 0x50f   : > { %4752 = vperm.xlu1 %6188, %v7636_v47   ;;  %4072 = vperm.xlu0 %6216, %v7703_v23  }
 0x513   : > { %6190 = vset.pattern.permute.xlu1 %v8752_v36  ;;  %6218 = vset.pattern.permute.xlu0 %v8760_v14 }
 0x514   : > { %4866 = vperm.xlu1 %6190, %v7636_v47   ;;  %4186 = vperm.xlu0 %6218, %v7703_v23  }
 0x518   : > { %6193 = vset.pattern.permute.xlu1 %v8744_v41  ;;  %6220 = vset.pattern.permute.xlu0 %v8767_v5 }
 0x519   : > { %3889 = vperm.xlu1 %6193, %v7654_v6   ;;  %4300 = vperm.xlu0 %6220, %v7703_v23  }
 0x51d   : > { %6195 = vset.pattern.permute.xlu1 %v8742_v62  ;;  %6222 = vset.pattern.permute.xlu0 %v8766_v3 }
 0x51e   : > { %4003 = vperm.xlu1 %6195, %v7654_v6   ;;  %4414 = vperm.xlu0 %6222, %v7703_v23  }
 0x522   : > { %6197 = vset.pattern.permute.xlu1 %v8740_v10  ;;  %6224 = vset.pattern.permute.xlu0 %v8748_v19 }
 0x523   : > { %4117 = vperm.xlu1 %6197, %v7654_v6   ;;  %4528 = vperm.xlu0 %6224, %v7703_v23  }
 0x527   : > { %6199 = vset.pattern.permute.xlu1 %v8738_v16  ;;  %6227 = vset.pattern.permute.xlu0 %v8756_v31 }
 0x528   : > { %4231 = vperm.xlu1 %6199, %v7654_v6   ;;  %4699 = vperm.xlu0 %6227, %v7703_v23  }
 0x52c   : > { %6203 = vset.pattern.permute.xlu1 %v8770_v15  ;;  %6231 = vset.pattern.permute.xlu0 %v8746_v21 }
 0x52d   : > { %4459 = vperm.xlu1 %6203, %v7654_v6   ;;  %3773 = vperm.xlu0 %6231, %v7738_v39  }
 0x531   : > { %6204 = vset.pattern.permute.xlu1 %v8748_v19  ;;  %6233 = vset.pattern.permute.xlu0 %v8744_v41 }
 0x532   : > { %4516 = vperm.xlu1 %6204, %v7654_v6   ;;  %3893 = vperm.xlu0 %6233, %v7738_v39  }
 0x536   : > { %6206 = vset.pattern.permute.xlu1 %v8762_v54  ;;  %6235 = vset.pattern.permute.xlu0 %v8742_v62 }
 0x537   : > { %4630 = vperm.xlu1 %6206, %v7654_v6   ;;  %4007 = vperm.xlu0 %6235, %v7738_v39  }
 0x53b   : > { %6207 = vset.pattern.permute.xlu1 %v8756_v31  ;;  %6237 = vset.pattern.permute.xlu0 %v8740_v10 }
 0x53c   : > { %4687 = vperm.xlu1 %6207, %v7654_v6   ;;  %4121 = vperm.xlu0 %6237, %v7738_v39  }
 0x540   : > { %6209 = vset.pattern.permute.xlu1 %v8754_v38  ;;  %6239 = vset.pattern.permute.xlu0 %v8738_v16 }
 0x541   : > { %4801 = vperm.xlu1 %6209, %v7654_v6   ;;  %4235 = vperm.xlu0 %6239, %v7738_v39  }
 0x543   : > { %v7760_v43 = vpop.permute.xlu1 %3778  ;;  %v7825_v34 = vpop.permute.xlu0 %4410 }
 0x545   : > { %6210 = vset.pattern.permute.xlu1 %v8752_v36  ;;  %6243 = vset.pattern.permute.xlu0 %v8770_v15 }
 0x546   : > { %4858 = vperm.xlu1 %6210, %v7654_v6   ;;  %4463 = vperm.xlu0 %6243, %v7738_v39  }
 0x548   : > { %v7766_v48 = vpop.permute.xlu1 %3840  ;;  %v7833_v17 = vpop.permute.xlu0 %4638 }
 0x54a   : > { %6211 = vset.pattern.permute.xlu1 %v8746_v21  ;;  %6244 = vset.pattern.permute.xlu0 %v8748_v19 }
 0x54b   : > { %3783 = vperm.xlu1 %6211, %v7703_v23   ;;  %4520 = vperm.xlu0 %6244, %v7738_v39  }
 0x54d   : > { %v7772_v51 = vpop.permute.xlu1 %3897  ;;  %v7846_v30 = vpop.permute.xlu0 %4809 }
 0x54f   : > { %6213 = vset.pattern.permute.xlu1 %v8744_v41  ;;  %6246 = vset.pattern.permute.xlu0 %v8762_v54 }
 0x550   : > { %3901 = vperm.xlu1 %6213, %v7703_v23   ;;  %4634 = vperm.xlu0 %6246, %v7738_v39  }
 0x552   : > { %v7778_v24 = vpop.permute.xlu1 %3954  ;;  %v7856_v46 = vpop.permute.xlu0 %3768 }
 0x554   : > { %6215 = vset.pattern.permute.xlu1 %v8742_v62  ;;  %6249 = vset.pattern.permute.xlu0 %v8754_v38 }
 0x555   : > { %4015 = vperm.xlu1 %6215, %v7703_v23   ;;  %4805 = vperm.xlu0 %6249, %v7738_v39  }
 0x557   : > { %v7784_v28 = vpop.permute.xlu1 %4011  ;;  %v7864_v58 = vpop.permute.xlu0 %3832 }
 0x559   : > { %6217 = vset.pattern.permute.xlu1 %v8740_v10  ;;  %6251 = vset.pattern.permute.xlu0 %v8746_v21 }
 0x55a   : > { %4129 = vperm.xlu1 %6217, %v7703_v23   ;;  %3798 = vperm.xlu0 %6251, %v7787_v55  }
 0x55c   : > { %v7793_v60 = vpop.permute.xlu1 %4068  ;;  %v7874_v25 = vpop.permute.xlu0 %3946 }
 0x55e   : > { %6219 = vset.pattern.permute.xlu1 %v8738_v16  ;;  %6253 = vset.pattern.permute.xlu0 %v8744_v41 }
 0x55f   : > { %4243 = vperm.xlu1 %6219, %v7703_v23   ;;  %3913 = vperm.xlu0 %6253, %v7787_v55  }
 0x561   : > { %v7799_v63 = vpop.permute.xlu1 %4125  ;;  %v7882_v33 = vpop.permute.xlu0 %4060 }
 0x563   : > { %6221 = vset.pattern.permute.xlu1 %v8750_v11  ;;  %6255 = vset.pattern.permute.xlu0 %v8742_v62 }
 0x564   : > { %4357 = vperm.xlu1 %6221, %v7703_v23   ;;  %4027 = vperm.xlu0 %6255, %v7787_v55  }
 0x566   : > { %v7805_v4 = vpop.permute.xlu1 %4182  ;;  %v7892_v49 = vpop.permute.xlu0 %4174 }
 0x568   : > { %6223 = vset.pattern.permute.xlu1 %v8770_v15  ;;  %6257 = vset.pattern.permute.xlu0 %v8740_v10 }
 0x569   : > { %4471 = vperm.xlu1 %6223, %v7703_v23   ;;  %4141 = vperm.xlu0 %6257, %v7787_v55  }
 0x56b   : > { %v7811_v9 = vpop.permute.xlu1 %4239  ;;  %v7902_v52 = vpop.permute.xlu0 %4288 }
 0x56d   : > { %6225 = vset.pattern.permute.xlu1 %v8765_v18  ;;  %6259 = vset.pattern.permute.xlu0 %v8738_v16 }
 0x56e   : > { %4585 = vperm.xlu1 %6225, %v7703_v23   ;;  %4255 = vperm.xlu0 %6259, %v7787_v55  }
 0x570   : > { %v7817_v12 = vpop.permute.xlu1 %4296  ;;  %v7910_v61 = vpop.permute.xlu0 %4345 }
 0x572   : > { %6226 = vset.pattern.permute.xlu1 %v8762_v54  ;;  %6261 = vset.pattern.permute.xlu0 %v8750_v11 }
 0x573   : > { %4642 = vperm.xlu1 %6226, %v7703_v23   ;;  %4369 = vperm.xlu0 %6261, %v7787_v55  }
 0x575   : > { %v7823_v29 = vpop.permute.xlu1 %4353  ;;  %v7923_v57 = vpop.permute.xlu0 %4402 }
 0x577   : > { %6228 = vset.pattern.permute.xlu1 %v8764_v20  ;;  %6264 = vset.pattern.permute.xlu0 %v8748_v19 }
 0x578   : > { %4756 = vperm.xlu1 %6228, %v7703_v23   ;;  %4540 = vperm.xlu0 %6264, %v7787_v55  }
 0x57a   : > { %v7831_v35 = vpop.permute.xlu1 %4467  ;;  %v7931_v44 = vpop.permute.xlu0 %4573 }
 0x57c   : > { %6229 = vset.pattern.permute.xlu1 %v8754_v38  ;;  %6268 = vset.pattern.permute.xlu0 %v8764_v20 }
 0x57d   : > { %4813 = vperm.xlu1 %6229, %v7703_v23   ;;  %4768 = vperm.xlu0 %6268, %v7787_v55  }
 0x57f   : > { %v7839_v22 = vpop.permute.xlu1 %4524 }
 0x581   : > { %6230 = vset.pattern.permute.xlu1 %v8752_v36  ;;  %6270 = vset.pattern.permute.xlu0 %v8746_v21  ;;  %v5429_v21 = vld [vmem:[%s8731_s6 + $0x58] sm:$0xff] }
 0x582   : > { %4870 = vperm.xlu1 %6230, %v7703_v23   ;;  %3788 = vperm.xlu0 %6270, %v7842_v26   ;;  %v7941_v23 = vpop.permute.xlu0 %4744 }
 0x584   : > { %v7850_v40 = vpop.permute.xlu1 %4581 }
 0x586   : > { %6232 = vset.pattern.permute.xlu1 %v6636_v59  ;;  %6272 = vset.pattern.permute.xlu0 %v8744_v41 }
 0x587   : > { %3836 = vperm.xlu1 %6232, %v7738_v39   ;;  %3905 = vperm.xlu0 %6272, %v7842_v26  }
 0x589   : > { %v7858_v42 = vpop.permute.xlu1 %4695 }
 0x58b   : > { %6234 = vset.pattern.permute.xlu1 %v8769_v50  ;;  %6274 = vset.pattern.permute.xlu0 %v8742_v62 }
 0x58c   : > { %3950 = vperm.xlu1 %6234, %v7738_v39   ;;  %4019 = vperm.xlu0 %6274, %v7842_v26  }
 0x58e   : > { %v7866_v8 = vpop.permute.xlu1 %4752 }
 0x590   : > { %6236 = vset.pattern.permute.xlu1 %v8758_v2  ;;  %6276 = vset.pattern.permute.xlu0 %v8740_v10  ;;  %v3761_v10 = vld [vmem:[%s8731_s6 + $0x18] sm:$0xff] }
 0x591   : > { %4064 = vperm.xlu1 %6236, %v7738_v39   ;;  %4133 = vperm.xlu0 %6276, %v7842_v26  }
 0x593   : > { %v7872_v45 = vpop.permute.xlu1 %4866 }
 0x595   : > { %6238 = vset.pattern.permute.xlu1 %v8760_v14  ;;  %6278 = vset.pattern.permute.xlu0 %v8738_v16 }
 0x596   : > { %4178 = vperm.xlu1 %6238, %v7738_v39   ;;  %4247 = vperm.xlu0 %6278, %v7842_v26  }
 0x598   : > { %v7880_v27 = vpop.permute.xlu1 %3889 }
 0x59a   : > { %6240 = vset.pattern.permute.xlu1 %v8767_v5  ;;  %6281 = vset.pattern.permute.xlu0 %v8766_v3 }
 0x59b   : > { %4292 = vperm.xlu1 %6240, %v7738_v39   ;;  %4418 = vperm.xlu0 %6281, %v7842_v26  }
 0x59d   : > { %v7888_v47 = vpop.permute.xlu1 %4003 }
 0x59f   : > { %6241 = vset.pattern.permute.xlu1 %v8750_v11  ;;  %6284 = vset.pattern.permute.xlu0 %v8765_v18  ;;  %v5437_v11 = vld [vmem:[%s8731_s6 + $0x98] sm:$0xff] }
 0x5a0   : > { %4349 = vperm.xlu1 %6241, %v7738_v39   ;;  %4589 = vperm.xlu0 %6284, %v7842_v26  }
 0x5a2   : > { %v7896_v37 = vpop.permute.xlu1 %4117 }
 0x5a4   : > { %6242 = vset.pattern.permute.xlu1 %v8766_v3  ;;  %6287 = vset.pattern.permute.xlu0 %v8764_v20 }
 0x5a5   : > { %4406 = vperm.xlu1 %6242, %v7738_v39   ;;  %4760 = vperm.xlu0 %6287, %v7842_v26  }
 0x5a7   : > { %v7904_v32 = vpop.permute.xlu1 %4231 }
 0x5a9   : > { %6245 = vset.pattern.permute.xlu1 %v8765_v18  ;;  %6288 = vset.pattern.permute.xlu0 %v8754_v38  ;;  %v5445_v38 = vld [vmem:[%s8731_s6 + $0xd8] sm:$0xff] }
 0x5aa   : > { %4577 = vperm.xlu1 %6245, %v7738_v39   ;;  %4817 = vperm.xlu0 %6288, %v7842_v26  }
 0x5ac   : > { %v7912_v0 = vpop.permute.xlu1 %4459 }
 0x5ae   : > { %6247 = vset.pattern.permute.xlu1 %v8756_v31  ;;  %6291 = vset.pattern.permute.xlu0 %v6636_v59 }
 0x5af   : > { %4691 = vperm.xlu1 %6247, %v7738_v39   ;;  %3860 = vperm.xlu0 %6291, %v7915_v13  }
 0x5b1   : > { %v7921_v6 = vpop.permute.xlu1 %4516 }
 0x5b3   : > { %6248 = vset.pattern.permute.xlu1 %v8764_v20  ;;  %6293 = vset.pattern.permute.xlu0 %v8769_v50 }
 0x5b4   : > { %4748 = vperm.xlu1 %6248, %v7738_v39   ;;  %3974 = vperm.xlu0 %6293, %v7915_v13  }
 0x5b6   : > { %v7929_v7 = vpop.permute.xlu1 %4630 }
 0x5b8   : > { %6250 = vset.pattern.permute.xlu1 %v8752_v36  ;;  %6295 = vset.pattern.permute.xlu0 %v8758_v2 }
 0x5b9   : > { %4862 = vperm.xlu1 %6250, %v7738_v39   ;;  %4088 = vperm.xlu0 %6295, %v7915_v13   ;;  %v3845_v39 = vpop.permute.xlu0 %3844 }
 0x5ba   : > { %v3866_v36 = vmul.f32 %v5429_v21, %v3845_v39  ;;  %v5453_v21 = vld [vmem:[%s8731_s6 + $0x118] sm:$0xff] }
 0x5bb   : > { %v7937_v53 = vpop.permute.xlu1 %4687  ;;  %v5461_v39 = vld [vmem:[%s8731_s6 + $0x158] sm:$0xff] }
 0x5bd   : > { %6252 = vset.pattern.permute.xlu1 %v6636_v59  ;;  %6297 = vset.pattern.permute.xlu0 %v8760_v14  ;;  %v3959_v62 = vpop.permute.xlu0 %3958 }
 0x5be   : > { %3856 = vperm.xlu1 %6252, %v7787_v55   ;;  %4202 = vperm.xlu0 %6297, %v7915_v13  }
 0x5c0   : > { %v7945_v1 = vpop.permute.xlu1 %4801 }
 0x5c2   : > { %6254 = vset.pattern.permute.xlu1 %v8769_v50  ;;  %6301 = vset.pattern.permute.xlu0 %v8766_v3 }
 0x5c3   : > { %3970 = vperm.xlu1 %6254, %v7787_v55   ;;  %4430 = vperm.xlu0 %6301, %v7915_v13  }
 0x5c5   : > { %v7951_v16 = vpop.permute.xlu1 %4858 }
 0x5c7   : > { %6256 = vset.pattern.permute.xlu1 %v8758_v2  ;;  %6304 = vset.pattern.permute.xlu0 %v8765_v18  ;;  %v4073_v2 = vpop.permute.xlu0 %4072 }
 0x5c8   : > { %4084 = vperm.xlu1 %6256, %v7787_v55   ;;  %4601 = vperm.xlu0 %6304, %v7915_v13  }
 0x5ca   : > { %v3784_v41 = vpop.permute.xlu1 %3783 }
 0x5cb   : > { %v3809_v19 = vmul.f32 %v3784_v41, %v3761_v10 }
 0x5cc   : > { %6258 = vset.pattern.permute.xlu1 %v8760_v14  ;;  %6305 = vset.pattern.permute.xlu0 %v8762_v54  ;;  %v3980_v14 = vmul.f32 %v5445_v38, %v3959_v62  ;;  %v4187_v38 = vpop.permute.xlu0 %4186  ;;  %v4094_v62 = vmul.f32 %v5461_v39, %v4073_v2 }
 0x5cd   : > { %4198 = vperm.xlu1 %6258, %v7787_v55   ;;  %4658 = vperm.xlu0 %6305, %v7915_v13   ;;  %v3874_v41 = vadd.f32 %v3866_v36, %v3809_v19 }
 0x5cf   : > { %v3902_v31 = vpop.permute.xlu1 %3901 }
 0x5d0   : > { %v3923_v10 = vmul.f32 %v5437_v11, %v3902_v31  ;;  %v7984_v31 = vmax.f32 %v7662_v56, 0.0  ;;  %v5477_v56 = vld [vmem:[%s8731_s6 + $0x1d8] sm:$0xff]  ;;  %v4301_v39 = vpop.permute.xlu0 %4300 }
 0x5d1   : > { %6260 = vset.pattern.permute.xlu1 %v8767_v5  ;;  %6307 = vset.pattern.permute.xlu0 %v8764_v20  ;;  %v4208_v2 = vmul.f32 %v5477_v56, %v4187_v38  ;;  %v8779_v38 = vmov 5   ;;  %v8780_v20 = vmov 15  }
 0x5d2   : > { %v3931_v54 = vadd.f32 %v3923_v10, %v3874_v41  ;;  %4312 = vperm.xlu1 %6260, %v7787_v55   ;;  %4772 = vperm.xlu0 %6307, %v7915_v13   ;;  %8778 = vst [vmem:[#allocation6_spill] sm:$0xff] %v7984_v31 }
 0x5d4   : > { %v3988_v19 = vadd.f32 %v3980_v14, %v3931_v54  ;;  %v4016_v11 = vpop.permute.xlu1 %4015  ;;  %v5469_v54 = vld [vmem:[%s8731_s6 + $0x198] sm:$0xff] }
 0x5d5   : > { %v4037_v36 = vmul.f32 %v5453_v21, %v4016_v11  ;;  %v5485_v11 = vld [vmem:[%s8731_s6 + $0x218] sm:$0xff] }
 0x5d6   : > { %6262 = vset.pattern.permute.xlu1 %v8766_v3  ;;  %6310 = vset.pattern.permute.xlu0 %v6636_v59  ;;  %v8782_v3 = vmov 16  }
 0x5d7   : > { %v4045_v41 = vadd.f32 %v4037_v36, %v3988_v19  ;;  %4426 = vperm.xlu1 %6262, %v7787_v55   ;;  %3852 = vperm.xlu0 %6310, %v7984_v31   ;;  %v5493_v36 = vld [vmem:[%s8731_s6 + $0x258] sm:$0xff] }
 0x5d8   : > { %v4322_v56 = vmul.f32 %v5493_v36, %v4301_v39  ;;  %v8781_v39 = vmov 7  }
 0x5d9   : > { %v4102_v14 = vadd.f32 %v4094_v62, %v4045_v41  ;;  %v4130_v10 = vpop.permute.xlu1 %4129 }
 0x5da   : > { %v4151_v21 = vmul.f32 %v5469_v54, %v4130_v10  ;;  %v5501_v10 = vld [vmem:[%s8731_s6 + $0x298] sm:$0xff] }
 0x5db   : > { %6263 = vset.pattern.permute.xlu1 %v8770_v15  ;;  %6312 = vset.pattern.permute.xlu0 %v8769_v50 }
 0x5dc   : > { %v4159_v19 = vadd.f32 %v4151_v21, %v4102_v14  ;;  %4483 = vperm.xlu1 %6263, %v7787_v55   ;;  %3966 = vperm.xlu0 %6312, %v7984_v31   ;;  %v4415_v21 = vpop.permute.xlu0 %4414 }
 0x5de   : > { %v4216_v62 = vadd.f32 %v4208_v2, %v4159_v19  ;;  %v4244_v41 = vpop.permute.xlu1 %4243  ;;  %v5509_v2 = vld [vmem:[%s8731_s6 + $0x2d8] sm:$0xff] }
 0x5df   : > { %v4265_v54 = vmul.f32 %v5485_v11, %v4244_v41  ;;  %v4436_v36 = vmul.f32 %v5509_v2, %v4415_v21 }
 0x5e0   : > { %6265 = vset.pattern.permute.xlu1 %v8765_v18  ;;  %6314 = vset.pattern.permute.xlu0 %v8779_v38 }
 0x5e1   : > { %v4273_v14 = vadd.f32 %v4265_v54, %v4216_v62  ;;  %4597 = vperm.xlu1 %6265, %v7787_v55   ;;  %4080 = vperm.xlu0 %6314, %v7984_v31   ;;  %v5517_v54 = vld [vmem:[%s8731_s6 + $0x318] sm:$0xff] }
 0x5e3   : > { %v4330_v19 = vadd.f32 %v4322_v56, %v4273_v14  ;;  %v4358_v11 = vpop.permute.xlu1 %4357  ;;  %v5525_v56 = vld [vmem:[%s8731_s6 + $0x358] sm:$0xff]  ;;  %v4529_v14 = vpop.permute.xlu0 %4528 }
 0x5e4   : > { %v4379_v41 = vmul.f32 %v5501_v10, %v4358_v11  ;;  %v4550_v21 = vmul.f32 %v5525_v56, %v4529_v14 }
 0x5e5   : > { %6266 = vset.pattern.permute.xlu1 %v8780_v20  ;;  %6316 = vset.pattern.permute.xlu0 %v8781_v39 }
 0x5e6   : > { %v4387_v62 = vadd.f32 %v4379_v41, %v4330_v19  ;;  %4654 = vperm.xlu1 %6266, %v7787_v55   ;;  %4194 = vperm.xlu0 %6316, %v7984_v31   ;;  %v5533_v19 = vld [vmem:[%s8731_s6 + $0x398] sm:$0xff] }
 0x5e8   : > { %v4444_v10 = vadd.f32 %v4436_v36, %v4387_v62  ;;  %v4472_v11 = vpop.permute.xlu1 %4471  ;;  %v8783_v36 = vmov 18   ;;  %v5426_v62 = vld [vmem:[%s8731_s6 + $0x40] sm:$0xff] }
 0x5e9   : > { %v4493_v18 = vmul.f32 %v5517_v54, %v4472_v11  ;;  %v4700_v54 = vpop.permute.xlu0 %4699  ;;  %v3758_v11 = vld [vmem:[%s8731_s6] sm:$0xff] }
 0x5ea   : > { %6267 = vset.pattern.permute.xlu1 %v8782_v3  ;;  %6321 = vset.pattern.permute.xlu0 %v8770_v15 }
 0x5eb   : > { %v4501_v2 = vadd.f32 %v4493_v18, %v4444_v10  ;;  %4711 = vperm.xlu1 %6267, %v7787_v55   ;;  %4479 = vperm.xlu0 %6321, %v7984_v31   ;;  %v5541_v18 = vld [vmem:[%s8731_s6 + $0x3d8] sm:$0xff] }
 0x5ed   : > { %v4558_v41 = vadd.f32 %v4550_v21, %v4501_v2  ;;  %v4586_v5 = vpop.permute.xlu1 %4585  ;;  %v5434_v21 = vld [vmem:[%s8731_s6 + $0x80] sm:$0xff]  ;;  %v8784_v2 = vmov 19  }
 0x5ee   : > { %v4607_v50 = vmul.f32 %v5533_v19, %v4586_v5  ;;  %v5549_v5 = vld [vmem:[%s8731_s6 + $0x418] sm:$0xff]  ;;  %v3863_v19 = vmul.f32 %v5426_v62, %v7864_v58  ;;  %v5442_v58 = vld [vmem:[%s8731_s6 + $0xc0] sm:$0xff] }
 0x5ef   : > { %6269 = vset.pattern.permute.xlu1 %v8783_v36  ;;  %6324 = vset.pattern.permute.xlu0 %v8780_v20  ;;  %v4721_v15 = vmul.f32 %v5549_v5, %v4700_v54 }
 0x5f0   : > { %4825 = vperm.xlu1 %6269, %v7787_v55   ;;  %4650 = vperm.xlu0 %6324, %v7984_v31   ;;  %v4615_v14 = vadd.f32 %v4607_v50, %v4558_v41  ;;  %v3806_v50 = vmul.f32 %v7856_v46, %v3758_v11  ;;  %v3920_v41 = vmul.f32 %v5434_v21, %v7880_v27  ;;  %v5450_v46 = vld [vmem:[%s8731_s6 + $0x100] sm:$0xff]  ;;  %v3774_v27 = vpop.permute.xlu0 %3773  ;;  %v5428_v21 = vld [vmem:[%s8731_s6 + $0x50] sm:$0xff] }
 0x5f1   : > { %v4034_v54 = vmul.f32 %v5450_v46, %v7888_v47  ;;  %v3759_v47 = vld [vmem:[%s8731_s6 + $0x8] sm:$0xff] }
 0x5f2   : > { %v4643_v56 = vpop.permute.xlu1 %4642  ;;  %v3871_v36 = vadd.f32 %v3863_v19, %v3806_v50  ;;  %v5435_v19 = vld [vmem:[%s8731_s6 + $0x88] sm:$0xff]  ;;  %v3807_v46 = vmul.f32 %v3774_v27, %v3759_v47 }
 0x5f3   : > { %v4664_v10 = vmul.f32 %v5541_v18, %v4643_v56  ;;  %v5451_v47 = vld [vmem:[%s8731_s6 + $0x108] sm:$0xff] }
 0x5f4   : > { %6271 = vset.pattern.permute.xlu1 %v6636_v59  ;;  %6328 = vset.pattern.permute.xlu0 %v8784_v2  ;;  %v8785_v59 = vmov 3   ;;  %v3928_v62 = vadd.f32 %v3920_v41, %v3871_v36  ;;  %v5458_v36 = vld [vmem:[%s8731_s6 + $0x140] sm:$0xff]  ;;  %v3894_v11 = vpop.permute.xlu0 %3893  ;;  %v3760_v41 = vld [vmem:[%s8731_s6 + $0x10] sm:$0xff] }
 0x5f5   : > { %v4672_v55 = vadd.f32 %v4664_v10, %v4615_v14  ;;  %3848 = vperm.xlu1 %6271, %v7842_v26   ;;  %4878 = vperm.xlu0 %6328, %v7984_v31  }
 0x5f7   : > { %v8059_v18 = vadd.f32 %v4721_v15, %v4672_v55  ;;  %v8061_v56 = vpop.permute.xlu1 %4756  ;;  %v3977_v55 = vmul.f32 %v5442_v58, %v7874_v25  ;;  %v5466_v25 = vld [vmem:[%s8731_s6 + $0x180] sm:$0xff] }
 0x5f8   : > { %v4008_v31 = vpop.permute.xlu0 %4007 }
 0x5f9   : > { %6273 = vset.pattern.permute.xlu1 %v8785_v59  ;;  %4886 = vperm.xlu0 %6328, %v7915_v13   ;;  %v3985_v5 = vadd.f32 %v3977_v55, %v3928_v62  ;;  %v5436_v59 = vld [vmem:[%s8731_s6 + $0x90] sm:$0xff]  ;;  %v4148_v62 = vmul.f32 %v5466_v25, %v7896_v37  ;;  %v3808_v37 = vmul.f32 %v7760_v43, %v3760_v41 }
 0x5fa   : > { %3962 = vperm.xlu1 %6273, %v7842_v26   ;;  %v3922_v27 = vmul.f32 %v5436_v59, %v7772_v51  ;;  %v5482_v51 = vld [vmem:[%s8731_s6 + $0x200] sm:$0xff]  ;;  %v8788_v59 = vmov 10  }
 0x5fb   : > { %v4042_v10 = vadd.f32 %v4034_v54, %v3985_v5  ;;  %v8787_v5 = vmov 9   ;;  %v5444_v54 = vld [vmem:[%s8731_s6 + $0xd0] sm:$0xff] }
 0x5fc   : > { %v8072_v15 = vpop.permute.xlu1 %4813  ;;  %v3979_v43 = vmul.f32 %v5444_v54, %v7778_v24  ;;  %v5459_v24 = vld [vmem:[%s8731_s6 + $0x148] sm:$0xff]  ;;  %v4122_v54 = vpop.permute.xlu0 %4121 }
 0x5fe   : > { %6275 = vset.pattern.permute.xlu1 %v8779_v38  ;;  %v5427_v38 = vld [vmem:[%s8731_s6 + $0x48] sm:$0xff] }
 0x5ff   : > { %4076 = vperm.xlu1 %6275, %v7842_v26  }
 0x601   : > { %v8078_v14 = vpop.permute.xlu1 %4870 }
 0x602   : > { %8786 = vst [vmem:[#allocation7_spill] sm:$0xff] %v8078_v14 }
 0x603   : > { %6277 = vset.pattern.permute.xlu1 %v8781_v39  ;;  %v4091_v39 = vmul.f32 %v5458_v36, %v7882_v33  ;;  %v3865_v33 = vmul.f32 %v5428_v21, %v7766_v48  ;;  %v3921_v36 = vmul.f32 %v5435_v19, %v3894_v11  ;;  %v5474_v48 = vld [vmem:[%s8731_s6 + $0x1c0] sm:$0xff]  ;;  %v5452_v11 = vld [vmem:[%s8731_s6 + $0x110] sm:$0xff] }
 0x604   : > { %4190 = vperm.xlu1 %6277, %v7842_v26   ;;  %v4205_v41 = vmul.f32 %v5474_v48, %v7892_v49  ;;  %v4262_v49 = vmul.f32 %v5482_v51, %v7904_v32  ;;  %v5490_v32 = vld [vmem:[%s8731_s6 + $0x240] sm:$0xff] }
 0x605   : > { %v4099_v58 = vadd.f32 %v4091_v39, %v4042_v10  ;;  %v5443_v10 = vld [vmem:[%s8731_s6 + $0xc8] sm:$0xff]  ;;  %v3873_v39 = vadd.f32 %v3865_v33, %v3808_v37 }
 0x606   : > { %v3837_v50 = vpop.permute.xlu1 %3836 }
 0x607   : > { %v3864_v55 = vmul.f32 %v5427_v38, %v3837_v50  ;;  %v4156_v25 = vadd.f32 %v4148_v62, %v4099_v58  ;;  %v5460_v50 = vld [vmem:[%s8731_s6 + $0x150] sm:$0xff]  ;;  %v3930_v58 = vadd.f32 %v3922_v27, %v3873_v39  ;;  %v4036_v62 = vmul.f32 %v5452_v11, %v7784_v28  ;;  %v5467_v28 = vld [vmem:[%s8731_s6 + $0x188] sm:$0xff] }
 0x608   : > { %6279 = vset.pattern.permute.xlu1 %v8787_v5  ;;  %v5476_v27 = vld [vmem:[%s8731_s6 + $0x1d0] sm:$0xff] }
 0x609   : > { %v3872_v14 = vadd.f32 %v3864_v55, %v3807_v46  ;;  %4304 = vperm.xlu1 %6279, %v7842_v26   ;;  %v5468_v55 = vld [vmem:[%s8731_s6 + $0x190] sm:$0xff]  ;;  %v4213_v33 = vadd.f32 %v4205_v41, %v4156_v25  ;;  %v4207_v51 = vmul.f32 %v5476_v27, %v7805_v4  ;;  %v5483_v41 = vld [vmem:[%s8731_s6 + $0x208] sm:$0xff]  ;;  %v5498_v4 = vld [vmem:[%s8731_s6 + $0x280] sm:$0xff] }
 0x60a   : > { %v4150_v25 = vmul.f32 %v5468_v55, %v7799_v63  ;;  %v5506_v27 = vld [vmem:[%s8731_s6 + $0x2c0] sm:$0xff] }
 0x60b   : > { %v3951_v38 = vpop.permute.xlu1 %3950  ;;  %v3929_v21 = vadd.f32 %v3921_v36, %v3872_v14  ;;  %v4035_v14 = vmul.f32 %v5451_v47, %v4008_v31  ;;  %v3987_v36 = vadd.f32 %v3979_v43, %v3930_v58  ;;  %v8789_v47 = vmov 12   ;;  %v5475_v43 = vld [vmem:[%s8731_s6 + $0x1c8] sm:$0xff]  ;;  %v4236_v58 = vpop.permute.xlu0 %4235 }
 0x60c   : > { %v3978_v19 = vmul.f32 %v5443_v10, %v3951_v38  ;;  %v4093_v10 = vmul.f32 %v5460_v50, %v7793_v60  ;;  %v5484_v60 = vld [vmem:[%s8731_s6 + $0x210] sm:$0xff]  ;;  %v4270_v38 = vadd.f32 %v4262_v49, %v4213_v33  ;;  %v8790_v49 = vmov 13  }
 0x60d   : > { %6280 = vset.pattern.permute.xlu1 %v8788_v59  ;;  %v4044_v11 = vadd.f32 %v4036_v62, %v3987_v36  ;;  %v5492_v50 = vld [vmem:[%s8731_s6 + $0x250] sm:$0xff] }
 0x60e   : > { %v3986_v46 = vadd.f32 %v3978_v19, %v3929_v21  ;;  %4361 = vperm.xlu1 %6280, %v7842_v26   ;;  %v4149_v21 = vmul.f32 %v5467_v28, %v4122_v54  ;;  %v4319_v19 = vmul.f32 %v5490_v32, %v7902_v52  ;;  %v5500_v52 = vld [vmem:[%s8731_s6 + $0x290] sm:$0xff]  ;;  %v4321_v36 = vmul.f32 %v5492_v50, %v7817_v12  ;;  %v5491_v12 = vld [vmem:[%s8731_s6 + $0x248] sm:$0xff] }
 0x60f   : > { %v4101_v63 = vadd.f32 %v4093_v10, %v4044_v11  ;;  %v4263_v10 = vmul.f32 %v5483_v41, %v4236_v58  ;;  %v4464_v32 = vpop.permute.xlu0 %4463  ;;  %v5524_v50 = vld [vmem:[%s8731_s6 + $0x350] sm:$0xff] }
 0x610   : > { %v4065_v31 = vpop.permute.xlu1 %4064  ;;  %v4043_v37 = vadd.f32 %v4035_v14, %v3986_v46  ;;  %v4327_v33 = vadd.f32 %v4319_v19, %v4270_v38  ;;  %v5522_v19 = vld [vmem:[%s8731_s6 + $0x340] sm:$0xff] }
 0x611   : > { %v4092_v48 = vmul.f32 %v5459_v24, %v4065_v31  ;;  %v4158_v46 = vadd.f32 %v4150_v25, %v4101_v63  ;;  %v4264_v24 = vmul.f32 %v5484_v60, %v7811_v9  ;;  %v4376_v9 = vmul.f32 %v5498_v4, %v7910_v61  ;;  %v5508_v61 = vld [vmem:[%s8731_s6 + $0x2d0] sm:$0xff] }
 0x612   : > { %6282 = vset.pattern.permute.xlu1 %v8789_v47 }
 0x613   : > { %v4100_v39 = vadd.f32 %v4092_v48, %v4043_v37  ;;  %4475 = vperm.xlu1 %6282, %v7842_v26   ;;  %v4215_v54 = vadd.f32 %v4207_v51, %v4158_v46  ;;  %v4378_v37 = vmul.f32 %v5500_v52, %v7823_v29  ;;  %v4384_v25 = vadd.f32 %v4376_v9, %v4327_v33  ;;  %v4521_v58 = vpop.permute.xlu0 %4520 }
 0x614   : > { %v4433_v29 = vmul.f32 %v5506_v27, %v7923_v57  ;;  %v4435_v57 = vmul.f32 %v5508_v61, %v7825_v34  ;;  %v5507_v34 = vld [vmem:[%s8731_s6 + $0x2c8] sm:$0xff]  ;;  %v4549_v52 = vmul.f32 %v5524_v50, %v7839_v22 }
 0x615   : > { %v4179_v62 = vpop.permute.xlu1 %4178  ;;  %v4157_v14 = vadd.f32 %v4149_v21, %v4100_v39  ;;  %v4272_v31 = vadd.f32 %v4264_v24, %v4215_v54  ;;  %v5514_v21 = vld [vmem:[%s8731_s6 + $0x300] sm:$0xff]  ;;  %v5499_v39 = vld [vmem:[%s8731_s6 + $0x288] sm:$0xff]  ;;  %v5532_v24 = vld [vmem:[%s8731_s6 + $0x390] sm:$0xff] }
 0x616   : > { %v4206_v55 = vmul.f32 %v5475_v43, %v4179_v62  ;;  %v4441_v43 = vadd.f32 %v4433_v29, %v4384_v25  ;;  %v4490_v41 = vmul.f32 %v5514_v21, %v7912_v0  ;;  %v4547_v0 = vmul.f32 %v5522_v19, %v7921_v6  ;;  %v5523_v6 = vld [vmem:[%s8731_s6 + $0x348] sm:$0xff]  ;;  %v5540_v25 = vld [vmem:[%s8731_s6 + $0x3d0] sm:$0xff] }
 0x617   : > { %6283 = vset.pattern.permute.xlu1 %v8790_v49  ;;  %v4329_v60 = vadd.f32 %v4321_v36, %v4272_v31  ;;  %v4606_v9 = vmul.f32 %v5532_v24, %v7850_v40  ;;  %v5538_v40 = vld [vmem:[%s8731_s6 + $0x3c0] sm:$0xff] }
 0x618   : > { %v4214_v28 = vadd.f32 %v4206_v55, %v4157_v14  ;;  %4532 = vperm.xlu1 %6283, %v7842_v26   ;;  %v4498_v4 = vadd.f32 %v4490_v41, %v4441_v43  ;;  %v5554_v24 = vld [vmem:[%s8731_s6 + $0x440] sm:$0xff] }
 0x619   : > { %v4386_v38 = vadd.f32 %v4378_v37, %v4329_v60  ;;  %v4635_v37 = vpop.permute.xlu0 %4634 }
 0x61a   : > { %v4293_v48 = vpop.permute.xlu1 %4292  ;;  %v4271_v11 = vadd.f32 %v4263_v10, %v4214_v28  ;;  %v5530_v28 = vld [vmem:[%s8731_s6 + $0x380] sm:$0xff]  ;;  %v4555_v22 = vadd.f32 %v4547_v0, %v4498_v4  ;;  %v8792_v0 = vmov 2  }
 0x61b   : > { %v4320_v63 = vmul.f32 %v5491_v12, %v4293_v48  ;;  %v4443_v14 = vadd.f32 %v4435_v57, %v4386_v38  ;;  %v5531_v48 = vld [vmem:[%s8731_s6 + $0x388] sm:$0xff]  ;;  %v4604_v60 = vmul.f32 %v5530_v28, %v7931_v44  ;;  %v4661_v44 = vmul.f32 %v5538_v40, %v7929_v7  ;;  %v5556_v57 = vld [vmem:[%s8731_s6 + $0x450] sm:$0xff] }
 0x61c   : > { %6285 = vset.pattern.permute.xlu1 %v8780_v20  ;;  %v5516_v20 = vld [vmem:[%s8731_s6 + $0x310] sm:$0xff]  ;;  %v5539_v38 = vld [vmem:[%s8731_s6 + $0x3c8] sm:$0xff]  ;;  %v4777_v4 = vmul.f32 %v5556_v57, %v7866_v8  ;;  %v4775_v8 = vmul.f32 %v5554_v24, %v7941_v23  ;;  %v8796_v24 = vmov 8  }
 0x61d   : > { %4646 = vperm.xlu1 %6285, %v7842_v26   ;;  %v4492_v46 = vmul.f32 %v5516_v20, %v7831_v35  ;;  %v4328_v55 = vadd.f32 %v4320_v63, %v4271_v11  ;;  %v5515_v35 = vld [vmem:[%s8731_s6 + $0x308] sm:$0xff]  ;;  %v4612_v20 = vadd.f32 %v4604_v60, %v4555_v22  ;;  %v8791_v63 = vmov 0   ;;  %v4806_v41 = vpop.permute.xlu0 %4805  ;;  %v8795_v57 = vld [vmem:[#allocation7_spill] sm:$0xff] }
 0x61e   : > { %v4491_v31 = vmul.f32 %v5515_v35, %v4464_v32  ;;  %v4548_v32 = vmul.f32 %v5523_v6, %v4521_v58  ;;  %v4662_v50 = vmul.f32 %v5539_v38, %v4635_v37  ;;  %v5547_v7 = vld [vmem:[%s8731_s6 + $0x408] sm:$0xff]  ;;  %v5562_v35 = vld [vmem:[%s8731_s6 + $0x480] sm:$0xff]  ;;  %v5557_v6 = vld [vmem:[%s8731_s6 + $0x458] sm:$0xff] }
 0x61f   : > { %v4350_v51 = vpop.permute.xlu1 %4349  ;;  %v4500_v10 = vadd.f32 %v4492_v46, %v4443_v14  ;;  %v4832_v23 = vmul.f32 %v5562_v35, %v7945_v1  ;;  %v5571_v1 = vld [vmem:[%s8731_s6 + $0x4c8] sm:$0xff] }
 0x620   : > { %v4377_v62 = vmul.f32 %v5499_v39, %v4350_v51  ;;  %v5548_v39 = vld [vmem:[%s8731_s6 + $0x410] sm:$0xff]  ;;  %v4663_v51 = vmul.f32 %v5540_v25, %v7833_v17  ;;  %v4669_v17 = vadd.f32 %v4661_v44, %v4612_v20  ;;  %v5565_v25 = vld [vmem:[%s8731_s6 + $0x498] sm:$0xff] }
 0x621   : > { %6286 = vset.pattern.permute.xlu1 %v8782_v3  ;;  %v4557_v11 = vadd.f32 %v4549_v52, %v4500_v10  ;;  %v4720_v14 = vmul.f32 %v5548_v39, %v7858_v42  ;;  %v5555_v52 = vld [vmem:[%s8731_s6 + $0x448] sm:$0xff]  ;;  %v4835_v20 = vmul.f32 %v5565_v25, %v8072_v15 }
 0x622   : > { %4703 = vperm.xlu1 %6286, %v7842_v26   ;;  %v4385_v54 = vadd.f32 %v4377_v62, %v4328_v55 }
 0x623   : > { %v4614_v29 = vadd.f32 %v4606_v9, %v4557_v11  ;;  %v5570_v9 = vld [vmem:[%s8731_s6 + $0x4c0] sm:$0xff]  ;;  %v5572_v11 = vld [vmem:[%s8731_s6 + $0x4d0] sm:$0xff] }
 0x624   : > { %v4407_v33 = vpop.permute.xlu1 %4406  ;;  %v4891_v38 = vmul.f32 %v5572_v11, %v7872_v45  ;;  %v5432_v45 = vld [vmem:[%s8731_s6 + $0x70] sm:$0xff] }
 0x625   : > { %v4434_v36 = vmul.f32 %v5507_v34, %v4407_v33  ;;  %v4671_v62 = vadd.f32 %v4663_v51, %v4614_v29  ;;  %v5564_v33 = vld [vmem:[%s8731_s6 + $0x490] sm:$0xff] }
 0x626   : > { %6289 = vset.pattern.permute.xlu1 %v8784_v2 }
 0x627   : > { %v4442_v27 = vadd.f32 %v4434_v36, %v4385_v54  ;;  %4874 = vperm.xlu1 %6289, %v7842_v26   ;;  %v5546_v26 = vld [vmem:[%s8731_s6 + $0x400] sm:$0xff]  ;;  %v4728_v42 = vadd.f32 %v4720_v14, %v4671_v62  ;;  %v5563_v54 = vld [vmem:[%s8731_s6 + $0x488] sm:$0xff]  ;;  %v3799_v36 = vpop.permute.xlu0 %3798 }
 0x628   : > { %v4718_v19 = vmul.f32 %v5546_v26, %v7937_v53  ;;  %v4833_v40 = vmul.f32 %v5563_v54, %v4806_v41  ;;  %v5440_v41 = vld [vmem:[%s8731_s6 + $0xb0] sm:$0xff] }
 0x629   : > { %v4499_v12 = vadd.f32 %v4491_v31, %v4442_v27  ;;  %v4578_v61 = vpop.permute.xlu1 %4577  ;;  %v4785_v28 = vadd.f32 %v4777_v4, %v4728_v42  ;;  %v8793_v27 = vmov 4   ;;  %v5456_v42 = vld [vmem:[%s8731_s6 + $0x130] sm:$0xff] }
 0x62a   : > { %v4605_v21 = vmul.f32 %v5531_v48, %v4578_v61  ;;  %v4726_v55 = vadd.f32 %v4718_v19, %v4669_v17  ;;  %v4834_v48 = vmul.f32 %v5564_v33, %v7846_v30  ;;  %v4778_v30 = vmul.f32 %v5557_v6, %v8061_v56  ;;  %v5573_v61 = vld [vmem:[%s8731_s6 + $0x4d8] sm:$0xff] }
 0x62b   : > { %v4556_v43 = vadd.f32 %v4548_v32, %v4499_v12  ;;  %6290 = vset.pattern.permute.xlu1 %v8791_v63  ;;  %v4889_v32 = vmul.f32 %v5570_v9, %v7951_v16  ;;  %v3914_v39 = vpop.permute.xlu0 %3913  ;;  %v3764_v16 = vld [vmem:[%s8731_s6 + $0x30] sm:$0xff]  ;;  %v4892_v19 = vmul.f32 %v5573_v61, %v8795_v57 }
 0x62c   : > { %3803 = vperm.xlu1 %6290, %v7915_v13   ;;  %v4783_v37 = vadd.f32 %v4775_v8, %v4726_v55  ;;  %v4842_v12 = vadd.f32 %v4834_v48, %v4785_v28  ;;  %v4786_v56 = vadd.f32 %v4778_v30, %v8059_v18  ;;  %v3812_v14 = vmul.f32 %v3799_v36, %v3764_v16  ;;  %v5448_v55 = vld [vmem:[%s8731_s6 + $0xf0] sm:$0xff] }
 0x62d   : > { %v4613_v58 = vadd.f32 %v4605_v21, %v4556_v43  ;;  %v8794_v43 = vmov 6   ;;  %v3926_v4 = vmul.f32 %v5440_v41, %v3914_v39  ;;  %v5464_v28 = vld [vmem:[%s8731_s6 + $0x170] sm:$0xff]  ;;  %v8797_v41 = vmov 18  }
 0x62e   : > { %v4692_v46 = vpop.permute.xlu1 %4691  ;;  %v4840_v21 = vadd.f32 %v4832_v23, %v4783_v37  ;;  %v4899_v15 = vadd.f32 %v4891_v38, %v4842_v12  ;;  %v5472_v9 = vld [vmem:[%s8731_s6 + $0x1b0] sm:$0xff] }
 0x62f   : > { %v4670_v34 = vadd.f32 %v4662_v50, %v4613_v58  ;;  %v4719_v53 = vmul.f32 %v5547_v7, %v4692_v46  ;;  %v4843_v58 = vadd.f32 %v4835_v20, %v4786_v56  ;;  %v4028_v18 = vpop.permute.xlu0 %4027  ;;  %v5480_v48 = vld [vmem:[%s8731_s6 + $0x1f0] sm:$0xff] }
 0x630   : > { %6292 = vset.pattern.permute.xlu1 %v8792_v0  ;;  %v4897_v51 = vadd.f32 %v4889_v32, %v4840_v21  ;;  %v4040_v54 = vmul.f32 %v5456_v42, %v4028_v18  ;;  %v5496_v12 = vld [vmem:[%s8731_s6 + $0x270] sm:$0xff] }
 0x631   : > { %3917 = vperm.xlu1 %6292, %v7915_v13   ;;  %v4727_v22 = vadd.f32 %v4719_v53, %v4670_v34  ;;  %v4900_v17 = vadd.f32 %v4892_v19, %v4843_v58  ;;  %v5504_v61 = vld [vmem:[%s8731_s6 + $0x2b0] sm:$0xff] }
 0x632   : > { %v5512_v20 = vld [vmem:[%s8731_s6 + $0x2f0] sm:$0xff] }
 0x633   : > { %v4749_v10 = vpop.permute.xlu1 %4748  ;;  %v4142_v36 = vpop.permute.xlu0 %4141  ;;  %v5520_v57 = vld [vmem:[%s8731_s6 + $0x330] sm:$0xff] }
 0x634   : > { %v4776_v31 = vmul.f32 %v5555_v52, %v4749_v10  ;;  %v4154_v37 = vmul.f32 %v5472_v9, %v4142_v36  ;;  %v5528_v19 = vld [vmem:[%s8731_s6 + $0x370] sm:$0xff] }
 0x635   : > { %6294 = vset.pattern.permute.xlu1 %v8793_v27 }
 0x636   : > { %v4784_v60 = vadd.f32 %v4776_v31, %v4727_v22  ;;  %4031 = vperm.xlu1 %6294, %v7915_v13  }
 0x637   : > { %v4256_v11 = vpop.permute.xlu0 %4255 }
 0x638   : > { %v4863_v29 = vpop.permute.xlu1 %4862  ;;  %v4841_v26 = vadd.f32 %v4833_v40, %v4784_v60  ;;  %v5488_v40 = vld [vmem:[%s8731_s6 + $0x230] sm:$0xff] }
 0x639   : > { %v4890_v44 = vmul.f32 %v5571_v1, %v4863_v29  ;;  %v4268_v32 = vmul.f32 %v5488_v40, %v4256_v11 }
 0x63a   : > { %6296 = vset.pattern.permute.xlu1 %v8794_v43 }
 0x63b   : > { %v4898_v50 = vadd.f32 %v4890_v44, %v4841_v26  ;;  %4145 = vperm.xlu1 %6296, %v7915_v13   ;;  %v4370_v29 = vpop.permute.xlu0 %4369 }
 0x63c   : > { %v4382_v39 = vmul.f32 %v5504_v61, %v4370_v29 }
 0x63d   : > { %v4905_v7 = vadd.f32 %v4898_v50, %v4897_v51  ;;  %v3857_v62 = vpop.permute.xlu1 %3856 }
 0x63e   : > { %v3869_v46 = vmul.f32 %v5432_v45, %v3857_v62  ;;  %v5536_v62 = vld [vmem:[%s8731_s6 + $0x3b0] sm:$0xff] }
 0x63f   : > { %v4906_v34 = vadd.f32 %v4905_v7, %v4899_v15  ;;  %6298 = vset.pattern.permute.xlu1 %v8796_v24  ;;  %v4541_v50 = vpop.permute.xlu0 %4540 }
 0x640   : > { %v3877_v53 = vadd.f32 %v3869_v46, %v3812_v14  ;;  %4259 = vperm.xlu1 %6298, %v7915_v13   ;;  %v4553_v58 = vmul.f32 %v5528_v19, %v4541_v50 }
 0x641   : > { %v8331_v52 = vadd.f32 %v4906_v34, %v4900_v17  ;;  %v8798_v34 = vld [vmem:[#allocation6_spill] sm:$0xff] }
 0x642   : > { %v3971_v35 = vpop.permute.xlu1 %3970  ;;  %v3934_v33 = vadd.f32 %v3926_v4, %v3877_v53  ;;  %v5544_v4 = vld [vmem:[%s8731_s6 + $0x3f0] sm:$0xff] }
 0x643   : > { %v3983_v8 = vmul.f32 %v5448_v55, %v3971_v35  ;;  %v4769_v53 = vpop.permute.xlu0 %4768  ;;  %v5552_v35 = vld [vmem:[%s8731_s6 + $0x430] sm:$0xff] }
 0x644   : > { %6299 = vset.pattern.permute.xlu1 %v8787_v5 }
 0x645   : > { %v3991_v10 = vadd.f32 %v3983_v8, %v3934_v33  ;;  %4316 = vperm.xlu1 %6299, %v7915_v13  }
 0x647   : > { %v4085_v6 = vpop.permute.xlu1 %4084  ;;  %v4048_v22 = vadd.f32 %v4040_v54, %v3991_v10  ;;  %v3789_v8 = vpop.permute.xlu0 %3788 }
 0x648   : > { %v4097_v31 = vmul.f32 %v5464_v28, %v4085_v6 }
 0x649   : > { %6300 = vset.pattern.permute.xlu1 %v8788_v59 }
 0x64a   : > { %v4105_v23 = vadd.f32 %v4097_v31, %v4048_v22  ;;  %4373 = vperm.xlu1 %6300, %v7915_v13   ;;  %v3762_v31 = vld [vmem:[%s8731_s6 + $0x20] sm:$0xff] }
 0x64b   : > { %v3906_v22 = vpop.permute.xlu0 %3905  ;;  %v3810_v11 = vmul.f32 %v3789_v8, %v3762_v31 }
 0x64c   : > { %v4199_v25 = vpop.permute.xlu1 %4198  ;;  %v4162_v60 = vadd.f32 %v4154_v37, %v4105_v23  ;;  %v5438_v23 = vld [vmem:[%s8731_s6 + $0xa0] sm:$0xff] }
 0x64d   : > { %v4211_v1 = vmul.f32 %v5480_v48, %v4199_v25 }
 0x64e   : > { %6302 = vset.pattern.permute.xlu1 %v8789_v47 }
 0x64f   : > { %v4219_v30 = vadd.f32 %v4211_v1, %v4162_v60  ;;  %4487 = vperm.xlu1 %6302, %v7915_v13   ;;  %v4020_v25 = vpop.permute.xlu0 %4019  ;;  %v5446_v1 = vld [vmem:[%s8731_s6 + $0xe0] sm:$0xff] }
 0x651   : > { %v4313_v26 = vpop.permute.xlu1 %4312  ;;  %v4276_v38 = vadd.f32 %v4268_v32, %v4219_v30  ;;  %v5454_v32 = vld [vmem:[%s8731_s6 + $0x120] sm:$0xff] }
 0x652   : > { %v4325_v21 = vmul.f32 %v5496_v12, %v4313_v26  ;;  %v4038_v29 = vmul.f32 %v5454_v32, %v4020_v25  ;;  %v5462_v26 = vld [vmem:[%s8731_s6 + $0x160] sm:$0xff] }
 0x653   : > { %6303 = vset.pattern.permute.xlu1 %v8790_v49  ;;  %v5550_v25 = vld [vmem:[%s8731_s6 + $0x420] sm:$0xff] }
 0x654   : > { %v4333_v47 = vadd.f32 %v4325_v21, %v4276_v38  ;;  %4544 = vperm.xlu1 %6303, %v7915_v13   ;;  %v4134_v38 = vpop.permute.xlu0 %4133  ;;  %v5470_v21 = vld [vmem:[%s8731_s6 + $0x1a0] sm:$0xff] }
 0x656   : > { %v4427_v44 = vpop.permute.xlu1 %4426  ;;  %v4390_v51 = vadd.f32 %v4382_v39, %v4333_v47 }
 0x657   : > { %v4439_v16 = vmul.f32 %v5512_v20, %v4427_v44  ;;  %v4152_v44 = vmul.f32 %v5470_v21, %v4134_v38  ;;  %v6561_v38 = vld [vmem:[%s8733_s8 + $0x10] sm:$0xff]  }
 0x658   : > { %6306 = vset.pattern.permute.xlu1 %v8782_v3 }
 0x659   : > { %v4447_v56 = vadd.f32 %v4439_v16, %v4390_v51  ;;  %4715 = vperm.xlu1 %6306, %v7915_v13   ;;  %v5478_v51 = vld [vmem:[%s8731_s6 + $0x1e0] sm:$0xff] }
 0x65a   : > { %v5486_v16 = vld [vmem:[%s8731_s6 + $0x220] sm:$0xff] }
 0x65b   : > { %v4484_v45 = vpop.permute.xlu1 %4483 }
 0x65c   : > { %v4496_v15 = vmul.f32 %v5520_v57, %v4484_v45  ;;  %v8799_v45 = vmov 11  }
 0x65d   : > { %6308 = vset.pattern.permute.xlu1 %v8797_v41 }
 0x65e   : > { %v4504_v7 = vadd.f32 %v4496_v15, %v4447_v56  ;;  %4829 = vperm.xlu1 %6308, %v7915_v13   ;;  %v4248_v56 = vpop.permute.xlu0 %4247 }
 0x65f   : > { %v4266_v15 = vmul.f32 %v5486_v16, %v4248_v56  ;;  %v6563_v56 = vld [vmem:[%s8733_s8 + $0x20] sm:$0xff]  }
 0x660   : > { %v4598_v14 = vpop.permute.xlu1 %4597  ;;  %v4561_v46 = vadd.f32 %v4553_v58, %v4504_v7  ;;  %v5494_v58 = vld [vmem:[%s8731_s6 + $0x260] sm:$0xff] }
 0x661   : > { %v4610_v18 = vmul.f32 %v5536_v62, %v4598_v14 }
 0x662   : > { %6309 = vset.pattern.permute.xlu1 %v8791_v63  ;;  %v5560_v63 = vld [vmem:[%s8731_s6 + $0x470] sm:$0xff] }
 0x663   : > { %v4618_v17 = vadd.f32 %v4610_v18, %v4561_v46  ;;  %3793 = vperm.xlu1 %6309, %v8798_v34   ;;  %v4781_v36 = vmul.f32 %v5560_v63, %v4769_v53  ;;  %v5502_v18 = vld [vmem:[%s8731_s6 + $0x2a0] sm:$0xff] }
 0x665   : > { %v4655_v55 = vpop.permute.xlu1 %4654 }
 0x666   : > { %v4667_v42 = vmul.f32 %v5544_v4, %v4655_v55  ;;  %v4419_v4 = vpop.permute.xlu0 %4418 }
 0x667   : > { %6311 = vset.pattern.permute.xlu1 %v8792_v0  ;;  %v5568_v0 = vld [vmem:[%s8731_s6 + $0x4b0] sm:$0xff] }
 0x668   : > { %v4675_v13 = vadd.f32 %v4667_v42, %v4618_v17  ;;  %3909 = vperm.xlu1 %6311, %v8798_v34   ;;  %v5510_v17 = vld [vmem:[%s8731_s6 + $0x2e0] sm:$0xff]  ;;  %v8800_v42 = vmov 14  }
 0x66a   : > { %v4712_v33 = vpop.permute.xlu1 %4711 }
 0x66b   : > { %v4724_v54 = vmul.f32 %v5552_v35, %v4712_v33 }
 0x66c   : > { %6313 = vset.pattern.permute.xlu1 %v8793_v27  ;;  %v5430_v27 = vld [vmem:[%s8731_s6 + $0x60] sm:$0xff] }
 0x66d   : > { %v4732_v10 = vadd.f32 %v4724_v54, %v4675_v13  ;;  %4023 = vperm.xlu1 %6313, %v8798_v34   ;;  %v4437_v13 = vmul.f32 %v5510_v17, %v4419_v4 }
 0x66f   : > { %v4826_v28 = vpop.permute.xlu1 %4825  ;;  %v4789_v9 = vadd.f32 %v4781_v36, %v4732_v10  ;;  %v5526_v36 = vld [vmem:[%s8731_s6 + $0x360] sm:$0xff] }
 0x670   : > { %v4838_v6 = vmul.f32 %v5568_v0, %v4826_v28  ;;  %v5534_v10 = vld [vmem:[%s8731_s6 + $0x3a0] sm:$0xff]  ;;  %v4590_v0 = vpop.permute.xlu0 %4589 }
 0x671   : > { %6315 = vset.pattern.permute.xlu1 %v8794_v43  ;;  %v3924_v43 = vmul.f32 %v5438_v23, %v3906_v22  ;;  %v4608_v22 = vmul.f32 %v5534_v10, %v4590_v0  ;;  %v3763_v10 = vld [vmem:[%s8731_s6 + $0x28] sm:$0xff] }
 0x672   : > { %v8400_v37 = vadd.f32 %v4838_v6, %v4789_v9  ;;  %4137 = vperm.xlu1 %6315, %v8798_v34   ;;  %v8801_v6 = vmov 17  }
 0x674   : > { %v3849_v48 = vpop.permute.xlu1 %3848 }
 0x675   : > { %v3867_v40 = vmul.f32 %v5430_v27, %v3849_v48  ;;  %v4761_v48 = vpop.permute.xlu0 %4760 }
 0x676   : > { %6317 = vset.pattern.permute.xlu1 %v8796_v24 }
 0x677   : > { %v3875_v60 = vadd.f32 %v3867_v40, %v3810_v11  ;;  %4251 = vperm.xlu1 %6317, %v8798_v34   ;;  %v6559_v40 = vld [vmem:[%s8733_s8] sm:$0xff]  }
 0x678   : > { %5928 = vmatpush3.bf16.msra.mxu0 %v6559_v40 }
 0x679   : > { %v3963_v30 = vpop.permute.xlu1 %3962  ;;  %v3932_v12 = vadd.f32 %v3924_v43, %v3875_v60  ;;  %v8802_v60 = vmov 0.0  }
 0x67a   : > { %v3981_v61 = vmul.f32 %v5446_v1, %v3963_v30  ;;  %5929 = vmatprep.subr.bf16.mxu0 %v8802_v60  ;;  %v5558_v1 = vld [vmem:[%s8731_s6 + $0x460] sm:$0xff]  ;;  %v6560_v30 = vld [vmem:[%s8733_s8 + $0x8] sm:$0xff]  }
 0x67b   : > { %6318 = vset.pattern.permute.xlu1 %v8787_v5 }
 0x67c   : > { %v3989_v24 = vadd.f32 %v3981_v61, %v3932_v12  ;;  %4308 = vperm.xlu1 %6318, %v8798_v34   ;;  %v4818_v12 = vpop.permute.xlu0 %4817  ;;  %5930 = vmatpush3.bf16.msra.mxu0 %v6560_v30  ;;  %v4779_v61 = vmul.f32 %v5558_v1, %v4761_v48  ;;  %v5447_v1 = vld [vmem:[%s8731_s6 + $0xe8] sm:$0xff] }
 0x67d   : > { %5931 = vmatprep.subr.bf16.mxu0 %v8802_v60 }
 0x67e   : > { %v4077_v39 = vpop.permute.xlu1 %4076  ;;  %v4046_v47 = vadd.f32 %v4038_v29, %v3989_v24  ;;  %v8803_v24 = vld [vmem:[#allocation5_spill] sm:$0xff] }
 0x67f   : > { %v4095_v20 = vmul.f32 %v5462_v26, %v4077_v39  ;;  %v5574_v26 = vld [vmem:[%s8731_s6 + $0x4e0] sm:$0xff] }
 0x680   : > { %6319 = vset.pattern.permute.xlu1 %v8788_v59  ;;  %5932 = vmatpush3.bf16.msra.mxu0 %v6561_v38 }
 0x681   : > { %v4103_v5 = vadd.f32 %v4095_v20, %v4046_v47  ;;  %4365 = vperm.xlu1 %6319, %v8798_v34   ;;  %5933 = vmatprep.subr.bf16.mxu0 %v8802_v60 }
 0x683   : > { %v4191_v57 = vpop.permute.xlu1 %4190  ;;  %v4160_v19 = vadd.f32 %v4152_v44, %v4103_v5  ;;  %v6562_v44 = vld [vmem:[%s8733_s8 + $0x18] sm:$0xff]  }
 0x684   : > { %v4209_v50 = vmul.f32 %v5478_v51, %v4191_v57  ;;  %5934 = vmatpush3.bf16.msra.mxu0 %v6562_v44 }
 0x685   : > { %6320 = vset.pattern.permute.xlu1 %v8799_v45  ;;  %5935 = vmatprep.subr.bf16.mxu0 %v8802_v60  ;;  %v3861_v45 = vpop.permute.xlu0 %3860 }
 0x686   : > { %v4217_v59 = vadd.f32 %v4209_v50, %v4160_v19  ;;  %4422 = vperm.xlu1 %6320, %v8798_v34   ;;  %v6564_v19 = vld [vmem:[%s8733_s8 + $0x28] sm:$0xff]  }
 0x688   : > { %v4305_v7 = vpop.permute.xlu1 %4304  ;;  %v4274_v62 = vadd.f32 %v4266_v15, %v4217_v59  ;;  %5936 = vmatpush3.bf16.msra.mxu0 %v6563_v56  ;;  %v6566_v15 = vld [vmem:[%s8733_s8 + $0x38] sm:$0xff]  }
 0x689   : > { %v4323_v14 = vmul.f32 %v5494_v58, %v4305_v7  ;;  %5937 = vmatprep.subr.bf16.mxu0 %v8802_v60  ;;  %v3975_v58 = vpop.permute.xlu0 %3974 }
 0x68a   : > { %6322 = vset.pattern.permute.xlu1 %v8790_v49  ;;  %v5518_v49 = vld [vmem:[%s8731_s6 + $0x320] sm:$0xff] }
 0x68b   : > { %v4331_v46 = vadd.f32 %v4323_v14, %v4274_v62  ;;  %4536 = vperm.xlu1 %6322, %v8798_v34  }
 0x68c   : > { %5938 = vmatpush3.bf16.msra.mxu0 %v6564_v19 }
 0x68d   : > { %v4362_v53 = vpop.permute.xlu1 %4361  ;;  %5939 = vmatprep.subr.bf16.mxu0 %v8802_v60  ;;  %v4089_v62 = vpop.permute.xlu0 %4088 }
 0x68e   : > { %v4380_v55 = vmul.f32 %v5502_v18, %v4362_v53 }
 0x68f   : > { %6323 = vset.pattern.permute.xlu1 %v8800_v42 }
 0x690   : > { %v4388_v35 = vadd.f32 %v4380_v55, %v4331_v46  ;;  %4593 = vperm.xlu1 %6323, %v8798_v34  }
 0x691   : > { %v4203_v46 = vpop.permute.xlu0 %4202 }
 0x692   : > { %v4476_v63 = vpop.permute.xlu1 %4475  ;;  %v4445_v33 = vadd.f32 %v4437_v13, %v4388_v35 }
 0x693   : > { %v4494_v8 = vmul.f32 %v5518_v49, %v4476_v63  ;;  %v3765_v63 = vld [vmem:[%s8731_s6 + $0x38] sm:$0xff] }
 0x694   : > { %6325 = vset.pattern.permute.xlu1 %v8782_v3  ;;  %v5542_v3 = vld [vmem:[%s8731_s6 + $0x3e0] sm:$0xff] }
 0x695   : > { %v4502_v54 = vadd.f32 %v4494_v8, %v4445_v33  ;;  %4707 = vperm.xlu1 %6325, %v8798_v34   ;;  %v8520_v17 = vpop.permute.xlu0 %4430  ;;  %v5433_v8 = vld [vmem:[%s8731_s6 + $0x78] sm:$0xff] }
 0x696   : > { %v3870_v0 = vmul.f32 %v5433_v8, %v3861_v45 }
 0x697   : > { %v4533_v28 = vpop.permute.xlu1 %4532 }
 0x698   : > { %v4551_v9 = vmul.f32 %v5526_v36, %v4533_v28  ;;  %v5431_v28 = vld [vmem:[%s8731_s6 + $0x68] sm:$0xff] }
 0x699   : > { %6326 = vset.pattern.permute.xlu1 %v8801_v6  ;;  %v8526_v55 = vpop.permute.xlu0 %4601 }
 0x69a   : > { %v4559_v31 = vadd.f32 %v4551_v9, %v4502_v54  ;;  %4764 = vperm.xlu1 %6326, %v8798_v34   ;;  %v5441_v54 = vld [vmem:[%s8731_s6 + $0xb8] sm:$0xff] }
 0x69c   : > { %v4647_v27 = vpop.permute.xlu1 %4646  ;;  %v4616_v23 = vadd.f32 %v4608_v22, %v4559_v31  ;;  %v5439_v22 = vld [vmem:[%s8731_s6 + $0xa8] sm:$0xff] }
 0x69d   : > { %v4665_v11 = vmul.f32 %v5542_v3, %v4647_v27  ;;  %v8530_v13 = vpop.permute.xlu0 %4658 }
 0x69e   : > { %6327 = vset.pattern.permute.xlu1 %v8797_v41 }
 0x69f   : > { %v4673_v43 = vadd.f32 %v4665_v11, %v4616_v23  ;;  %4821 = vperm.xlu1 %6327, %v8798_v34   ;;  %v5566_v34 = vld [vmem:[%s8731_s6 + $0x4a0] sm:$0xff]  ;;  %v5449_v23 = vld [vmem:[%s8731_s6 + $0xf8] sm:$0xff] }
 0x6a0   : > { %v4836_v21 = vmul.f32 %v5566_v34, %v4818_v12 }
 0x6a1   : > { %v4704_v32 = vpop.permute.xlu1 %4703  ;;  %v8534_v49 = vpop.permute.xlu0 %4772 }
 0x6a2   : > { %v4722_v41 = vmul.f32 %v5550_v25, %v4704_v32 }
 0x6a3   : > { %6329 = vset.pattern.permute.xlu1 %v8784_v2 }
 0x6a4   : > { %v4730_v29 = vadd.f32 %v4722_v41, %v4673_v43  ;;  %4882 = vperm.xlu1 %6329, %v8803_v24   ;;  %v5457_v43 = vld [vmem:[%s8731_s6 + $0x138] sm:$0xff] }
 0x6a5   : > { %v3853_v9 = vpop.permute.xlu0 %3852  ;;  %v5465_v24 = vld [vmem:[%s8731_s6 + $0x178] sm:$0xff] }
 0x6a6   : > { %v4787_v39 = vadd.f32 %v4779_v61, %v4730_v29  ;;  %v4875_v47 = vpop.permute.xlu1 %4874  ;;  %v3868_v48 = vmul.f32 %v5431_v28, %v3853_v9  ;;  %v5455_v61 = vld [vmem:[%s8731_s6 + $0x128] sm:$0xff] }
 0x6a7   : > { %v4893_v20 = vmul.f32 %v5574_v26, %v4875_v47  ;;  %v5473_v47 = vld [vmem:[%s8731_s6 + $0x1b8] sm:$0xff]  ;;  %v5487_v28 = vld [vmem:[%s8731_s6 + $0x228] sm:$0xff] }
 0x6a8   : > { %v4844_v2 = vadd.f32 %v4836_v21, %v4787_v39 }
 0x6a9   : > { %v3967_v32 = vpop.permute.xlu0 %3966 }
 0x6aa   : > { %v4901_v5 = vadd.f32 %v4893_v20, %v4844_v2  ;;  %v3982_v29 = vmul.f32 %v5447_v1, %v3967_v32  ;;  %v4098_v20 = vmul.f32 %v5465_v24, %v4089_v62  ;;  %v5463_v2 = vld [vmem:[%s8731_s6 + $0x168] sm:$0xff]  ;;  %v5489_v62 = vld [vmem:[%s8731_s6 + $0x238] sm:$0xff] }
 0x6ab   : > { %v3804_v51 = vpop.permute.xlu1 %3803 }
 0x6ac   : > { %v8496_v16 = vadd.f32 %v8331_v52, %v4901_v5  ;;  %v6565_v52 = vld [vmem:[%s8733_s8 + $0x30] sm:$0xff]   ;;  %v3813_v36 = vmul.f32 %v3804_v51, %v3765_v63 }
 0x6ad   : > { %5940 = vmatpush3.bf16.msra.mxu0 %v6565_v52  ;;  %v4081_v44 = vpop.permute.xlu0 %4080  ;;  %v5481_v52 = vld [vmem:[%s8731_s6 + $0x1f8] sm:$0xff] }
 0x6ae   : > { %5941 = vmatprep.subr.bf16.mxu0 %v8802_v60  ;;  %v3878_v27 = vadd.f32 %v3870_v0, %v3813_v36  ;;  %v3984_v60 = vmul.f32 %v5449_v23, %v3975_v58 }
 0x6b0   : > { %v3918_v57 = vpop.permute.xlu1 %3917 }
 0x6b1   : > { %5942 = vmatpush3.bf16.msra.mxu0 %v6566_v15  ;;  %v3927_v6 = vmul.f32 %v5441_v54, %v3918_v57  ;;  %v5471_v57 = vld [vmem:[%s8731_s6 + $0x1a8] sm:$0xff]  ;;  %v4195_v8 = vpop.permute.xlu0 %4194  ;;  %v5497_v54 = vld [vmem:[%s8731_s6 + $0x278] sm:$0xff] }
 0x6b3   : > { %v3935_v40 = vadd.f32 %v3927_v6, %v3878_v27 }
 0x6b5   : > { %v4032_v50 = vpop.permute.xlu1 %4031  ;;  %v3992_v34 = vadd.f32 %v3984_v60, %v3935_v40  ;;  %v4480_v24 = vpop.permute.xlu0 %4479 }
 0x6b6   : > { %v4041_v12 = vmul.f32 %v5457_v43, %v4032_v50  ;;  %v4096_v50 = vmul.f32 %v5463_v2, %v4081_v44  ;;  %v5513_v43 = vld [vmem:[%s8731_s6 + $0x2f8] sm:$0xff]  ;;  %v5535_v44 = vld [vmem:[%s8731_s6 + $0x3a8] sm:$0xff] }
 0x6b8   : > { %v4049_v39 = vadd.f32 %v4041_v12, %v3992_v34  ;;  %v4440_v34 = vmul.f32 %v5513_v43, %v8520_v17  ;;  %v5529_v12 = vld [vmem:[%s8731_s6 + $0x378] sm:$0xff]  ;;  %v5527_v17 = vld [vmem:[%s8731_s6 + $0x368] sm:$0xff] }
 0x6ba   : > { %v4146_v59 = vpop.permute.xlu1 %4145  ;;  %v4106_v51 = vadd.f32 %v4098_v20, %v4049_v39 }
 0x6bb   : > { %v4155_v56 = vmul.f32 %v5473_v47, %v4146_v59  ;;  %v5479_v59 = vld [vmem:[%s8731_s6 + $0x1e8] sm:$0xff] }
 0x6bc   : > { %v4210_v9 = vmul.f32 %v5479_v59, %v4195_v8 }
 0x6bd   : > { %v4163_v58 = vadd.f32 %v4155_v56, %v4106_v51 }
 0x6bf   : > { %v8514_v7 = vpop.permute.xlu1 %4259 }
 0x6c0   : > { %v4269_v0 = vmul.f32 %v5489_v62, %v8514_v7 }
 0x6c4   : > { %v8516_v14 = vpop.permute.xlu1 %4316 }
 0x6c5   : > { %v4326_v6 = vmul.f32 %v5497_v54, %v8516_v14  ;;  %v5511_v14 = vld [vmem:[%s8731_s6 + $0x2e8] sm:$0xff] }
 0x6c9   : > { %v8518_v18 = vpop.permute.xlu1 %4373 }
 0x6ce   : > { %v8522_v4 = vpop.permute.xlu1 %4487 }
 0x6d3   : > { %v8524_v53 = vpop.permute.xlu1 %4544 }
 0x6d4   : > { %v4554_v47 = vmul.f32 %v5529_v12, %v8524_v53 }
 0x6d8   : > { %v8528_v42 = vpop.permute.xlu1 %4715 }
 0x6dd   : > { %v8532_v35 = vpop.permute.xlu1 %4829 }
 0x6e2   : > { %v3794_v33 = vpop.permute.xlu1 %3793 }
 0x6e3   : > { %v3811_v31 = vmul.f32 %v3794_v33, %v3763_v10  ;;  %v4212_v33 = vmul.f32 %v5481_v52, %v4203_v46  ;;  %v5505_v46 = vld [vmem:[%s8731_s6 + $0x2b8] sm:$0xff] }
 0x6e4   : > { %v4383_v7 = vmul.f32 %v5505_v46, %v8518_v18  ;;  %v5521_v18 = vld [vmem:[%s8731_s6 + $0x338] sm:$0xff] }
 0x6e5   : > { %v3876_v25 = vadd.f32 %v3868_v48, %v3811_v31  ;;  %v4220_v10 = vadd.f32 %v4212_v33, %v4163_v58  ;;  %v5503_v48 = vld [vmem:[%s8731_s6 + $0x2a8] sm:$0xff]  ;;  %v5561_v46 = vld [vmem:[%s8731_s6 + $0x478] sm:$0xff] }
 0x6e7   : > { %v3910_v3 = vpop.permute.xlu1 %3909  ;;  %v4277_v23 = vadd.f32 %v4269_v0, %v4220_v10  ;;  %v5559_v10 = vld [vmem:[%s8731_s6 + $0x468] sm:$0xff] }
 0x6e8   : > { %v3925_v11 = vmul.f32 %v5439_v22, %v3910_v3  ;;  %v5495_v22 = vld [vmem:[%s8731_s6 + $0x268] sm:$0xff] }
 0x6e9   : > { %v4334_v40 = vadd.f32 %v4326_v6, %v4277_v23  ;;  %v5575_v23 = vld [vmem:[%s8731_s6 + $0x4e8] sm:$0xff] }
 0x6ea   : > { %v3933_v41 = vadd.f32 %v3925_v11, %v3876_v25 }
 0x6eb   : > { %v4391_v32 = vadd.f32 %v4383_v7, %v4334_v40 }
 0x6ec   : > { %v4024_v30 = vpop.permute.xlu1 %4023  ;;  %v3990_v26 = vadd.f32 %v3982_v29, %v3933_v41  ;;  %v5519_v29 = vld [vmem:[%s8731_s6 + $0x328] sm:$0xff] }
 0x6ed   : > { %v4039_v38 = vmul.f32 %v5455_v61, %v4024_v30  ;;  %v4495_v20 = vmul.f32 %v5519_v29, %v4480_v24 }
 0x6ef   : > { %v4047_v5 = vadd.f32 %v4039_v38, %v3990_v26  ;;  %v4448_v26 = vadd.f32 %v4440_v34, %v4391_v32  ;;  %v4497_v38 = vmul.f32 %v5521_v18, %v8522_v4 }
 0x6f1   : > { %v4138_v21 = vpop.permute.xlu1 %4137  ;;  %v4104_v45 = vadd.f32 %v4096_v50, %v4047_v5  ;;  %v4505_v2 = vadd.f32 %v4497_v38, %v4448_v26  ;;  %v5537_v5 = vld [vmem:[%s8731_s6 + $0x3b8] sm:$0xff] }
 0x6f2   : > { %v4153_v15 = vmul.f32 %v5471_v57, %v4138_v21  ;;  %v4611_v53 = vmul.f32 %v5537_v5, %v8526_v55  ;;  %v5545_v50 = vld [vmem:[%s8731_s6 + $0x3f8] sm:$0xff]  ;;  %v5551_v55 = vld [vmem:[%s8731_s6 + $0x428] sm:$0xff] }
 0x6f3   : > { %v4562_v57 = vadd.f32 %v4554_v47, %v4505_v2  ;;  %v4668_v59 = vmul.f32 %v5545_v50, %v8530_v13 }
 0x6f4   : > { %v4161_v36 = vadd.f32 %v4153_v15, %v4104_v45  ;;  %v5543_v45 = vld [vmem:[%s8731_s6 + $0x3e8] sm:$0xff]  ;;  %v4651_v15 = vpop.permute.xlu0 %4650 }
 0x6f5   : > { %v4619_v58 = vadd.f32 %v4611_v53, %v4562_v57  ;;  %v4666_v8 = vmul.f32 %v5543_v45, %v4651_v15 }
 0x6f6   : > { %v4252_v19 = vpop.permute.xlu1 %4251  ;;  %v4218_v3 = vadd.f32 %v4210_v9, %v4161_v36 }
 0x6f7   : > { %v4267_v27 = vmul.f32 %v5487_v28, %v4252_v19  ;;  %v4676_v54 = vadd.f32 %v4668_v59, %v4619_v58 }
 0x6f9   : > { %v4275_v25 = vadd.f32 %v4267_v27, %v4218_v3  ;;  %v4782_v27 = vmul.f32 %v5561_v46, %v8534_v49  ;;  %v5577_v49 = vld [vmem:[%s8731_s6 + $0x4f8] sm:$0xff] }
 0x6fb   : > { %v4309_v63 = vpop.permute.xlu1 %4308 }
 0x6fc   : > { %v4324_v11 = vmul.f32 %v5495_v22, %v4309_v63  ;;  %v5553_v63 = vld [vmem:[%s8731_s6 + $0x438] sm:$0xff]  ;;  %v5567_v22 = vld [vmem:[%s8731_s6 + $0x4a8] sm:$0xff] }
 0x6fd   : > { %v4725_v36 = vmul.f32 %v5553_v63, %v8528_v42  ;;  %v5569_v42 = vld [vmem:[%s8731_s6 + $0x4b8] sm:$0xff] }
 0x6fe   : > { %v4332_v30 = vadd.f32 %v4324_v11, %v4275_v25 }
 0x6ff   : > { %v4733_v6 = vadd.f32 %v4725_v36, %v4676_v54 }
 0x700   : > { %v4366_v31 = vpop.permute.xlu1 %4365 }
 0x701   : > { %v4381_v60 = vmul.f32 %v5503_v48, %v4366_v31  ;;  %v4879_v31 = vpop.permute.xlu0 %4878  ;;  %v4790_v40 = vadd.f32 %v4782_v27, %v4733_v6 }
 0x702   : > { %v4894_v43 = vmul.f32 %v5575_v23, %v4879_v31 }
 0x703   : > { %v4389_v61 = vadd.f32 %v4381_v60, %v4332_v30  ;;  %v5576_v60 = vld [vmem:[%s8731_s6 + $0x4f0] sm:$0xff] }
 0x705   : > { %v4423_v1 = vpop.permute.xlu1 %4422 }
 0x706   : > { %v4438_v41 = vmul.f32 %v5511_v14, %v4423_v1  ;;  %v4839_v14 = vmul.f32 %v5569_v42, %v8532_v35  ;;  %v4887_v1 = vpop.permute.xlu0 %4886 }
 0x707   : > { %v4896_v12 = vmul.f32 %v5577_v49, %v4887_v1 }
 0x708   : > { %v4446_v39 = vadd.f32 %v4438_v41, %v4389_v61  ;;  %v4847_v30 = vadd.f32 %v4839_v14, %v4790_v40 }
 0x70a   : > { %v4537_v21 = vpop.permute.xlu1 %4536  ;;  %v4503_v51 = vadd.f32 %v4495_v20, %v4446_v39  ;;  %v4904_v61 = vadd.f32 %v4896_v12, %v4847_v30 }
 0x70b   : > { %v4552_v4 = vmul.f32 %v5527_v17, %v4537_v21  ;;  %v4918_v17 = vld [vmem:[%s8732_s7] sm:$0x1] }
 0x70d   : > { %v4560_v52 = vadd.f32 %v4552_v4, %v4503_v51 }
 0x70f   : > { %v4594_v56 = vpop.permute.xlu1 %4593 }
 0x710   : > { %v4609_v19 = vmul.f32 %v5535_v44, %v4594_v56 }
 0x712   : > { %v4617_v33 = vadd.f32 %v4609_v19, %v4560_v52 }
 0x714   : > { %v4708_v62 = vpop.permute.xlu1 %4707  ;;  %v4674_v0 = vadd.f32 %v4666_v8, %v4617_v33 }
 0x715   : > { %v4723_v28 = vmul.f32 %v5551_v55, %v4708_v62 }
 0x717   : > { %v4731_v3 = vadd.f32 %v4723_v28, %v4674_v0 }
 0x719   : > { %v4765_v9 = vpop.permute.xlu1 %4764 }
 0x71a   : > { %v4780_v13 = vmul.f32 %v5559_v10, %v4765_v9 }
 0x71c   : > { %v4788_v48 = vadd.f32 %v4780_v13, %v4731_v3 }
 0x71e   : > { %v4822_v7 = vpop.permute.xlu1 %4821 }
 0x71f   : > { %v4837_v11 = vmul.f32 %v5567_v22, %v4822_v7 }
 0x721   : > { %v4845_v25 = vadd.f32 %v4837_v11, %v4788_v48 }
 0x723   : > { %v4902_v32 = vadd.f32 %v4894_v43, %v4845_v25  ;;  %v4883_v18 = vpop.permute.xlu1 %4882 }
 0x724   : > { %v4895_v41 = vmul.f32 %v5576_v60, %v4883_v18 }
 0x725   : > { %v4909_v34 = vadd.f32 %v8496_v16, %v4902_v32 }
 0x726   : > { %v4903_v35 = vadd.f32 %v4895_v41, %v8400_v37  ;;  %v4938_v37 = vld [vmem:[%s8734_s9] sm:$0x1] }
 0x728   : > { %v4910_v29 = vadd.f32 %v4909_v34, %v4903_v35 }
 0x72a   : > { %v4911_v24 = vadd.f32 %v4910_v29, %v4904_v61 }
 0x72c   : > { %v4912_v26 = vrot.slane %v4911_v24, 4 }
 0x72e   : > { %v4913_v38 = vadd.f32 %v4912_v26, %v4911_v24 }
 0x730   : > { %v4914_v21 = vrot.slane %v4913_v38, 2 }
 0x732   : > { %v4915_v39 = vadd.f32 %v4914_v21, %v4913_v38 }
 0x734   : > { %v4916_v47 = vrot.slane %v4915_v39, 1 }
 0x736   : > { %v4917_v20 = vadd.f32 %v4916_v47, %v4915_v39 }
 0x738   : > { %v4919_v2 = vadd.f32 %v4918_v17, %v4917_v20 }
 0x73a   : > { %v4920_v16 = vmax.f32 %v4919_v2, 0.0 }
 0x73c   : > { %v4921_v44 = vpack.c.bf16 %v4920_v16, %v4920_v16 }
 0x73e   : > { %5944 = vmatmul.mubr.bf16.vlgmr.msra.gmra.mrb[96].mxu0 %v4921_v44 }
 0x811   : > { %v5021_v5 = vpop.f32.mrb[96].mxu0 }
 0x812   : > { %v5022_v51 = vadd.f32 %v5021_v5, %v4938_v37  ;;  %v5945_v4 = vpop.f32.mrb[97].mxu0 }
 0x813   : > { %v5024_v56 = vpop.f32.mrb[98].mxu0 }
 0x814   : > { %5027 = vst [vmem:[%s351_s11] sm:$0x1] %v5022_v51  ;;  %v5946_v57 = vpop.f32.mrb[99].mxu0 }
 0x815   : > { %6580 = shalt.err (!%p6577_p3)
}
 0x816   : > { %s6581_s28 = scalar_lea.hbm %s8683_s25, 16  ;;  %s6585_s18 = scalar_lea.hbm %s8735_s10, 32 }
 0x817   : > { %p6582_p4 = scmp.ne.s32.totalorder %s8683_s25, %s6581_s28  ;;  %p6586_p9 = scmp.lt.u32.totalorder %s8683_s25, %s8735_s10 }
 0x818   : > { %p6587_p10 = scmp.lt.u32.totalorder %s6585_s18, %s6581_s28  ;;  %p6589_p12 = scmp.lt.u32.totalorder %s6581_s28, %s8683_s25 }
 0x819   : > { %p6583_p7 = pnand %p6582_p4, %p6747_p5 }
 0x81a   : > { %p6588_p11 = por %p6587_p10, %p6586_p9 }
 0x81b   : > { %p6584_p8 = pneg %p6583_p7 }
 0x81c   : > { %p6590_p13 = por %p6589_p12, %p6588_p11 }
 0x81e   : > { %p6591_p0 = pnand %p6590_p13, %p6584_p8 }
 0x820   : > { %6594 = shalt.err (!%p6591_p0)
}
 0x821   : > { %6110 = dma.vmem_to_hbm [thread:$0]  (%p6747_p5), %s8685_s12, 16, %s8683_s25, %s5029_s26  }
 0x822 PF: > { %p6116_p1 = scmp.ge.s32.totalorder %s6629_s16, 2  ;;  %s5053_s17 = sand.u32 1, %s6617_s13  }
 0x823   : > { %s5054_s29 = scalar_lea.sflag [#allocation3], %s5053_s17 }
 0x824   : > { %p6113_p2 = pnand %p6116_p1, %p6751_p6 }
 0x826   : > { %6612 = dma.done.wait (!%p6113_p2), %s5054_s29, 16  }
 0x827   : > { %6614 = vsyncadd (!%p6113_p2), %s5054_s29, 4294967280  ;;  %p20_p3 = scmp.ge.s32.totalorder %s6734_s19, 4   ;;  %s8804_s13 = smov %s6621_s14 }
 0x828   : > { %s8805_s14 = smov %s6625_s15  ;;  %s8806_s15 = smov %s6745_s22 }
 0x829   : > { %s8807_s16 = smov %s6734_s19  ;;  %22 = sbr.rel (!%p20_p3) target bundleno = 3 (0x3), region = 129 }
 0x830   :  { %5058 = vsyncpa [#allocation3], 1 }
 0x831   :  { %5060 = vsyncpa [#allocation3 + $0x1], 1 }

</bundles_post_ra>
